<compile_context>
chip_gen: v6e
topology: v6e:2x2x1
jax: 0.10.0
libtpu: 0.0.40
codegen_flags: <defaults>
</compile_context>

<pallas_src>
import jax
import jax.numpy as jnp
from jax.experimental import pallas as pl
from jax.experimental.pallas import tpu as pltpu

# Model hyperparameters (from the PyTorch module)
N_CODES = 1104     # n_diagnosis_codes
INPUT_SIZE = 70    # embedding dim / LSTM input
HIDDEN = 70        # LSTM hidden size
ATTN_HID = 64      # attention projection hidden
N_LABELS = 3
HPAD = 128         # lane-aligned padded hidden size
CPAD = 1152        # code dim padded to a multiple of 128 (1104 -> 1152)

# kernel gate-block order (i, f, o, g); PyTorch order is (i, f, g, o)
_GATE_SRC = (0, 1, 3, 2)


# ---------------------------------------------------------------------------
# Fused kernel: embed(relu,mean) -> LSTM -> self-attention -> fc -> softmax
# ---------------------------------------------------------------------------
def _ipsrnn_kernel(x_ref,       # (T*B, CPAD)    f32, raw codes, t-major rows
                   wemb_ref,    # (2*CPAD, HPAD) bf16, [relu(w); relu(-w)]/C, padded
                   wih_ref,     # (HPAD, 4*HPAD) bf16, pre-transposed, gates (i,f,o,g)
                   whh_ref,     # (HPAD, 4*HPAD) bf16, pre-transposed, gates (i,f,o,g)
                   b_ref,       # (1, 4*HPAD)    f32, combined b_ih+b_hh, (i,f,o,g)
                   wp1_ref,     # (HPAD, ATTN_HID)
                   bp1_ref,     # (1, ATTN_HID)
                   wp2_ref,     # (ATTN_HID, 1)
                   bp2_ref,     # (1, 1)
                   wfc_ref,     # (HPAD, N_LABELS)
                   bfc_ref,     # (1, N_LABELS)
                   o_ref):      # (B, N_LABELS)
    B = o_ref.shape[0]
    TB = x_ref.shape[0]
    T = TB // B
    HP = whh_ref.shape[0]

    # ---- embedding: mean_c relu(x*W) as ONE MXU matmul (exact) -----------
    #   relu(x*w) = relu(x)*relu(w) + relu(-x)*relu(-w)
    x = x_ref[...]
    xcat = jnp.concatenate([jnp.maximum(x, 0.0), jnp.maximum(-x, 0.0)],
                           axis=1).astype(jnp.bfloat16)          # (TB, 2*CPAD)
    seq_in = jnp.dot(xcat, wemb_ref[...],
                     preferred_element_type=jnp.float32)         # (TB, HPAD)
    # seq_in lanes >= 70 are exactly zero (weight columns are zero there).

    # ---- LSTM input projection for all timesteps (one matmul) ------------
    xg = (jnp.dot(seq_in.astype(jnp.bfloat16), wih_ref[...],
                  preferred_element_type=jnp.float32)
          + b_ref[...])                                          # (TB, 4*HPAD)

    # ---- LSTM recurrence: fully unrolled, h/c register-resident ----------
    h = jnp.zeros((B, HP), jnp.float32)
    c = jnp.zeros((B, HP), jnp.float32)
    hs = []
    for t in range(T):                                           # static unroll
        gates = xg[t * B:(t + 1) * B, :] + jnp.dot(
            h.astype(jnp.bfloat16), whh_ref[...],                # ref read per step
            preferred_element_type=jnp.float32)                  # (B, 4*HPAD)
        sig = jax.nn.sigmoid(gates[:, :3 * HP])                  # one EUP pass: i,f,o
        i_g = sig[:, 0 * HP:1 * HP]
        f_g = sig[:, 1 * HP:2 * HP]
        o_g = sig[:, 2 * HP:3 * HP]
        g_g = jnp.tanh(gates[:, 3 * HP:4 * HP])                  # one EUP pass: g
        c = f_g * c + i_g * g_g
        h = o_g * jnp.tanh(c)
        hs.append(h)                                             # stays in vregs

    # ---- self-attention energies from register-resident h_t's ------------
    # Tiny per-step matmuls; avoids materializing the (T*B, HPAD) sequence
    # (no VMEM scratch / masked stores, no sublane-unaligned concat).
    e_t = []
    for t in range(T):
        e1 = jnp.maximum(
            jnp.dot(hs[t], wp1_ref[...], preferred_element_type=jnp.float32)
            + bp1_ref[...], 0.0)                                 # (B, 64)
        e_t.append(jnp.dot(e1, wp2_ref[...],
                           preferred_element_type=jnp.float32)
                   + bp2_ref[...])                               # (B, 1)

    # softmax over the sequence axis (per batch row), unrolled on tiny tiles
    m = e_t[0]
    for t in range(1, T):
        m = jnp.maximum(m, e_t[t])
    ex_t = [jnp.exp(e - m) for e in e_t]
    den = ex_t[0]
    for t in range(1, T):
        den = den + ex_t[t]
    inv_den = pl.reciprocal(den, approx=True)                    # EUP slot

    # weighted sum of hidden states (register-resident)
    ctx = jnp.zeros((B, HP), jnp.float32)
    for t in range(T):
        ctx = ctx + hs[t] * (ex_t[t] * inv_den)

    logits = (jnp.dot(ctx, wfc_ref[...], preferred_element_type=jnp.float32)
              + bfc_ref[...])                                    # (B, 3)
    lm = jnp.max(logits, axis=1, keepdims=True)
    le = jnp.exp(logits - lm)
    o_ref[...] = le / jnp.sum(le, axis=1, keepdims=True)         # exact softmax


def _ipsrnn_pallas(x2, batch, pp):
    def full(shape):
        return pl.BlockSpec(shape, lambda i, _n=len(shape): (0,) * _n)

    args = (x2, pp["wemb"], pp["wih_t"], pp["whh_t"], pp["b"],
            pp["wp1"], pp["bp1"], pp["wp2"], pp["bp2"], pp["wfc"], pp["bfc"])
    return pl.pallas_call(
        _ipsrnn_kernel,
        out_shape=jax.ShapeDtypeStruct((batch, N_LABELS), jnp.float32),
        grid_spec=pltpu.PrefetchScalarGridSpec(
            num_scalar_prefetch=0,
            grid=(1,),
            in_specs=[full(a.shape) for a in args],
            out_specs=full((batch, N_LABELS)),
        ),
        compiler_params=pltpu.CompilerParams(
            dimension_semantics=("arbitrary",)),
    )(*args)


# ---------------------------------------------------------------------------
# Host-side one-time weight preparation (padding / transposes / bf16 casts)
# ---------------------------------------------------------------------------
def prepare_params(p):
    C, D = p["embed"].shape
    H = HIDDEN
    inv_c = jnp.float32(1.0 / C)

    # fused embedding weight: rows [0:C] = relu(w)/C, rows [CPAD:CPAD+C] = relu(-w)/C
    wemb = jnp.zeros((2 * CPAD, HPAD), jnp.float32)
    wemb = wemb.at[:C, :D].set(jnp.maximum(p["embed"], 0.0) * inv_c)
    wemb = wemb.at[CPAD:CPAD + C, :D].set(jnp.maximum(-p["embed"], 0.0) * inv_c)
    wemb = wemb.astype(jnp.bfloat16)

    def pad_gate_w(w, in_dim):
        # w: PyTorch layout (4H, in_dim), gate order (i, f, g, o).
        # Reorder to kernel layout (i, f, o, g), pad, transpose, cast bf16.
        out = jnp.zeros((HPAD, 4 * HPAD), jnp.float32)
        for k, g in enumerate(_GATE_SRC):
            out = out.at[:in_dim, k * HPAD:k * HPAD + H].set(
                w[g * H:(g + 1) * H, :].T)
        return out.astype(jnp.bfloat16)

    wih_t = pad_gate_w(p["w_ih"], INPUT_SIZE)
    whh_t = pad_gate_w(p["w_hh"], HIDDEN)

    b = p["b_lstm"].reshape(-1)            # combined b_ih + b_hh, (4H,)
    bpad = jnp.zeros((1, 4 * HPAD), jnp.float32)
    for k, g in enumerate(_GATE_SRC):
        bpad = bpad.at[0, k * HPAD:k * HPAD + H].set(b[g * H:(g + 1) * H])

    wp1 = jnp.zeros((HPAD, ATTN_HID), jnp.float32).at[:H, :].set(p["wp1"])
    wfc = jnp.zeros((HPAD, N_LABELS), jnp.float32).at[:H, :].set(p["wfc"])

    return dict(wemb=wemb, wih_t=wih_t, whh_t=whh_t, b=bpad,
                wp1=wp1, bp1=p["bp1"], wp2=p["wp2"], bp2=p["bp2"],
                wfc=wfc, bfc=p["bfc"])


# ---------------------------------------------------------------------------
# Full forward
# ---------------------------------------------------------------------------
def ipsrnn_forward(x, pp):
    T, B, C = x.shape
    x2 = x.reshape(T * B, C)                       # row-major collapse: free view
    x2 = jnp.pad(x2, ((0, 0), (0, CPAD - C)))      # pad code dim to lane tiles
    return _ipsrnn_pallas(x2, B, pp)


def init_params(key):
    ks = jax.random.split(key, 10)
    s = 0.1
    return {
        "embed": s * jax.random.normal(ks[0], (N_CODES, INPUT_SIZE), jnp.float32),
        "w_ih": s * jax.random.normal(ks[1], (4 * HIDDEN, INPUT_SIZE), jnp.float32),
        "w_hh": s * jax.random.normal(ks[2], (4 * HIDDEN, HIDDEN), jnp.float32),
        # combined LSTM bias; real weight loading must pass b_ih + b_hh here
        "b_lstm": s * jax.random.normal(ks[3], (1, 4 * HIDDEN), jnp.float32),
        "wp1": s * jax.random.normal(ks[4], (HIDDEN, ATTN_HID), jnp.float32),
        "bp1": s * jax.random.normal(ks[5], (1, ATTN_HID), jnp.float32),
        "wp2": s * jax.random.normal(ks[6], (ATTN_HID, 1), jnp.float32),
        "bp2": s * jax.random.normal(ks[7], (1, 1), jnp.float32),
        "wfc": s * jax.random.normal(ks[8], (HIDDEN, N_LABELS), jnp.float32),
        "bfc": s * jax.random.normal(ks[9], (1, N_LABELS), jnp.float32),
    }


if __name__ == "__main__":
    key = jax.random.PRNGKey(0)
    k_x, k_p = jax.random.split(key)

    T, B = 8, 2
    x = jax.random.normal(k_x, (T, B, N_CODES), jnp.float32)   # (T, B, C)

    params = init_params(k_p)
    prepped = prepare_params(params)     # one-time host-side padding/transpose

    fwd = jax.jit(ipsrnn_forward)
    logit = jax.block_until_ready(fwd(x, prepped))

    assert logit.shape == (B, N_LABELS)
    assert bool(jnp.all(jnp.isfinite(logit)))
    assert bool(jnp.allclose(jnp.sum(logit, axis=1), 1.0, atol=1e-4))

    print("KERNEL_OK")
</pallas_src>

<mosaic_0001>
module attributes {stable_mosaic.version = 11 : i64} {
  func.func @_ipsrnn_kernel(%arg0: i32, %arg1: memref<16x1152xf32, #tpu.memory_space<vmem>>, %arg2: memref<2304x128xbf16, #tpu.memory_space<vmem>>, %arg3: memref<128x512xbf16, #tpu.memory_space<vmem>>, %arg4: memref<128x512xbf16, #tpu.memory_space<vmem>>, %arg5: memref<1x512xf32, #tpu.memory_space<vmem>>, %arg6: memref<128x64xf32, #tpu.memory_space<vmem>>, %arg7: memref<1x64xf32, #tpu.memory_space<vmem>>, %arg8: memref<64x1xf32, #tpu.memory_space<vmem>>, %arg9: memref<1x1xf32, #tpu.memory_space<vmem>>, %arg10: memref<128x3xf32, #tpu.memory_space<vmem>>, %arg11: memref<1x3xf32, #tpu.memory_space<vmem>>, %arg12: memref<2x3xf32, #tpu.memory_space<vmem>>) attributes {dimension_semantics = [#tpu.dimension_semantics<arbitrary>], iteration_bounds = array<i64: 1>, scalar_prefetch = 0 : i64, scratch_operands = 0 : i64, tpu.core_type = #tpu.core_type<tc>, window_params = [{pipeline_mode = #tpu.pipeline_mode<synchronous>, transform_indices = @transform_0, window_bounds = array<i64: 16, 1152>}, {pipeline_mode = #tpu.pipeline_mode<synchronous>, transform_indices = @transform_1, window_bounds = array<i64: 2304, 128>}, {pipeline_mode = #tpu.pipeline_mode<synchronous>, transform_indices = @transform_2, window_bounds = array<i64: 128, 512>}, {pipeline_mode = #tpu.pipeline_mode<synchronous>, transform_indices = @transform_3, window_bounds = array<i64: 128, 512>}, {pipeline_mode = #tpu.pipeline_mode<synchronous>, transform_indices = @transform_4, window_bounds = array<i64: 1, 512>}, {pipeline_mode = #tpu.pipeline_mode<synchronous>, transform_indices = @transform_5, window_bounds = array<i64: 128, 64>}, {pipeline_mode = #tpu.pipeline_mode<synchronous>, transform_indices = @transform_6, window_bounds = array<i64: 1, 64>}, {pipeline_mode = #tpu.pipeline_mode<synchronous>, transform_indices = @transform_7, window_bounds = array<i64: 64, 1>}, {pipeline_mode = #tpu.pipeline_mode<synchronous>, transform_indices = @transform_8, window_bounds = array<i64: 1, 1>}, {pipeline_mode = #tpu.pipeline_mode<synchronous>, transform_indices = @transform_9, window_bounds = array<i64: 128, 3>}, {pipeline_mode = #tpu.pipeline_mode<synchronous>, transform_indices = @transform_10, window_bounds = array<i64: 1, 3>}, {pipeline_mode = #tpu.pipeline_mode<synchronous>, transform_indices = @transform_11, window_bounds = array<i64: 2, 3>}]} {
    %c0 = arith.constant 0 : index
    %c0_0 = arith.constant 0 : index
    %0 = vector.load %arg1[%c0, %c0_0] : memref<16x1152xf32, #tpu.memory_space<vmem>>, vector<16x1152xf32>
    %cst = arith.constant 0.000000e+00 : f32
    %1 = vector.broadcast %cst : f32 to vector<16x1152xf32>
    %2 = arith.maximumf %0, %1 : vector<16x1152xf32>
    %cst_1 = arith.constant 0.000000e+00 : f32
    %3 = vector.broadcast %cst_1 : f32 to vector<16x1152xf32>
    %4 = arith.subf %3, %0 : vector<16x1152xf32>
    %cst_2 = arith.constant 0.000000e+00 : f32
    %5 = vector.broadcast %cst_2 : f32 to vector<16x1152xf32>
    %6 = arith.maximumf %4, %5 : vector<16x1152xf32>
    %7 = tpu.concatenate %2, %6 in 1 : vector<16x1152xf32>, vector<16x1152xf32> -> vector<16x2304xf32>
    %8 = arith.truncf %7 : vector<16x2304xf32> to vector<16x2304xbf16>
    %c0_3 = arith.constant 0 : index
    %c0_4 = arith.constant 0 : index
    %9 = vector.load %arg2[%c0_3, %c0_4] : memref<2304x128xbf16, #tpu.memory_space<vmem>>, vector<2304x128xbf16>
    %cst_5 = arith.constant dense<0.000000e+00> : vector<16x128xf32>
    %10 = tpu.matmul %8, %9, %cst_5 {dimension_numbers = #tpu.dot_dimension_numbers<[1], [0], [0], [1], [0, 0, 1, 1], [], []>} : vector<16x2304xbf16>, vector<2304x128xbf16>, vector<16x128xf32> -> vector<16x128xf32>
    %11 = arith.truncf %10 : vector<16x128xf32> to vector<16x128xbf16>
    %c0_6 = arith.constant 0 : index
    %c0_7 = arith.constant 0 : index
    %12 = vector.load %arg3[%c0_6, %c0_7] : memref<128x512xbf16, #tpu.memory_space<vmem>>, vector<128x512xbf16>
    %cst_8 = arith.constant dense<0.000000e+00> : vector<16x512xf32>
    %13 = tpu.matmul %11, %12, %cst_8 {dimension_numbers = #tpu.dot_dimension_numbers<[1], [0], [0], [1], [0, 0, 1, 1], [], []>} : vector<16x128xbf16>, vector<128x512xbf16>, vector<16x512xf32> -> vector<16x512xf32>
    %c0_9 = arith.constant 0 : index
    %c0_10 = arith.constant 0 : index
    %14 = vector.load %arg5[%c0_9, %c0_10] : memref<1x512xf32, #tpu.memory_space<vmem>>, vector<1x512xf32>
    %15 = vector.broadcast %14 : vector<1x512xf32> to vector<16x512xf32>
    %16 = arith.addf %13, %15 : vector<16x512xf32>
    %cst_11 = arith.constant 0.000000e+00 : f32
    %17 = vector.broadcast %cst_11 : f32 to vector<2x128xf32>
    %cst_12 = arith.constant 0.000000e+00 : f32
    %18 = vector.broadcast %cst_12 : f32 to vector<2x128xf32>
    %19 = vector.extract_strided_slice %16 {offsets = [0, 0], sizes = [2, 512], strides = [1, 1]} : vector<16x512xf32> to vector<2x512xf32>
    %20 = arith.truncf %17 : vector<2x128xf32> to vector<2x128xbf16>
    %c0_13 = arith.constant 0 : index
    %c0_14 = arith.constant 0 : index
    %21 = vector.load %arg4[%c0_13, %c0_14] : memref<128x512xbf16, #tpu.memory_space<vmem>>, vector<128x512xbf16>
    %cst_15 = arith.constant dense<0.000000e+00> : vector<2x512xf32>
    %22 = tpu.matmul %20, %21, %cst_15 {dimension_numbers = #tpu.dot_dimension_numbers<[1], [0], [0], [1], [0, 0, 1, 1], [], []>} : vector<2x128xbf16>, vector<128x512xbf16>, vector<2x512xf32> -> vector<2x512xf32>
    %23 = arith.addf %19, %22 : vector<2x512xf32>
    %24 = vector.extract_strided_slice %23 {offsets = [0, 0], sizes = [2, 384], strides = [1, 1]} : vector<2x512xf32> to vector<2x384xf32>
    %25 = arith.negf %24 : vector<2x384xf32>
    %26 = math.exp %25 : vector<2x384xf32>
    %cst_16 = arith.constant 1.000000e+00 : f32
    %27 = vector.broadcast %cst_16 : f32 to vector<2x384xf32>
    %28 = arith.addf %27, %26 : vector<2x384xf32>
    %29 = arith.divf %27, %28 : vector<2x384xf32>
    %30 = vector.extract_strided_slice %29 {offsets = [0, 0], sizes = [2, 128], strides = [1, 1]} : vector<2x384xf32> to vector<2x128xf32>
    %31 = vector.extract_strided_slice %29 {offsets = [0, 128], sizes = [2, 128], strides = [1, 1]} : vector<2x384xf32> to vector<2x128xf32>
    %32 = vector.extract_strided_slice %29 {offsets = [0, 256], sizes = [2, 128], strides = [1, 1]} : vector<2x384xf32> to vector<2x128xf32>
    %33 = vector.extract_strided_slice %23 {offsets = [0, 384], sizes = [2, 128], strides = [1, 1]} : vector<2x512xf32> to vector<2x128xf32>
    %34 = math.tanh %33 : vector<2x128xf32>
    %35 = arith.mulf %31, %18 : vector<2x128xf32>
    %36 = arith.mulf %30, %34 : vector<2x128xf32>
    %37 = arith.addf %35, %36 : vector<2x128xf32>
    %38 = math.tanh %37 : vector<2x128xf32>
    %39 = arith.mulf %32, %38 : vector<2x128xf32>
    %40 = vector.extract_strided_slice %16 {offsets = [2, 0], sizes = [2, 512], strides = [1, 1]} : vector<16x512xf32> to vector<2x512xf32>
    %41 = arith.truncf %39 : vector<2x128xf32> to vector<2x128xbf16>
    %c0_17 = arith.constant 0 : index
    %c0_18 = arith.constant 0 : index
    %42 = vector.load %arg4[%c0_17, %c0_18] : memref<128x512xbf16, #tpu.memory_space<vmem>>, vector<128x512xbf16>
    %cst_19 = arith.constant dense<0.000000e+00> : vector<2x512xf32>
    %43 = tpu.matmul %41, %42, %cst_19 {dimension_numbers = #tpu.dot_dimension_numbers<[1], [0], [0], [1], [0, 0, 1, 1], [], []>} : vector<2x128xbf16>, vector<128x512xbf16>, vector<2x512xf32> -> vector<2x512xf32>
    %44 = arith.addf %40, %43 : vector<2x512xf32>
    %45 = vector.extract_strided_slice %44 {offsets = [0, 0], sizes = [2, 384], strides = [1, 1]} : vector<2x512xf32> to vector<2x384xf32>
    %46 = arith.negf %45 : vector<2x384xf32>
    %47 = math.exp %46 : vector<2x384xf32>
    %cst_20 = arith.constant 1.000000e+00 : f32
    %48 = vector.broadcast %cst_20 : f32 to vector<2x384xf32>
    %49 = arith.addf %48, %47 : vector<2x384xf32>
    %50 = arith.divf %48, %49 : vector<2x384xf32>
    %51 = vector.extract_strided_slice %50 {offsets = [0, 0], sizes = [2, 128], strides = [1, 1]} : vector<2x384xf32> to vector<2x128xf32>
    %52 = vector.extract_strided_slice %50 {offsets = [0, 128], sizes = [2, 128], strides = [1, 1]} : vector<2x384xf32> to vector<2x128xf32>
    %53 = vector.extract_strided_slice %50 {offsets = [0, 256], sizes = [2, 128], strides = [1, 1]} : vector<2x384xf32> to vector<2x128xf32>
    %54 = vector.extract_strided_slice %44 {offsets = [0, 384], sizes = [2, 128], strides = [1, 1]} : vector<2x512xf32> to vector<2x128xf32>
    %55 = math.tanh %54 : vector<2x128xf32>
    %56 = arith.mulf %52, %37 : vector<2x128xf32>
    %57 = arith.mulf %51, %55 : vector<2x128xf32>
    %58 = arith.addf %56, %57 : vector<2x128xf32>
    %59 = math.tanh %58 : vector<2x128xf32>
    %60 = arith.mulf %53, %59 : vector<2x128xf32>
    %61 = vector.extract_strided_slice %16 {offsets = [4, 0], sizes = [2, 512], strides = [1, 1]} : vector<16x512xf32> to vector<2x512xf32>
    %62 = arith.truncf %60 : vector<2x128xf32> to vector<2x128xbf16>
    %c0_21 = arith.constant 0 : index
    %c0_22 = arith.constant 0 : index
    %63 = vector.load %arg4[%c0_21, %c0_22] : memref<128x512xbf16, #tpu.memory_space<vmem>>, vector<128x512xbf16>
    %cst_23 = arith.constant dense<0.000000e+00> : vector<2x512xf32>
    %64 = tpu.matmul %62, %63, %cst_23 {dimension_numbers = #tpu.dot_dimension_numbers<[1], [0], [0], [1], [0, 0, 1, 1], [], []>} : vector<2x128xbf16>, vector<128x512xbf16>, vector<2x512xf32> -> vector<2x512xf32>
    %65 = arith.addf %61, %64 : vector<2x512xf32>
    %66 = vector.extract_strided_slice %65 {offsets = [0, 0], sizes = [2, 384], strides = [1, 1]} : vector<2x512xf32> to vector<2x384xf32>
    %67 = arith.negf %66 : vector<2x384xf32>
    %68 = math.exp %67 : vector<2x384xf32>
    %cst_24 = arith.constant 1.000000e+00 : f32
    %69 = vector.broadcast %cst_24 : f32 to vector<2x384xf32>
    %70 = arith.addf %69, %68 : vector<2x384xf32>
    %71 = arith.divf %69, %70 : vector<2x384xf32>
    %72 = vector.extract_strided_slice %71 {offsets = [0, 0], sizes = [2, 128], strides = [1, 1]} : vector<2x384xf32> to vector<2x128xf32>
    %73 = vector.extract_strided_slice %71 {offsets = [0, 128], sizes = [2, 128], strides = [1, 1]} : vector<2x384xf32> to vector<2x128xf32>
    %74 = vector.extract_strided_slice %71 {offsets = [0, 256], sizes = [2, 128], strides = [1, 1]} : vector<2x384xf32> to vector<2x128xf32>
    %75 = vector.extract_strided_slice %65 {offsets = [0, 384], sizes = [2, 128], strides = [1, 1]} : vector<2x512xf32> to vector<2x128xf32>
    %76 = math.tanh %75 : vector<2x128xf32>
    %77 = arith.mulf %73, %58 : vector<2x128xf32>
    %78 = arith.mulf %72, %76 : vector<2x128xf32>
    %79 = arith.addf %77, %78 : vector<2x128xf32>
    %80 = math.tanh %79 : vector<2x128xf32>
    %81 = arith.mulf %74, %80 : vector<2x128xf32>
    %82 = vector.extract_strided_slice %16 {offsets = [6, 0], sizes = [2, 512], strides = [1, 1]} : vector<16x512xf32> to vector<2x512xf32>
    %83 = arith.truncf %81 : vector<2x128xf32> to vector<2x128xbf16>
    %c0_25 = arith.constant 0 : index
    %c0_26 = arith.constant 0 : index
    %84 = vector.load %arg4[%c0_25, %c0_26] : memref<128x512xbf16, #tpu.memory_space<vmem>>, vector<128x512xbf16>
    %cst_27 = arith.constant dense<0.000000e+00> : vector<2x512xf32>
    %85 = tpu.matmul %83, %84, %cst_27 {dimension_numbers = #tpu.dot_dimension_numbers<[1], [0], [0], [1], [0, 0, 1, 1], [], []>} : vector<2x128xbf16>, vector<128x512xbf16>, vector<2x512xf32> -> vector<2x512xf32>
    %86 = arith.addf %82, %85 : vector<2x512xf32>
    %87 = vector.extract_strided_slice %86 {offsets = [0, 0], sizes = [2, 384], strides = [1, 1]} : vector<2x512xf32> to vector<2x384xf32>
    %88 = arith.negf %87 : vector<2x384xf32>
    %89 = math.exp %88 : vector<2x384xf32>
    %cst_28 = arith.constant 1.000000e+00 : f32
    %90 = vector.broadcast %cst_28 : f32 to vector<2x384xf32>
    %91 = arith.addf %90, %89 : vector<2x384xf32>
    %92 = arith.divf %90, %91 : vector<2x384xf32>
    %93 = vector.extract_strided_slice %92 {offsets = [0, 0], sizes = [2, 128], strides = [1, 1]} : vector<2x384xf32> to vector<2x128xf32>
    %94 = vector.extract_strided_slice %92 {offsets = [0, 128], sizes = [2, 128], strides = [1, 1]} : vector<2x384xf32> to vector<2x128xf32>
    %95 = vector.extract_strided_slice %92 {offsets = [0, 256], sizes = [2, 128], strides = [1, 1]} : vector<2x384xf32> to vector<2x128xf32>
    %96 = vector.extract_strided_slice %86 {offsets = [0, 384], sizes = [2, 128], strides = [1, 1]} : vector<2x512xf32> to vector<2x128xf32>
    %97 = math.tanh %96 : vector<2x128xf32>
    %98 = arith.mulf %94, %79 : vector<2x128xf32>
    %99 = arith.mulf %93, %97 : vector<2x128xf32>
    %100 = arith.addf %98, %99 : vector<2x128xf32>
    %101 = math.tanh %100 : vector<2x128xf32>
    %102 = arith.mulf %95, %101 : vector<2x128xf32>
    %103 = vector.extract_strided_slice %16 {offsets = [8, 0], sizes = [2, 512], strides = [1, 1]} : vector<16x512xf32> to vector<2x512xf32>
    %104 = arith.truncf %102 : vector<2x128xf32> to vector<2x128xbf16>
    %c0_29 = arith.constant 0 : index
    %c0_30 = arith.constant 0 : index
    %105 = vector.load %arg4[%c0_29, %c0_30] : memref<128x512xbf16, #tpu.memory_space<vmem>>, vector<128x512xbf16>
    %cst_31 = arith.constant dense<0.000000e+00> : vector<2x512xf32>
    %106 = tpu.matmul %104, %105, %cst_31 {dimension_numbers = #tpu.dot_dimension_numbers<[1], [0], [0], [1], [0, 0, 1, 1], [], []>} : vector<2x128xbf16>, vector<128x512xbf16>, vector<2x512xf32> -> vector<2x512xf32>
    %107 = arith.addf %103, %106 : vector<2x512xf32>
    %108 = vector.extract_strided_slice %107 {offsets = [0, 0], sizes = [2, 384], strides = [1, 1]} : vector<2x512xf32> to vector<2x384xf32>
    %109 = arith.negf %108 : vector<2x384xf32>
    %110 = math.exp %109 : vector<2x384xf32>
    %cst_32 = arith.constant 1.000000e+00 : f32
    %111 = vector.broadcast %cst_32 : f32 to vector<2x384xf32>
    %112 = arith.addf %111, %110 : vector<2x384xf32>
    %113 = arith.divf %111, %112 : vector<2x384xf32>
    %114 = vector.extract_strided_slice %113 {offsets = [0, 0], sizes = [2, 128], strides = [1, 1]} : vector<2x384xf32> to vector<2x128xf32>
    %115 = vector.extract_strided_slice %113 {offsets = [0, 128], sizes = [2, 128], strides = [1, 1]} : vector<2x384xf32> to vector<2x128xf32>
    %116 = vector.extract_strided_slice %113 {offsets = [0, 256], sizes = [2, 128], strides = [1, 1]} : vector<2x384xf32> to vector<2x128xf32>
    %117 = vector.extract_strided_slice %107 {offsets = [0, 384], sizes = [2, 128], strides = [1, 1]} : vector<2x512xf32> to vector<2x128xf32>
    %118 = math.tanh %117 : vector<2x128xf32>
    %119 = arith.mulf %115, %100 : vector<2x128xf32>
    %120 = arith.mulf %114, %118 : vector<2x128xf32>
    %121 = arith.addf %119, %120 : vector<2x128xf32>
    %122 = math.tanh %121 : vector<2x128xf32>
    %123 = arith.mulf %116, %122 : vector<2x128xf32>
    %124 = vector.extract_strided_slice %16 {offsets = [10, 0], sizes = [2, 512], strides = [1, 1]} : vector<16x512xf32> to vector<2x512xf32>
    %125 = arith.truncf %123 : vector<2x128xf32> to vector<2x128xbf16>
    %c0_33 = arith.constant 0 : index
    %c0_34 = arith.constant 0 : index
    %126 = vector.load %arg4[%c0_33, %c0_34] : memref<128x512xbf16, #tpu.memory_space<vmem>>, vector<128x512xbf16>
    %cst_35 = arith.constant dense<0.000000e+00> : vector<2x512xf32>
    %127 = tpu.matmul %125, %126, %cst_35 {dimension_numbers = #tpu.dot_dimension_numbers<[1], [0], [0], [1], [0, 0, 1, 1], [], []>} : vector<2x128xbf16>, vector<128x512xbf16>, vector<2x512xf32> -> vector<2x512xf32>
    %128 = arith.addf %124, %127 : vector<2x512xf32>
    %129 = vector.extract_strided_slice %128 {offsets = [0, 0], sizes = [2, 384], strides = [1, 1]} : vector<2x512xf32> to vector<2x384xf32>
    %130 = arith.negf %129 : vector<2x384xf32>
    %131 = math.exp %130 : vector<2x384xf32>
    %cst_36 = arith.constant 1.000000e+00 : f32
    %132 = vector.broadcast %cst_36 : f32 to vector<2x384xf32>
    %133 = arith.addf %132, %131 : vector<2x384xf32>
    %134 = arith.divf %132, %133 : vector<2x384xf32>
    %135 = vector.extract_strided_slice %134 {offsets = [0, 0], sizes = [2, 128], strides = [1, 1]} : vector<2x384xf32> to vector<2x128xf32>
    %136 = vector.extract_strided_slice %134 {offsets = [0, 128], sizes = [2, 128], strides = [1, 1]} : vector<2x384xf32> to vector<2x128xf32>
    %137 = vector.extract_strided_slice %134 {offsets = [0, 256], sizes = [2, 128], strides = [1, 1]} : vector<2x384xf32> to vector<2x128xf32>
    %138 = vector.extract_strided_slice %128 {offsets = [0, 384], sizes = [2, 128], strides = [1, 1]} : vector<2x512xf32> to vector<2x128xf32>
    %139 = math.tanh %138 : vector<2x128xf32>
    %140 = arith.mulf %136, %121 : vector<2x128xf32>
    %141 = arith.mulf %135, %139 : vector<2x128xf32>
    %142 = arith.addf %140, %141 : vector<2x128xf32>
    %143 = math.tanh %142 : vector<2x128xf32>
    %144 = arith.mulf %137, %143 : vector<2x128xf32>
    %145 = vector.extract_strided_slice %16 {offsets = [12, 0], sizes = [2, 512], strides = [1, 1]} : vector<16x512xf32> to vector<2x512xf32>
    %146 = arith.truncf %144 : vector<2x128xf32> to vector<2x128xbf16>
    %c0_37 = arith.constant 0 : index
    %c0_38 = arith.constant 0 : index
    %147 = vector.load %arg4[%c0_37, %c0_38] : memref<128x512xbf16, #tpu.memory_space<vmem>>, vector<128x512xbf16>
    %cst_39 = arith.constant dense<0.000000e+00> : vector<2x512xf32>
    %148 = tpu.matmul %146, %147, %cst_39 {dimension_numbers = #tpu.dot_dimension_numbers<[1], [0], [0], [1], [0, 0, 1, 1], [], []>} : vector<2x128xbf16>, vector<128x512xbf16>, vector<2x512xf32> -> vector<2x512xf32>
    %149 = arith.addf %145, %148 : vector<2x512xf32>
    %150 = vector.extract_strided_slice %149 {offsets = [0, 0], sizes = [2, 384], strides = [1, 1]} : vector<2x512xf32> to vector<2x384xf32>
    %151 = arith.negf %150 : vector<2x384xf32>
    %152 = math.exp %151 : vector<2x384xf32>
    %cst_40 = arith.constant 1.000000e+00 : f32
    %153 = vector.broadcast %cst_40 : f32 to vector<2x384xf32>
    %154 = arith.addf %153, %152 : vector<2x384xf32>
    %155 = arith.divf %153, %154 : vector<2x384xf32>
    %156 = vector.extract_strided_slice %155 {offsets = [0, 0], sizes = [2, 128], strides = [1, 1]} : vector<2x384xf32> to vector<2x128xf32>
    %157 = vector.extract_strided_slice %155 {offsets = [0, 128], sizes = [2, 128], strides = [1, 1]} : vector<2x384xf32> to vector<2x128xf32>
    %158 = vector.extract_strided_slice %155 {offsets = [0, 256], sizes = [2, 128], strides = [1, 1]} : vector<2x384xf32> to vector<2x128xf32>
    %159 = vector.extract_strided_slice %149 {offsets = [0, 384], sizes = [2, 128], strides = [1, 1]} : vector<2x512xf32> to vector<2x128xf32>
    %160 = math.tanh %159 : vector<2x128xf32>
    %161 = arith.mulf %157, %142 : vector<2x128xf32>
    %162 = arith.mulf %156, %160 : vector<2x128xf32>
    %163 = arith.addf %161, %162 : vector<2x128xf32>
    %164 = math.tanh %163 : vector<2x128xf32>
    %165 = arith.mulf %158, %164 : vector<2x128xf32>
    %166 = vector.extract_strided_slice %16 {offsets = [14, 0], sizes = [2, 512], strides = [1, 1]} : vector<16x512xf32> to vector<2x512xf32>
    %167 = arith.truncf %165 : vector<2x128xf32> to vector<2x128xbf16>
    %c0_41 = arith.constant 0 : index
    %c0_42 = arith.constant 0 : index
    %168 = vector.load %arg4[%c0_41, %c0_42] : memref<128x512xbf16, #tpu.memory_space<vmem>>, vector<128x512xbf16>
    %cst_43 = arith.constant dense<0.000000e+00> : vector<2x512xf32>
    %169 = tpu.matmul %167, %168, %cst_43 {dimension_numbers = #tpu.dot_dimension_numbers<[1], [0], [0], [1], [0, 0, 1, 1], [], []>} : vector<2x128xbf16>, vector<128x512xbf16>, vector<2x512xf32> -> vector<2x512xf32>
    %170 = arith.addf %166, %169 : vector<2x512xf32>
    %171 = vector.extract_strided_slice %170 {offsets = [0, 0], sizes = [2, 384], strides = [1, 1]} : vector<2x512xf32> to vector<2x384xf32>
    %172 = arith.negf %171 : vector<2x384xf32>
    %173 = math.exp %172 : vector<2x384xf32>
    %cst_44 = arith.constant 1.000000e+00 : f32
    %174 = vector.broadcast %cst_44 : f32 to vector<2x384xf32>
    %175 = arith.addf %174, %173 : vector<2x384xf32>
    %176 = arith.divf %174, %175 : vector<2x384xf32>
    %177 = vector.extract_strided_slice %176 {offsets = [0, 0], sizes = [2, 128], strides = [1, 1]} : vector<2x384xf32> to vector<2x128xf32>
    %178 = vector.extract_strided_slice %176 {offsets = [0, 128], sizes = [2, 128], strides = [1, 1]} : vector<2x384xf32> to vector<2x128xf32>
    %179 = vector.extract_strided_slice %176 {offsets = [0, 256], sizes = [2, 128], strides = [1, 1]} : vector<2x384xf32> to vector<2x128xf32>
    %180 = vector.extract_strided_slice %170 {offsets = [0, 384], sizes = [2, 128], strides = [1, 1]} : vector<2x512xf32> to vector<2x128xf32>
    %181 = math.tanh %180 : vector<2x128xf32>
    %182 = arith.mulf %178, %163 : vector<2x128xf32>
    %183 = arith.mulf %177, %181 : vector<2x128xf32>
    %184 = arith.addf %182, %183 : vector<2x128xf32>
    %185 = math.tanh %184 : vector<2x128xf32>
    %186 = arith.mulf %179, %185 : vector<2x128xf32>
    %c0_45 = arith.constant 0 : index
    %c0_46 = arith.constant 0 : index
    %187 = vector.load %arg6[%c0_45, %c0_46] : memref<128x64xf32, #tpu.memory_space<vmem>>, vector<128x64xf32>
    %cst_47 = arith.constant dense<0.000000e+00> : vector<2x64xf32>
    %188 = tpu.matmul %39, %187, %cst_47 {dimension_numbers = #tpu.dot_dimension_numbers<[1], [0], [0], [1], [0, 0, 1, 1], [], []>} : vector<2x128xf32>, vector<128x64xf32>, vector<2x64xf32> -> vector<2x64xf32>
    %c0_48 = arith.constant 0 : index
    %c0_49 = arith.constant 0 : index
    %189 = vector.load %arg7[%c0_48, %c0_49] : memref<1x64xf32, #tpu.memory_space<vmem>>, vector<1x64xf32>
    %190 = vector.broadcast %189 : vector<1x64xf32> to vector<2x64xf32>
    %191 = arith.addf %188, %190 : vector<2x64xf32>
    %cst_50 = arith.constant 0.000000e+00 : f32
    %192 = vector.broadcast %cst_50 : f32 to vector<2x64xf32>
    %193 = arith.maximumf %191, %192 : vector<2x64xf32>
    %c0_51 = arith.constant 0 : index
    %c0_52 = arith.constant 0 : index
    %194 = vector.load %arg8[%c0_51, %c0_52] : memref<64x1xf32, #tpu.memory_space<vmem>>, vector<64x1xf32>
    %cst_53 = arith.constant dense<0.000000e+00> : vector<2x1xf32>
    %195 = tpu.matmul %193, %194, %cst_53 {dimension_numbers = #tpu.dot_dimension_numbers<[1], [0], [0], [1], [0, 0, 1, 1], [], []>} : vector<2x64xf32>, vector<64x1xf32>, vector<2x1xf32> -> vector<2x1xf32>
    %c0_54 = arith.constant 0 : index
    %c0_55 = arith.constant 0 : index
    %196 = vector.load %arg9[%c0_54, %c0_55] : memref<1x1xf32, #tpu.memory_space<vmem>>, vector<1x1xf32>
    %197 = vector.broadcast %196 : vector<1x1xf32> to vector<2x1xf32>
    %198 = arith.addf %195, %197 : vector<2x1xf32>
    %c0_56 = arith.constant 0 : index
    %c0_57 = arith.constant 0 : index
    %199 = vector.load %arg6[%c0_56, %c0_57] : memref<128x64xf32, #tpu.memory_space<vmem>>, vector<128x64xf32>
    %cst_58 = arith.constant dense<0.000000e+00> : vector<2x64xf32>
    %200 = tpu.matmul %60, %199, %cst_58 {dimension_numbers = #tpu.dot_dimension_numbers<[1], [0], [0], [1], [0, 0, 1, 1], [], []>} : vector<2x128xf32>, vector<128x64xf32>, vector<2x64xf32> -> vector<2x64xf32>
    %c0_59 = arith.constant 0 : index
    %c0_60 = arith.constant 0 : index
    %201 = vector.load %arg7[%c0_59, %c0_60] : memref<1x64xf32, #tpu.memory_space<vmem>>, vector<1x64xf32>
    %202 = vector.broadcast %201 : vector<1x64xf32> to vector<2x64xf32>
    %203 = arith.addf %200, %202 : vector<2x64xf32>
    %cst_61 = arith.constant 0.000000e+00 : f32
    %204 = vector.broadcast %cst_61 : f32 to vector<2x64xf32>
    %205 = arith.maximumf %203, %204 : vector<2x64xf32>
    %c0_62 = arith.constant 0 : index
    %c0_63 = arith.constant 0 : index
    %206 = vector.load %arg8[%c0_62, %c0_63] : memref<64x1xf32, #tpu.memory_space<vmem>>, vector<64x1xf32>
    %cst_64 = arith.constant dense<0.000000e+00> : vector<2x1xf32>
    %207 = tpu.matmul %205, %206, %cst_64 {dimension_numbers = #tpu.dot_dimension_numbers<[1], [0], [0], [1], [0, 0, 1, 1], [], []>} : vector<2x64xf32>, vector<64x1xf32>, vector<2x1xf32> -> vector<2x1xf32>
    %c0_65 = arith.constant 0 : index
    %c0_66 = arith.constant 0 : index
    %208 = vector.load %arg9[%c0_65, %c0_66] : memref<1x1xf32, #tpu.memory_space<vmem>>, vector<1x1xf32>
    %209 = vector.broadcast %208 : vector<1x1xf32> to vector<2x1xf32>
    %210 = arith.addf %207, %209 : vector<2x1xf32>
    %c0_67 = arith.constant 0 : index
    %c0_68 = arith.constant 0 : index
    %211 = vector.load %arg6[%c0_67, %c0_68] : memref<128x64xf32, #tpu.memory_space<vmem>>, vector<128x64xf32>
    %cst_69 = arith.constant dense<0.000000e+00> : vector<2x64xf32>
    %212 = tpu.matmul %81, %211, %cst_69 {dimension_numbers = #tpu.dot_dimension_numbers<[1], [0], [0], [1], [0, 0, 1, 1], [], []>} : vector<2x128xf32>, vector<128x64xf32>, vector<2x64xf32> -> vector<2x64xf32>
    %c0_70 = arith.constant 0 : index
    %c0_71 = arith.constant 0 : index
    %213 = vector.load %arg7[%c0_70, %c0_71] : memref<1x64xf32, #tpu.memory_space<vmem>>, vector<1x64xf32>
    %214 = vector.broadcast %213 : vector<1x64xf32> to vector<2x64xf32>
    %215 = arith.addf %212, %214 : vector<2x64xf32>
    %cst_72 = arith.constant 0.000000e+00 : f32
    %216 = vector.broadcast %cst_72 : f32 to vector<2x64xf32>
    %217 = arith.maximumf %215, %216 : vector<2x64xf32>
    %c0_73 = arith.constant 0 : index
    %c0_74 = arith.constant 0 : index
    %218 = vector.load %arg8[%c0_73, %c0_74] : memref<64x1xf32, #tpu.memory_space<vmem>>, vector<64x1xf32>
    %cst_75 = arith.constant dense<0.000000e+00> : vector<2x1xf32>
    %219 = tpu.matmul %217, %218, %cst_75 {dimension_numbers = #tpu.dot_dimension_numbers<[1], [0], [0], [1], [0, 0, 1, 1], [], []>} : vector<2x64xf32>, vector<64x1xf32>, vector<2x1xf32> -> vector<2x1xf32>
    %c0_76 = arith.constant 0 : index
    %c0_77 = arith.constant 0 : index
    %220 = vector.load %arg9[%c0_76, %c0_77] : memref<1x1xf32, #tpu.memory_space<vmem>>, vector<1x1xf32>
    %221 = vector.broadcast %220 : vector<1x1xf32> to vector<2x1xf32>
    %222 = arith.addf %219, %221 : vector<2x1xf32>
    %c0_78 = arith.constant 0 : index
    %c0_79 = arith.constant 0 : index
    %223 = vector.load %arg6[%c0_78, %c0_79] : memref<128x64xf32, #tpu.memory_space<vmem>>, vector<128x64xf32>
    %cst_80 = arith.constant dense<0.000000e+00> : vector<2x64xf32>
    %224 = tpu.matmul %102, %223, %cst_80 {dimension_numbers = #tpu.dot_dimension_numbers<[1], [0], [0], [1], [0, 0, 1, 1], [], []>} : vector<2x128xf32>, vector<128x64xf32>, vector<2x64xf32> -> vector<2x64xf32>
    %c0_81 = arith.constant 0 : index
    %c0_82 = arith.constant 0 : index
    %225 = vector.load %arg7[%c0_81, %c0_82] : memref<1x64xf32, #tpu.memory_space<vmem>>, vector<1x64xf32>
    %226 = vector.broadcast %225 : vector<1x64xf32> to vector<2x64xf32>
    %227 = arith.addf %224, %226 : vector<2x64xf32>
    %cst_83 = arith.constant 0.000000e+00 : f32
    %228 = vector.broadcast %cst_83 : f32 to vector<2x64xf32>
    %229 = arith.maximumf %227, %228 : vector<2x64xf32>
    %c0_84 = arith.constant 0 : index
    %c0_85 = arith.constant 0 : index
    %230 = vector.load %arg8[%c0_84, %c0_85] : memref<64x1xf32, #tpu.memory_space<vmem>>, vector<64x1xf32>
    %cst_86 = arith.constant dense<0.000000e+00> : vector<2x1xf32>
    %231 = tpu.matmul %229, %230, %cst_86 {dimension_numbers = #tpu.dot_dimension_numbers<[1], [0], [0], [1], [0, 0, 1, 1], [], []>} : vector<2x64xf32>, vector<64x1xf32>, vector<2x1xf32> -> vector<2x1xf32>
    %c0_87 = arith.constant 0 : index
    %c0_88 = arith.constant 0 : index
    %232 = vector.load %arg9[%c0_87, %c0_88] : memref<1x1xf32, #tpu.memory_space<vmem>>, vector<1x1xf32>
    %233 = vector.broadcast %232 : vector<1x1xf32> to vector<2x1xf32>
    %234 = arith.addf %231, %233 : vector<2x1xf32>
    %c0_89 = arith.constant 0 : index
    %c0_90 = arith.constant 0 : index
    %235 = vector.load %arg6[%c0_89, %c0_90] : memref<128x64xf32, #tpu.memory_space<vmem>>, vector<128x64xf32>
    %cst_91 = arith.constant dense<0.000000e+00> : vector<2x64xf32>
    %236 = tpu.matmul %123, %235, %cst_91 {dimension_numbers = #tpu.dot_dimension_numbers<[1], [0], [0], [1], [0, 0, 1, 1], [], []>} : vector<2x128xf32>, vector<128x64xf32>, vector<2x64xf32> -> vector<2x64xf32>
    %c0_92 = arith.constant 0 : index
    %c0_93 = arith.constant 0 : index
    %237 = vector.load %arg7[%c0_92, %c0_93] : memref<1x64xf32, #tpu.memory_space<vmem>>, vector<1x64xf32>
    %238 = vector.broadcast %237 : vector<1x64xf32> to vector<2x64xf32>
    %239 = arith.addf %236, %238 : vector<2x64xf32>
    %cst_94 = arith.constant 0.000000e+00 : f32
    %240 = vector.broadcast %cst_94 : f32 to vector<2x64xf32>
    %241 = arith.maximumf %239, %240 : vector<2x64xf32>
    %c0_95 = arith.constant 0 : index
    %c0_96 = arith.constant 0 : index
    %242 = vector.load %arg8[%c0_95, %c0_96] : memref<64x1xf32, #tpu.memory_space<vmem>>, vector<64x1xf32>
    %cst_97 = arith.constant dense<0.000000e+00> : vector<2x1xf32>
    %243 = tpu.matmul %241, %242, %cst_97 {dimension_numbers = #tpu.dot_dimension_numbers<[1], [0], [0], [1], [0, 0, 1, 1], [], []>} : vector<2x64xf32>, vector<64x1xf32>, vector<2x1xf32> -> vector<2x1xf32>
    %c0_98 = arith.constant 0 : index
    %c0_99 = arith.constant 0 : index
    %244 = vector.load %arg9[%c0_98, %c0_99] : memref<1x1xf32, #tpu.memory_space<vmem>>, vector<1x1xf32>
    %245 = vector.broadcast %244 : vector<1x1xf32> to vector<2x1xf32>
    %246 = arith.addf %243, %245 : vector<2x1xf32>
    %c0_100 = arith.constant 0 : index
    %c0_101 = arith.constant 0 : index
    %247 = vector.load %arg6[%c0_100, %c0_101] : memref<128x64xf32, #tpu.memory_space<vmem>>, vector<128x64xf32>
    %cst_102 = arith.constant dense<0.000000e+00> : vector<2x64xf32>
    %248 = tpu.matmul %144, %247, %cst_102 {dimension_numbers = #tpu.dot_dimension_numbers<[1], [0], [0], [1], [0, 0, 1, 1], [], []>} : vector<2x128xf32>, vector<128x64xf32>, vector<2x64xf32> -> vector<2x64xf32>
    %c0_103 = arith.constant 0 : index
    %c0_104 = arith.constant 0 : index
    %249 = vector.load %arg7[%c0_103, %c0_104] : memref<1x64xf32, #tpu.memory_space<vmem>>, vector<1x64xf32>
    %250 = vector.broadcast %249 : vector<1x64xf32> to vector<2x64xf32>
    %251 = arith.addf %248, %250 : vector<2x64xf32>
    %cst_105 = arith.constant 0.000000e+00 : f32
    %252 = vector.broadcast %cst_105 : f32 to vector<2x64xf32>
    %253 = arith.maximumf %251, %252 : vector<2x64xf32>
    %c0_106 = arith.constant 0 : index
    %c0_107 = arith.constant 0 : index
    %254 = vector.load %arg8[%c0_106, %c0_107] : memref<64x1xf32, #tpu.memory_space<vmem>>, vector<64x1xf32>
    %cst_108 = arith.constant dense<0.000000e+00> : vector<2x1xf32>
    %255 = tpu.matmul %253, %254, %cst_108 {dimension_numbers = #tpu.dot_dimension_numbers<[1], [0], [0], [1], [0, 0, 1, 1], [], []>} : vector<2x64xf32>, vector<64x1xf32>, vector<2x1xf32> -> vector<2x1xf32>
    %c0_109 = arith.constant 0 : index
    %c0_110 = arith.constant 0 : index
    %256 = vector.load %arg9[%c0_109, %c0_110] : memref<1x1xf32, #tpu.memory_space<vmem>>, vector<1x1xf32>
    %257 = vector.broadcast %256 : vector<1x1xf32> to vector<2x1xf32>
    %258 = arith.addf %255, %257 : vector<2x1xf32>
    %c0_111 = arith.constant 0 : index
    %c0_112 = arith.constant 0 : index
    %259 = vector.load %arg6[%c0_111, %c0_112] : memref<128x64xf32, #tpu.memory_space<vmem>>, vector<128x64xf32>
    %cst_113 = arith.constant dense<0.000000e+00> : vector<2x64xf32>
    %260 = tpu.matmul %165, %259, %cst_113 {dimension_numbers = #tpu.dot_dimension_numbers<[1], [0], [0], [1], [0, 0, 1, 1], [], []>} : vector<2x128xf32>, vector<128x64xf32>, vector<2x64xf32> -> vector<2x64xf32>
    %c0_114 = arith.constant 0 : index
    %c0_115 = arith.constant 0 : index
    %261 = vector.load %arg7[%c0_114, %c0_115] : memref<1x64xf32, #tpu.memory_space<vmem>>, vector<1x64xf32>
    %262 = vector.broadcast %261 : vector<1x64xf32> to vector<2x64xf32>
    %263 = arith.addf %260, %262 : vector<2x64xf32>
    %cst_116 = arith.constant 0.000000e+00 : f32
    %264 = vector.broadcast %cst_116 : f32 to vector<2x64xf32>
    %265 = arith.maximumf %263, %264 : vector<2x64xf32>
    %c0_117 = arith.constant 0 : index
    %c0_118 = arith.constant 0 : index
    %266 = vector.load %arg8[%c0_117, %c0_118] : memref<64x1xf32, #tpu.memory_space<vmem>>, vector<64x1xf32>
    %cst_119 = arith.constant dense<0.000000e+00> : vector<2x1xf32>
    %267 = tpu.matmul %265, %266, %cst_119 {dimension_numbers = #tpu.dot_dimension_numbers<[1], [0], [0], [1], [0, 0, 1, 1], [], []>} : vector<2x64xf32>, vector<64x1xf32>, vector<2x1xf32> -> vector<2x1xf32>
    %c0_120 = arith.constant 0 : index
    %c0_121 = arith.constant 0 : index
    %268 = vector.load %arg9[%c0_120, %c0_121] : memref<1x1xf32, #tpu.memory_space<vmem>>, vector<1x1xf32>
    %269 = vector.broadcast %268 : vector<1x1xf32> to vector<2x1xf32>
    %270 = arith.addf %267, %269 : vector<2x1xf32>
    %c0_122 = arith.constant 0 : index
    %c0_123 = arith.constant 0 : index
    %271 = vector.load %arg6[%c0_122, %c0_123] : memref<128x64xf32, #tpu.memory_space<vmem>>, vector<128x64xf32>
    %cst_124 = arith.constant dense<0.000000e+00> : vector<2x64xf32>
    %272 = tpu.matmul %186, %271, %cst_124 {dimension_numbers = #tpu.dot_dimension_numbers<[1], [0], [0], [1], [0, 0, 1, 1], [], []>} : vector<2x128xf32>, vector<128x64xf32>, vector<2x64xf32> -> vector<2x64xf32>
    %c0_125 = arith.constant 0 : index
    %c0_126 = arith.constant 0 : index
    %273 = vector.load %arg7[%c0_125, %c0_126] : memref<1x64xf32, #tpu.memory_space<vmem>>, vector<1x64xf32>
    %274 = vector.broadcast %273 : vector<1x64xf32> to vector<2x64xf32>
    %275 = arith.addf %272, %274 : vector<2x64xf32>
    %cst_127 = arith.constant 0.000000e+00 : f32
    %276 = vector.broadcast %cst_127 : f32 to vector<2x64xf32>
    %277 = arith.maximumf %275, %276 : vector<2x64xf32>
    %c0_128 = arith.constant 0 : index
    %c0_129 = arith.constant 0 : index
    %278 = vector.load %arg8[%c0_128, %c0_129] : memref<64x1xf32, #tpu.memory_space<vmem>>, vector<64x1xf32>
    %cst_130 = arith.constant dense<0.000000e+00> : vector<2x1xf32>
    %279 = tpu.matmul %277, %278, %cst_130 {dimension_numbers = #tpu.dot_dimension_numbers<[1], [0], [0], [1], [0, 0, 1, 1], [], []>} : vector<2x64xf32>, vector<64x1xf32>, vector<2x1xf32> -> vector<2x1xf32>
    %c0_131 = arith.constant 0 : index
    %c0_132 = arith.constant 0 : index
    %280 = vector.load %arg9[%c0_131, %c0_132] : memref<1x1xf32, #tpu.memory_space<vmem>>, vector<1x1xf32>
    %281 = vector.broadcast %280 : vector<1x1xf32> to vector<2x1xf32>
    %282 = arith.addf %279, %281 : vector<2x1xf32>
    %283 = arith.maximumf %198, %210 : vector<2x1xf32>
    %284 = arith.maximumf %283, %222 : vector<2x1xf32>
    %285 = arith.maximumf %284, %234 : vector<2x1xf32>
    %286 = arith.maximumf %285, %246 : vector<2x1xf32>
    %287 = arith.maximumf %286, %258 : vector<2x1xf32>
    %288 = arith.maximumf %287, %270 : vector<2x1xf32>
    %289 = arith.maximumf %288, %282 : vector<2x1xf32>
    %290 = arith.subf %198, %289 : vector<2x1xf32>
    %291 = math.exp %290 : vector<2x1xf32>
    %292 = arith.subf %210, %289 : vector<2x1xf32>
    %293 = math.exp %292 : vector<2x1xf32>
    %294 = arith.subf %222, %289 : vector<2x1xf32>
    %295 = math.exp %294 : vector<2x1xf32>
    %296 = arith.subf %234, %289 : vector<2x1xf32>
    %297 = math.exp %296 : vector<2x1xf32>
    %298 = arith.subf %246, %289 : vector<2x1xf32>
    %299 = math.exp %298 : vector<2x1xf32>
    %300 = arith.subf %258, %289 : vector<2x1xf32>
    %301 = math.exp %300 : vector<2x1xf32>
    %302 = arith.subf %270, %289 : vector<2x1xf32>
    %303 = math.exp %302 : vector<2x1xf32>
    %304 = arith.subf %282, %289 : vector<2x1xf32>
    %305 = math.exp %304 : vector<2x1xf32>
    %306 = arith.addf %291, %293 : vector<2x1xf32>
    %307 = arith.addf %306, %295 : vector<2x1xf32>
    %308 = arith.addf %307, %297 : vector<2x1xf32>
    %309 = arith.addf %308, %299 : vector<2x1xf32>
    %310 = arith.addf %309, %301 : vector<2x1xf32>
    %311 = arith.addf %310, %303 : vector<2x1xf32>
    %312 = arith.addf %311, %305 : vector<2x1xf32>
    %313 = tpu.reciprocal %312 {approx = true} : vector<2x1xf32> -> vector<2x1xf32>
    %cst_133 = arith.constant 0.000000e+00 : f32
    %314 = vector.broadcast %cst_133 : f32 to vector<2x128xf32>
    %315 = arith.mulf %291, %313 : vector<2x1xf32>
    %316 = vector.broadcast %315 : vector<2x1xf32> to vector<2x128xf32>
    %317 = arith.mulf %39, %316 : vector<2x128xf32>
    %318 = arith.addf %314, %317 : vector<2x128xf32>
    %319 = arith.mulf %293, %313 : vector<2x1xf32>
    %320 = vector.broadcast %319 : vector<2x1xf32> to vector<2x128xf32>
    %321 = arith.mulf %60, %320 : vector<2x128xf32>
    %322 = arith.addf %318, %321 : vector<2x128xf32>
    %323 = arith.mulf %295, %313 : vector<2x1xf32>
    %324 = vector.broadcast %323 : vector<2x1xf32> to vector<2x128xf32>
    %325 = arith.mulf %81, %324 : vector<2x128xf32>
    %326 = arith.addf %322, %325 : vector<2x128xf32>
    %327 = arith.mulf %297, %313 : vector<2x1xf32>
    %328 = vector.broadcast %327 : vector<2x1xf32> to vector<2x128xf32>
    %329 = arith.mulf %102, %328 : vector<2x128xf32>
    %330 = arith.addf %326, %329 : vector<2x128xf32>
    %331 = arith.mulf %299, %313 : vector<2x1xf32>
    %332 = vector.broadcast %331 : vector<2x1xf32> to vector<2x128xf32>
    %333 = arith.mulf %123, %332 : vector<2x128xf32>
    %334 = arith.addf %330, %333 : vector<2x128xf32>
    %335 = arith.mulf %301, %313 : vector<2x1xf32>
    %336 = vector.broadcast %335 : vector<2x1xf32> to vector<2x128xf32>
    %337 = arith.mulf %144, %336 : vector<2x128xf32>
    %338 = arith.addf %334, %337 : vector<2x128xf32>
    %339 = arith.mulf %303, %313 : vector<2x1xf32>
    %340 = vector.broadcast %339 : vector<2x1xf32> to vector<2x128xf32>
    %341 = arith.mulf %165, %340 : vector<2x128xf32>
    %342 = arith.addf %338, %341 : vector<2x128xf32>
    %343 = arith.mulf %305, %313 : vector<2x1xf32>
    %344 = vector.broadcast %343 : vector<2x1xf32> to vector<2x128xf32>
    %345 = arith.mulf %186, %344 : vector<2x128xf32>
    %346 = arith.addf %342, %345 : vector<2x128xf32>
    %c0_134 = arith.constant 0 : index
    %c0_135 = arith.constant 0 : index
    %347 = vector.load %arg10[%c0_134, %c0_135] : memref<128x3xf32, #tpu.memory_space<vmem>>, vector<128x3xf32>
    %cst_136 = arith.constant dense<0.000000e+00> : vector<2x3xf32>
    %348 = tpu.matmul %346, %347, %cst_136 {dimension_numbers = #tpu.dot_dimension_numbers<[1], [0], [0], [1], [0, 0, 1, 1], [], []>} : vector<2x128xf32>, vector<128x3xf32>, vector<2x3xf32> -> vector<2x3xf32>
    %c0_137 = arith.constant 0 : index
    %c0_138 = arith.constant 0 : index
    %349 = vector.load %arg11[%c0_137, %c0_138] : memref<1x3xf32, #tpu.memory_space<vmem>>, vector<1x3xf32>
    %350 = vector.broadcast %349 : vector<1x3xf32> to vector<2x3xf32>
    %351 = arith.addf %348, %350 : vector<2x3xf32>
    %cst_139 = arith.constant dense<0xFF800000> : vector<2xf32>
    %352 = vector.multi_reduction <maximumf>, %351, %cst_139 [1] : vector<2x3xf32> to vector<2xf32>
    %353 = vector.shape_cast %352 : vector<2xf32> to vector<2x1xf32>
    %354 = vector.broadcast %353 : vector<2x1xf32> to vector<2x3xf32>
    %355 = arith.subf %351, %354 : vector<2x3xf32>
    %356 = math.exp %355 : vector<2x3xf32>
    %cst_140 = arith.constant dense<0.000000e+00> : vector<2xf32>
    %357 = vector.multi_reduction <add>, %356, %cst_140 [1] : vector<2x3xf32> to vector<2xf32>
    %358 = vector.shape_cast %357 : vector<2xf32> to vector<2x1xf32>
    %359 = vector.broadcast %358 : vector<2x1xf32> to vector<2x3xf32>
    %360 = arith.divf %356, %359 : vector<2x3xf32>
    %c0_141 = arith.constant 0 : index
    %c0_142 = arith.constant 0 : index
    %361 = vector.load %arg12[%c0_141, %c0_142] : memref<2x3xf32, #tpu.memory_space<vmem>>, vector<2x3xf32>
    tpu.vector_store %arg12[%c0_141, %c0_142], %360 {strides = array<i32>} : memref<2x3xf32, #tpu.memory_space<vmem>>, vector<2x3xf32>,
    return
  }
  func.func @transform_0(%arg0: i32) -> (i32, i32) {
    %c0_i32 = arith.constant 0 : i32
    %c0_i32_0 = arith.constant 0 : i32
    %c0_i32_1 = arith.constant 0 : i32
    return %c0_i32, %c0_i32_0 : i32, i32
  }
  func.func @transform_1(%arg0: i32) -> (i32, i32) {
    %c0_i32 = arith.constant 0 : i32
    %c0_i32_0 = arith.constant 0 : i32
    %c0_i32_1 = arith.constant 0 : i32
    return %c0_i32, %c0_i32_0 : i32, i32
  }
  func.func @transform_2(%arg0: i32) -> (i32, i32) {
    %c0_i32 = arith.constant 0 : i32
    %c0_i32_0 = arith.constant 0 : i32
    %c0_i32_1 = arith.constant 0 : i32
    return %c0_i32, %c0_i32_0 : i32, i32
  }
  func.func @transform_3(%arg0: i32) -> (i32, i32) {
    %c0_i32 = arith.constant 0 : i32
    %c0_i32_0 = arith.constant 0 : i32
    %c0_i32_1 = arith.constant 0 : i32
    return %c0_i32, %c0_i32_0 : i32, i32
  }
  func.func @transform_4(%arg0: i32) -> (i32, i32) {
    %c0_i32 = arith.constant 0 : i32
    %c0_i32_0 = arith.constant 0 : i32
    %c0_i32_1 = arith.constant 0 : i32
    return %c0_i32, %c0_i32_0 : i32, i32
  }
  func.func @transform_5(%arg0: i32) -> (i32, i32) {
    %c0_i32 = arith.constant 0 : i32
    %c0_i32_0 = arith.constant 0 : i32
    %c0_i32_1 = arith.constant 0 : i32
    return %c0_i32, %c0_i32_0 : i32, i32
  }
  func.func @transform_6(%arg0: i32) -> (i32, i32) {
    %c0_i32 = arith.constant 0 : i32
    %c0_i32_0 = arith.constant 0 : i32
    %c0_i32_1 = arith.constant 0 : i32
    return %c0_i32, %c0_i32_0 : i32, i32
  }
  func.func @transform_7(%arg0: i32) -> (i32, i32) {
    %c0_i32 = arith.constant 0 : i32
    %c0_i32_0 = arith.constant 0 : i32
    %c0_i32_1 = arith.constant 0 : i32
    return %c0_i32, %c0_i32_0 : i32, i32
  }
  func.func @transform_8(%arg0: i32) -> (i32, i32) {
    %c0_i32 = arith.constant 0 : i32
    %c0_i32_0 = arith.constant 0 : i32
    %c0_i32_1 = arith.constant 0 : i32
    return %c0_i32, %c0_i32_0 : i32, i32
  }
  func.func @transform_9(%arg0: i32) -> (i32, i32) {
    %c0_i32 = arith.constant 0 : i32
    %c0_i32_0 = arith.constant 0 : i32
    %c0_i32_1 = arith.constant 0 : i32
    return %c0_i32, %c0_i32_0 : i32, i32
  }
  func.func @transform_10(%arg0: i32) -> (i32, i32) {
    %c0_i32 = arith.constant 0 : i32
    %c0_i32_0 = arith.constant 0 : i32
    %c0_i32_1 = arith.constant 0 : i32
    return %c0_i32, %c0_i32_0 : i32, i32
  }
  func.func @transform_11(%arg0: i32) -> (i32, i32) {
    %c0_i32 = arith.constant 0 : i32
    %c0_i32_0 = arith.constant 0 : i32
    %c0_i32_1 = arith.constant 0 : i32
    return %c0_i32, %c0_i32_0 : i32, i32
  }
}

</mosaic_0001>

<bundles_post_ra>
// kernel: ipsrnn_forward.1
= control target key start
LH: loop header
LB: loop body
LE: loop exit
PB: predicated region body
PF: predicated region fallthrough
CT: control target
= control target key end

     0   :  { %s7824_s0 = inlined_call_operand.vmem [shape: f32[16,1152], index: 0, kind: input, shape index: {}]   ;;  %s7825_s1 = inlined_call_operand.hbm [shape: bf16[2304,128], index: 1, kind: input, shape index: {}]   ;;  %s7826_s2 = inlined_call_operand.vmem [shape: bf16[128,512], index: 2, kind: input, shape index: {}]   ;;  %s7827_s3 = inlined_call_operand.vmem [shape: bf16[128,512], index: 3, kind: input, shape index: {}]   ;;  %s7828_s4 = inlined_call_operand.vmem [shape: f32[1,512], index: 4, kind: input, shape index: {}]   ;;  %s7829_s5 = inlined_call_operand.vmem [shape: f32[128,64], index: 5, kind: input, shape index: {}]   ;;  %s7830_s6 = inlined_call_operand.vmem [shape: f32[1,64], index: 6, kind: input, shape index: {}]   ;;  %s7831_s7 = inlined_call_operand.vmem [shape: f32[64,1], index: 7, kind: input, shape index: {}]   ;;  %s7832_s8 = inlined_call_operand.<no memory space> [shape: f32[1,1], index: 8, kind: input, shape index: {}]   ;;  %s7833_s9 = inlined_call_operand.vmem [shape: f32[128,3], index: 9, kind: input, shape index: {}]   ;;  %s7834_s10 = inlined_call_operand.vmem [shape: f32[1,3], index: 10, kind: input, shape index: {}]   ;;  %s7835_s11 = inlined_call_operand.hbm [shape: f32[2,3], index: 11, kind: output, shape index: {}]  }
   0x1   :  { %v16_v0 = vstv %s7832_s8 }
   0x2   :  { %17 = vst [vmem:[#allocation2] sm:$0x1] %v16_v0 }
   0x3   :  { %18 = vsyncpa [#allocation4], 0 }
   0x4   :  { %19 = vsyncpa [#allocation5], 0  ;;  %s6220_s19 = smov [#allocation3]  }
   0x5   :  { %s27_s20 = sshll.u32 %s6220_s19, 4  ;;  %s28_s20 = int_to_ptr.vmem [resolvable:$true] %s27_s20 }
   0x6   :  { %s6184_s21 = scalar_lea.vmem %s28_s20, 18432  ;;  %p6189_p1 = scmp.lt.s32.totalorder %s28_s20, %s28_s20 }
   0x7   :  { %p6185_p0 = scmp.ne.s32.totalorder %s28_s20, %s6184_s21  ;;  %p6190_p2 = scmp.lt.s32.totalorder %s6184_s21, %s6184_s21 }
   0x9   :  { %p6191_p3 = por %p6190_p2, %p6189_p1 }
   0xb   :  { %p6192_p4 = pnand %p6191_p3, %p6185_p0 }
   0xd   :  { %6195 = shalt.err (!%p6192_p4)
}
   0xe   :  { %s6221_s22 = smov 64   ;;  %s6222_s23 = smov 4  }
   0xf   :  { %33 = dma.hbm_to_vmem [thread:$0]  %s7825_s1, 18432, %s28_s20, [#allocation4], %s6221_s22, %s6221_s22, %s6222_s23  }
  0x10   :  { %6216 = dma.done.wait [#allocation4], 18432  }
  0x11   :  { %6217 = vsyncadd [#allocation4], 4294948864  ;;  %v5754_v1 = vld [vmem:[#allocation3 + $0x78] sm:$0xff]   ;;  %v5758_v5 = vld [vmem:[#allocation3 + $0x70] sm:$0xff]   ;;  %vm6225_vm0 = vmmov 0   ;;  %vm3264_vm1 = vcmask 523264  }
  0x12   :  { %v5755_v2 = vld [vmem:[#allocation3 + $0xf8] sm:$0xff]   ;;  %4855 = vmatprep.subr.bf16.mxu0 %v5754_v1  ;;  %v5759_v6 = vld [vmem:[#allocation3 + $0xf0] sm:$0xff]   ;;  %v5762_v9 = vld [vmem:[#allocation3 + $0x68] sm:$0xff]   ;;  %vm4584_vm2 = vcmask 17408   ;;  %s6226_s27 = smov [#allocation6]  }
  0x13   :  { %v5756_v3 = vld [vmem:[#allocation3 + $0x38] sm:$0xff]   ;;  %4877 = vmatprep.subr.bf16.mxu1 %v5755_v2  ;;  %v5760_v7 = vld [vmem:[#allocation3 + $0x30] sm:$0xff]   ;;  %v5763_v10 = vld [vmem:[#allocation3 + $0xe8] sm:$0xff]   ;;  %s4603_s28 = sshll.u32 %s6226_s27, 4  ;;  %s4604_s28 = int_to_ptr.vmem [resolvable:$true] %s4603_s28 }
  0x14   :  { %v5757_v4 = vld [vmem:[#allocation3 + $0xb8] sm:$0xff]   ;;  %4856 = vmatpush3.bf16.msra.mxu0 %v5756_v3  ;;  %v5761_v8 = vld [vmem:[#allocation3 + $0xb0] sm:$0xff]   ;;  %v5764_v11 = vld [vmem:[#allocation3 + $0x28] sm:$0xff]   ;;  %p6201_p6 = scmp.lt.s32.totalorder %s4604_s28, %s4604_s28 }
  0x15   :  { %4878 = vmatpush3.bf16.msra.mxu1 %v5757_v4  ;;  %4857 = vmatprep.subr.bf16.mxu0 %v5758_v5  ;;  %v5765_v12 = vld [vmem:[#allocation3 + $0xa8] sm:$0xff]   ;;  %v5766_v13 = vld [vmem:[#allocation3 + $0x60] sm:$0xff]   ;;  %v5770_v17 = vld [vmem:[#allocation3 + $0x58] sm:$0xff]  }
  0x16   :  { %4879 = vmatprep.subr.bf16.mxu1 %v5759_v6  ;;  %v5767_v14 = vld [vmem:[#allocation3 + $0xe0] sm:$0xff]   ;;  %v5771_v18 = vld [vmem:[#allocation3 + $0xd8] sm:$0xff]   ;;  %v5774_v21 = vld [vmem:[#allocation3 + $0x50] sm:$0xff]  }
  0x17   :  { %v5768_v15 = vld [vmem:[#allocation3 + $0x20] sm:$0xff]   ;;  %v5772_v19 = vld [vmem:[#allocation3 + $0x18] sm:$0xff]   ;;  %v5775_v22 = vld [vmem:[#allocation3 + $0xd0] sm:$0xff]  }
  0x18   :  { %4858 = vmatpush3.bf16.msra.mxu0 %v5760_v7  ;;  %v5769_v16 = vld [vmem:[#allocation3 + $0xa0] sm:$0xff]   ;;  %v5773_v20 = vld [vmem:[#allocation3 + $0x98] sm:$0xff]   ;;  %v5776_v23 = vld [vmem:[#allocation3 + $0x10] sm:$0xff]  }
  0x19   :  { %4880 = vmatpush3.bf16.msra.mxu1 %v5761_v8  ;;  %4859 = vmatprep.subr.bf16.mxu0 %v5762_v9  ;;  %v5777_v24 = vld [vmem:[#allocation3 + $0x90] sm:$0xff]   ;;  %v5778_v25 = vld [vmem:[#allocation3 + $0x48] sm:$0xff]   ;;  %v5782_v29 = vld [vmem:[#allocation3 + $0x40] sm:$0xff]  }
  0x1a   :  { %4881 = vmatprep.subr.bf16.mxu1 %v5763_v10  ;;  %v5779_v26 = vld [vmem:[#allocation3 + $0xc8] sm:$0xff]   ;;  %v5783_v30 = vld [vmem:[#allocation3 + $0xc0] sm:$0xff]   ;;  %v59_v35 = vld [vmem:[%s7824_s0 + $0x18] sm:$0xff] }
  0x1b   :  { %v5780_v27 = vld [vmem:[#allocation3 + $0x8] sm:$0xff]   ;;  %v5784_v31 = vld [vmem:[#allocation3] sm:$0xff]   ;;  %v77_v42 = vmax.f32 %v59_v35, 0.0  ;;  %v95_v44 = vsub.f32 0.0, %v59_v35  ;;  %v6328_v52 = vld [vmem:[%s7824_s0 + $0x58] sm:$0xff] }
  0x1c   :  { %4860 = vmatpush3.bf16.msra.mxu0 %v5764_v11  ;;  %v5781_v28 = vld [vmem:[#allocation3 + $0x88] sm:$0xff]   ;;  %v5785_v32 = vld [vmem:[#allocation3 + $0x80] sm:$0xff]   ;;  %v5786_v57 = vld [vmem:[#allocation3 + $0x178] sm:$0xff]   ;;  %v85_v60 = vmax.f32 %v6328_v52, 0.0 }
  0x1d   :  { %4882 = vmatpush3.bf16.msra.mxu1 %v5765_v12  ;;  %4861 = vmatprep.subr.bf16.mxu0 %v5766_v13  ;;  %v57_v33 = vld [vmem:[%s7824_s0 + $0x8] sm:$0xff]  ;;  %v66_v34 = vld [vmem:[%s7824_s0 + $0x50] sm:$0xff]  ;;  %v68_v40 = vld [vmem:[%s7824_s0 + $0x60] sm:$0xff]  ;;  %v6330_v53 = vmax.f32 %v95_v44, 0.0 }
  0x1e   :  { %4883 = vmatprep.subr.bf16.mxu1 %v5767_v14  ;;  %v75_v36 = vmax.f32 %v57_v33, 0.0  ;;  %v84_v37 = vmax.f32 %v66_v34, 0.0  ;;  %v93_v38 = vsub.f32 0.0, %v57_v33  ;;  %v102_v39 = vsub.f32 0.0, %v66_v34  ;;  %v6308_v41 = vld [vmem:[%s7824_s0] sm:$0xff]  ;;  %v6313_v46 = vld [vmem:[%s7824_s0 + $0x48] sm:$0xff] }
  0x1f   :  { %v86_v43 = vmax.f32 %v68_v40, 0.0  ;;  %v104_v45 = vsub.f32 0.0, %v68_v40  ;;  %v6318_v47 = vld [vmem:[%s7824_s0 + $0x10] sm:$0xff]  ;;  %v74_v51 = vmax.f32 %v6308_v41, 0.0  ;;  %v83_v56 = vmax.f32 %v6313_v46, 0.0  ;;  %v5787_v63 = vld [vmem:[#allocation3 + $0x138] sm:$0xff]  }
  0x20   :  { %4862 = vmatpush3.bf16.msra.mxu0 %v5768_v15  ;;  %v6320_v48 = vmax.f32 %v93_v38, 0.0  ;;  %v6322_v49 = vmax.f32 %v102_v39, 0.0  ;;  %v129_v50 = vpack.c.bf16 %v84_v37, %v75_v36  ;;  %v76_v59 = vmax.f32 %v6318_v47, 0.0  ;;  %v5788_v1 = vld [vmem:[#allocation3 + $0x1f8] sm:$0xff]   ;;  %v5790_v3 = vld [vmem:[#allocation3 + $0x170] sm:$0xff]   ;;  %v5794_v7 = vld [vmem:[#allocation3 + $0x168] sm:$0xff]  }
  0x21   :  { %4884 = vmatpush3.bf16.msra.mxu1 %v5769_v16  ;;  %4863 = vmatprep.subr.bf16.mxu0 %v5770_v17  ;;  %v6332_v54 = vmax.f32 %v104_v45, 0.0  ;;  %v131_v55 = vpack.c.bf16 %v86_v43, %v77_v42  ;;  %v128_v62 = vpack.c.bf16 %v83_v56, %v74_v51  ;;  %v5789_v2 = vld [vmem:[#allocation3 + $0x1b8] sm:$0xff]   ;;  %v5791_v4 = vld [vmem:[#allocation3 + $0x130] sm:$0xff]   ;;  %v5795_v8 = vld [vmem:[#allocation3 + $0x128] sm:$0xff]   ;;  %v103_v36 = vsub.f32 0.0, %v6328_v52 }
  0x22   :  { %4885 = vmatprep.subr.bf16.mxu1 %v5771_v18  ;;  %v138_v58 = vpack.c.bf16 %v6322_v49, %v6320_v48  ;;  %1330 = vmatprep.mubr.bf16.mxu0 %v129_v50  ;;  %v130_v0 = vpack.c.bf16 %v85_v60, %v76_v59  ;;  %v5792_v5 = vld [vmem:[#allocation3 + $0x1f0] sm:$0xff]   ;;  %v5796_v9 = vld [vmem:[#allocation3 + $0x1e8] sm:$0xff]   ;;  %v5798_v11 = vld [vmem:[#allocation3 + $0x160] sm:$0xff]  }
  0x23   :  { %v140_v61 = vpack.c.bf16 %v6332_v54, %v6330_v53  ;;  %1371 = vmatprep.mubr.bf16.mxu1 %v131_v55  ;;  %v5793_v6 = vld [vmem:[#allocation3 + $0x1b0] sm:$0xff]   ;;  %v5797_v10 = vld [vmem:[#allocation3 + $0x1a8] sm:$0xff]   ;;  %v5799_v12 = vld [vmem:[#allocation3 + $0x120] sm:$0xff]  }
  0x24   :  { %4864 = vmatpush3.bf16.msra.mxu0 %v5772_v19  ;;  %v5800_v13 = vld [vmem:[#allocation3 + $0x1e0] sm:$0xff]   ;;  %v5802_v15 = vld [vmem:[#allocation3 + $0x158] sm:$0xff]   ;;  %v5806_v19 = vld [vmem:[#allocation3 + $0x150] sm:$0xff]  }
  0x25   :  { %4886 = vmatpush3.bf16.msra.mxu1 %v5773_v20  ;;  %4865 = vmatprep.subr.bf16.mxu0 %v5774_v21  ;;  %v5801_v14 = vld [vmem:[#allocation3 + $0x1a0] sm:$0xff]   ;;  %v5803_v16 = vld [vmem:[#allocation3 + $0x118] sm:$0xff]   ;;  %v5807_v20 = vld [vmem:[#allocation3 + $0x110] sm:$0xff]  }
  0x26   :  { %4887 = vmatprep.subr.bf16.mxu1 %v5775_v22  ;;  %v5804_v17 = vld [vmem:[#allocation3 + $0x1d8] sm:$0xff]   ;;  %v5808_v21 = vld [vmem:[#allocation3 + $0x1d0] sm:$0xff]   ;;  %v61_v33 = vld [vmem:[%s7824_s0 + $0x28] sm:$0xff] }
  0x27   :  { %v5805_v18 = vld [vmem:[#allocation3 + $0x198] sm:$0xff]   ;;  %v5809_v22 = vld [vmem:[#allocation3 + $0x190] sm:$0xff]   ;;  %v79_v37 = vmax.f32 %v61_v33, 0.0  ;;  %v97_v39 = vsub.f32 0.0, %v61_v33  ;;  %v6363_v50 = vld [vmem:[%s7824_s0 + $0x68] sm:$0xff] }
  0x28   :  { %4866 = vmatpush3.bf16.msra.mxu0 %v5776_v23  ;;  %v5810_v23 = vld [vmem:[#allocation3 + $0x148] sm:$0xff]   ;;  %v6354_v42 = vld [vmem:[%s7824_s0 + $0x20] sm:$0xff]  ;;  %v87_v52 = vmax.f32 %v6363_v50, 0.0  ;;  %v63_v56 = vld [vmem:[%s7824_s0 + $0x38] sm:$0xff] }
  0x29   :  { %4888 = vmatpush3.bf16.msra.mxu1 %v5777_v24  ;;  %4867 = vmatprep.subr.bf16.mxu0 %v5778_v25  ;;  %v5811_v24 = vld [vmem:[#allocation3 + $0x108] sm:$0xff]   ;;  %v6356_v45 = vmax.f32 %v97_v39, 0.0  ;;  %v78_v51 = vmax.f32 %v6354_v42, 0.0  ;;  %v5818_v55 = vld [vmem:[#allocation3 + $0x278] sm:$0xff]   ;;  %v81_v60 = vmax.f32 %v63_v56, 0.0  ;;  %v5838_v33 = vld [vmem:[#allocation3 + $0x250] sm:$0xff]  }
  0x2a   :  { %4889 = vmatprep.subr.bf16.mxu1 %v5779_v26  ;;  %v5812_v25 = vld [vmem:[#allocation3 + $0x1c8] sm:$0xff]   ;;  %v92_v26 = vsub.f32 0.0, %v6308_v41  ;;  %v5817_v41 = vld [vmem:[#allocation3 + $0x180] sm:$0xff]   ;;  %v5892_v53 = vld [vmem:[#allocation3 + $0x450] sm:$0xff]  }
  0x2b   :  { %v70_v34 = vld [vmem:[%s7824_s0 + $0x70] sm:$0xff]  ;;  %v72_v59 = vld [vmem:[%s7824_s0 + $0x80] sm:$0xff] }
  0x2c   :  { %4868 = vmatpush3.bf16.msra.mxu0 %v5780_v27  ;;  %v5813_v27 = vld [vmem:[#allocation3 + $0x188] sm:$0xff]   ;;  %v110_v35 = vmax.f32 %v92_v26, 0.0  ;;  %v88_v38 = vmax.f32 %v70_v34, 0.0  ;;  %v106_v40 = vsub.f32 0.0, %v70_v34  ;;  %v5831_v26 = vld [vmem:[#allocation3 + $0x220] sm:$0xff]   ;;  %v5839_v34 = vld [vmem:[#allocation3 + $0x210] sm:$0xff]  }
  0x2d   :  { %4890 = vmatpush3.bf16.msra.mxu1 %v5781_v28  ;;  %4869 = vmatprep.subr.bf16.mxu0 %v5782_v29  ;;  %v101_v28 = vsub.f32 0.0, %v6313_v46  ;;  %v5814_v29 = vld [vmem:[#allocation3 + $0x140] sm:$0xff]   ;;  %v5843_v39 = vld [vmem:[#allocation3 + $0x208] sm:$0xff]   ;;  %v5893_v54 = vld [vmem:[#allocation3 + $0x410] sm:$0xff]  }
  0x2e   :  { %4891 = vmatprep.subr.bf16.mxu1 %v5783_v30  ;;  %v94_v30 = vsub.f32 0.0, %v6318_v47  ;;  %v6358_v46 = vmax.f32 %v106_v40, 0.0  ;;  %v133_v47 = vpack.c.bf16 %v88_v38, %v79_v37  ;;  %v5842_v37 = vld [vmem:[#allocation3 + $0x248] sm:$0xff]   ;;  %v96_v38 = vsub.f32 0.0, %v6354_v42  ;;  %v5862_v48 = vld [vmem:[#allocation3 + $0x360] sm:$0xff]  }
  0x2f   :  { %v119_v43 = vmax.f32 %v101_v28, 0.0  ;;  %v5833_v28 = vld [vmem:[#allocation3 + $0x2a0] sm:$0xff]   ;;  %v105_v40 = vsub.f32 0.0, %v6363_v50 }
  0x30   :  { %4870 = vmatpush3.bf16.msra.mxu0 %v5784_v31  ;;  %v5815_v31 = vld [vmem:[#allocation3 + $0x100] sm:$0xff]   ;;  %v112_v44 = vmax.f32 %v94_v30, 0.0  ;;  %v5835_v30 = vld [vmem:[#allocation3 + $0x218] sm:$0xff]  }
  0x31   :  { %4892 = vmatpush3.bf16.msra.mxu1 %v5785_v32  ;;  %4899 = vmatprep.subr.bf16.mxu0 %v5786_v57  ;;  %v5816_v32 = vld [vmem:[#allocation3 + $0x1c0] sm:$0xff]   ;;  %v121_v57 = vmax.f32 %v103_v36, 0.0  ;;  %v5841_v36 = vld [vmem:[#allocation3 + $0x290] sm:$0xff]   ;;  %v123_v42 = vmax.f32 %v105_v40, 0.0 }
  0x32   :  { %4921 = vmatprep.subr.bf16.mxu1 %v5788_v1  ;;  %v132_v1 = vpack.c.bf16 %v87_v52, %v78_v51  ;;  %v5846_v51 = vld [vmem:[#allocation3 + $0x240] sm:$0xff]  }
  0x33   :  { %1331 = vmatmul.mubr.bf16.vlgmr.msra.gmra.mxu0 %v128_v62  ;;  %v99_v62 = vsub.f32 0.0, %v63_v56  ;;  %v5847_v52 = vld [vmem:[#allocation3 + $0x200] sm:$0xff]  }
  0x34   :  { %1372 = vmatmul.mubr.bf16.vlgmr.msra.gmra.mxu1 %v130_v0  ;;  %4900 = vmatpush3.bf16.msra.mxu0 %v5787_v63  ;;  %v5819_v63 = vld [vmem:[#allocation3 + $0x238] sm:$0xff]   ;;  %v142_v0 = vpack.c.bf16 %v6358_v46, %v6356_v45  ;;  %v5848_v56 = vld [vmem:[#allocation3 + $0x2c0] sm:$0xff]   ;;  %v5895_v45 = vld [vmem:[#allocation3 + $0x408] sm:$0xff]  }
  0x35   :  { %4922 = vmatpush3.bf16.msra.mxu1 %v5789_v2  ;;  %4901 = vmatprep.subr.bf16.mxu0 %v5790_v3  ;;  %v90_v2 = vmax.f32 %v72_v59, 0.0  ;;  %v108_v3 = vsub.f32 0.0, %v72_v59  ;;  %v6400_v50 = vld [vmem:[%s7824_s0 + $0x40] sm:$0xff]  ;;  %v6405_v59 = vld [vmem:[%s7824_s0 + $0x88] sm:$0xff] }
  0x36   :  { %4923 = vmatprep.subr.bf16.mxu1 %v5792_v5  ;;  %1412 = vmatprep.mubr.bf16.mxu0 %v133_v47  ;;  %v6383_v5 = vld [vmem:[%s7824_s0 + $0x78] sm:$0xff]  ;;  %v5863_v49 = vld [vmem:[#allocation3 + $0x320] sm:$0xff]  }
  0x37   :  { %v107_v47 = vsub.f32 0.0, %v6383_v5  ;;  %v5881_v40 = vld [vmem:[#allocation3 + $0x380] sm:$0xff]  }
  0x38   :  { %4902 = vmatpush3.bf16.msra.mxu0 %v5791_v4  ;;  %v6378_v4 = vld [vmem:[%s7824_s0 + $0x30] sm:$0xff]  ;;  %v5896_v46 = vld [vmem:[#allocation3 + $0x440] sm:$0xff]  }
  0x39   :  { %4924 = vmatpush3.bf16.msra.mxu1 %v5793_v6  ;;  %4903 = vmatprep.subr.bf16.mxu0 %v5794_v7  ;;  %v137_v6 = vpack.c.bf16 %v119_v43, %v110_v35  ;;  %v6385_v7 = vmax.f32 %v99_v62, 0.0  ;;  %v5840_v35 = vld [vmem:[#allocation3 + $0x2d0] sm:$0xff]   ;;  %v98_v43 = vsub.f32 0.0, %v6378_v4  ;;  %v125_v62 = vmax.f32 %v107_v47, 0.0 }
  0x3a   :  { %4925 = vmatprep.subr.bf16.mxu1 %v5796_v9  ;;  %v89_v9 = vmax.f32 %v6383_v5, 0.0  ;;  %v5884_v47 = vld [vmem:[#allocation3 + $0x470] sm:$0xff]  }
  0x3c   :  { %4904 = vmatpush3.bf16.msra.mxu0 %v5795_v8  ;;  %v80_v8 = vmax.f32 %v6378_v4, 0.0  ;;  %v5851_v4 = vld [vmem:[#allocation3 + $0x338] sm:$0xff]  }
  0x3d   :  { %4926 = vmatpush3.bf16.msra.mxu1 %v5797_v10  ;;  %4905 = vmatprep.subr.bf16.mxu0 %v5798_v11  ;;  %v5820_v10 = vld [vmem:[#allocation3 + $0x2f8] sm:$0xff]   ;;  %v6389_v11 = vmax.f32 %v108_v3, 0.0 }
  0x3e   :  { %4927 = vmatprep.subr.bf16.mxu1 %v5800_v13  ;;  %v5821_v13 = vld [vmem:[#allocation3 + $0x2b8] sm:$0xff]  }
  0x40   :  { %4906 = vmatpush3.bf16.msra.mxu0 %v5799_v12  ;;  %v135_v12 = vpack.c.bf16 %v90_v2, %v81_v60  ;;  %v116_v60 = vmax.f32 %v98_v43, 0.0  ;;  %v5850_v2 = vld [vmem:[#allocation3 + $0x378] sm:$0xff]  }
  0x41   :  { %4928 = vmatpush3.bf16.msra.mxu1 %v5801_v14  ;;  %4907 = vmatprep.subr.bf16.mxu0 %v5802_v15  ;;  %v134_v14 = vpack.c.bf16 %v89_v9, %v80_v8  ;;  %v139_v15 = vpack.c.bf16 %v121_v57, %v112_v44  ;;  %v5845_v44 = vld [vmem:[#allocation3 + $0x288] sm:$0xff]   ;;  %v5849_v57 = vld [vmem:[#allocation3 + $0x280] sm:$0xff]   ;;  %v5853_v8 = vld [vmem:[#allocation3 + $0x3b8] sm:$0xff]  }
  0x42   :  { %4929 = vmatprep.subr.bf16.mxu1 %v5804_v17  ;;  %1453 = vmatprep.mubr.bf16.mxu1 %v135_v12  ;;  %v144_v17 = vpack.c.bf16 %v6389_v11, %v6385_v7  ;;  %v143_v9 = vpack.c.bf16 %v125_v62, %v116_v60  ;;  %v5855_v12 = vld [vmem:[#allocation3 + $0x330] sm:$0xff]   ;;  %v5903_v60 = vld [vmem:[%s7826_s2 + $0xec] ss:$16 sps:$4 sm:$0xff]  }
  0x43   :  { %v5898_v62 = vld [vmem:[%s7826_s2 + $0xe0] ss:$16 sps:$4 sm:$0xff]   ;;  %v5906_v7 = vld [vmem:[%s7826_s2 + $0xc4] ss:$16 sps:$4 sm:$0xff]   ;;  %v5909_v11 = vld [vmem:[%s7826_s2 + $0xcc] ss:$16 sps:$4 sm:$0xff]  }
  0x44   :  { %4908 = vmatpush3.bf16.msra.mxu0 %v5803_v16  ;;  %v5822_v16 = vld [vmem:[#allocation3 + $0x270] sm:$0xff]  }
  0x45   :  { %4930 = vmatpush3.bf16.msra.mxu1 %v5805_v18  ;;  %4909 = vmatprep.subr.bf16.mxu0 %v5806_v19  ;;  %v5823_v18 = vld [vmem:[#allocation3 + $0x230] sm:$0xff]  }
  0x46   :  { %4931 = vmatprep.subr.bf16.mxu1 %v5808_v21  ;;  %v5824_v19 = vld [vmem:[#allocation3 + $0x2f0] sm:$0xff]   ;;  %v5826_v21 = vld [vmem:[#allocation3 + $0x268] sm:$0xff]  }
  0x48   :  { %4910 = vmatpush3.bf16.msra.mxu0 %v5807_v20  ;;  %v5825_v20 = vld [vmem:[#allocation3 + $0x2b0] sm:$0xff]  }
  0x49   :  { %4932 = vmatpush3.bf16.msra.mxu1 %v5809_v22  ;;  %4911 = vmatprep.subr.bf16.mxu0 %v5810_v23  ;;  %v5827_v22 = vld [vmem:[#allocation3 + $0x228] sm:$0xff]  }
  0x4a   :  { %4933 = vmatprep.subr.bf16.mxu1 %v5812_v25  ;;  %v5828_v23 = vld [vmem:[#allocation3 + $0x2e8] sm:$0xff]   ;;  %v5830_v25 = vld [vmem:[#allocation3 + $0x260] sm:$0xff]  }
  0x4c   :  { %4912 = vmatpush3.bf16.msra.mxu0 %v5811_v24  ;;  %v5829_v24 = vld [vmem:[#allocation3 + $0x2a8] sm:$0xff]  }
  0x4d   :  { %4934 = vmatpush3.bf16.msra.mxu1 %v5813_v27  ;;  %4913 = vmatprep.subr.bf16.mxu0 %v5814_v29  ;;  %v5832_v27 = vld [vmem:[#allocation3 + $0x2e0] sm:$0xff]   ;;  %v5834_v29 = vld [vmem:[#allocation3 + $0x258] sm:$0xff]  }
  0x4e   :  { %4935 = vmatprep.subr.bf16.mxu1 %v5816_v32  ;;  %v5837_v32 = vld [vmem:[#allocation3 + $0x298] sm:$0xff]  }
  0x50   :  { %4914 = vmatpush3.bf16.msra.mxu0 %v5815_v31  ;;  %v5836_v31 = vld [vmem:[#allocation3 + $0x2d8] sm:$0xff]  }
  0x51   :  { %4936 = vmatpush3.bf16.msra.mxu1 %v5817_v41  ;;  %4943 = vmatprep.subr.bf16.mxu0 %v5818_v55  ;;  %v5844_v41 = vld [vmem:[#allocation3 + $0x2c8] sm:$0xff]   ;;  %v114_v55 = vmax.f32 %v96_v38, 0.0  ;;  %v5879_v38 = vld [vmem:[#allocation3 + $0x300] sm:$0xff]  }
  0x52   :  { %4965 = vmatprep.subr.bf16.mxu1 %v5820_v10  ;;  %v5854_v10 = vld [vmem:[#allocation3 + $0x370] sm:$0xff]  }
  0x53   :  { %1413 = vmatmul.mubr.bf16.vlgmr.msra.gmra.mxu0 %v132_v1  ;;  %v91_v1 = vmax.f32 %v6405_v59, 0.0  ;;  %v141_v5 = vpack.c.bf16 %v123_v42, %v114_v55  ;;  %v5887_v55 = vld [vmem:[#allocation3 + $0x428] sm:$0xff]   ;;  %v5889_v42 = vld [vmem:[#allocation3 + $0x420] sm:$0xff]  }
  0x54   :  { %4944 = vmatpush3.bf16.msra.mxu0 %v5819_v63  ;;  %1494 = vmatprep.mubr.bf16.mxu0 %v137_v6  ;;  %v82_v63 = vmax.f32 %v6400_v50, 0.0  ;;  %v5852_v6 = vld [vmem:[#allocation3 + $0x3f8] sm:$0xff]  }
  0x55   :  { %1454 = vmatmul.mubr.bf16.vlgmr.msra.gmra.mxu1 %v134_v14  ;;  %4945 = vmatprep.subr.bf16.mxu0 %v5822_v16  ;;  %v5857_v14 = vld [vmem:[#allocation3 + $0x3b0] sm:$0xff]   ;;  %v5859_v16 = vld [vmem:[#allocation3 + $0x328] sm:$0xff]  }
  0x56   :  { %4966 = vmatpush3.bf16.msra.mxu1 %v5821_v13  ;;  %1535 = vmatprep.mubr.bf16.mxu1 %v139_v15  ;;  %v136_v3 = vpack.c.bf16 %v91_v1, %v82_v63  ;;  %v5856_v13 = vld [vmem:[#allocation3 + $0x3f0] sm:$0xff]   ;;  %v5858_v15 = vld [vmem:[#allocation3 + $0x368] sm:$0xff]  }
  0x57   :  { %4967 = vmatprep.subr.bf16.mxu1 %v5824_v19  ;;  %v5861_v19 = vld [vmem:[#allocation3 + $0x3a8] sm:$0xff]  }
  0x58   :  { %4946 = vmatpush3.bf16.msra.mxu0 %v5823_v18  ;;  %v5860_v18 = vld [vmem:[#allocation3 + $0x3e8] sm:$0xff]  }
  0x59   :  { %4947 = vmatprep.subr.bf16.mxu0 %v5826_v21  ;;  %v5866_v21 = vld [vmem:[#allocation3 + $0x358] sm:$0xff]  }
  0x5a   :  { %4968 = vmatpush3.bf16.msra.mxu1 %v5825_v20  ;;  %v5865_v20 = vld [vmem:[#allocation3 + $0x3a0] sm:$0xff]  }
  0x5b   :  { %4969 = vmatprep.subr.bf16.mxu1 %v5828_v23  ;;  %v5868_v23 = vld [vmem:[#allocation3 + $0x3d8] sm:$0xff]  }
  0x5c   :  { %4948 = vmatpush3.bf16.msra.mxu0 %v5827_v22  ;;  %v5867_v22 = vld [vmem:[#allocation3 + $0x318] sm:$0xff]  }
  0x5d   :  { %4949 = vmatprep.subr.bf16.mxu0 %v5830_v25  ;;  %v5870_v25 = vld [vmem:[#allocation3 + $0x350] sm:$0xff]  }
  0x5e   :  { %4970 = vmatpush3.bf16.msra.mxu1 %v5829_v24  ;;  %v5869_v24 = vld [vmem:[#allocation3 + $0x398] sm:$0xff]  }
  0x5f   :  { %4971 = vmatprep.subr.bf16.mxu1 %v5832_v27  ;;  %v5872_v27 = vld [vmem:[#allocation3 + $0x3d0] sm:$0xff]  }
  0x60   :  { %4950 = vmatpush3.bf16.msra.mxu0 %v5831_v26  ;;  %v5871_v26 = vld [vmem:[#allocation3 + $0x310] sm:$0xff]  }
  0x61   :  { %4951 = vmatprep.subr.bf16.mxu0 %v5834_v29  ;;  %v100_v29 = vsub.f32 0.0, %v6400_v50  ;;  %v5891_v50 = vld [vmem:[#allocation3 + $0x418] sm:$0xff]  }
  0x62   :  { %4972 = vmatpush3.bf16.msra.mxu1 %v5833_v28  ;;  %v5873_v28 = vld [vmem:[#allocation3 + $0x390] sm:$0xff]  }
  0x63   :  { %4973 = vmatprep.subr.bf16.mxu1 %v5836_v31  ;;  %v109_v31 = vsub.f32 0.0, %v6405_v59  ;;  %v5900_v59 = vld [vmem:[%s7826_s2 + $0xe4] ss:$16 sps:$4 sm:$0xff]   ;;  %v5901_v63 = vld [vmem:[%s7826_s2 + $0xe8] ss:$16 sps:$4 sm:$0xff]  }
  0x64   :  { %4952 = vmatpush3.bf16.msra.mxu0 %v5835_v30  ;;  %v5874_v30 = vld [vmem:[#allocation3 + $0x348] sm:$0xff]  }
  0x65   :  { %4953 = vmatprep.subr.bf16.mxu0 %v5838_v33  ;;  %v5876_v33 = vld [vmem:[#allocation3 + $0x3c8] sm:$0xff]  }
  0x66   :  { %4974 = vmatpush3.bf16.msra.mxu1 %v5837_v32  ;;  %v5875_v32 = vld [vmem:[#allocation3 + $0x308] sm:$0xff]  }
  0x67   :  { %4975 = vmatprep.subr.bf16.mxu1 %v5840_v35  ;;  %v118_v35 = vmax.f32 %v100_v29, 0.0  ;;  %v5907_v1 = vld [vmem:[%s7826_s2 + $0xc8] ss:$16 sps:$4 sm:$0xff]  }
  0x68   :  { %4954 = vmatpush3.bf16.msra.mxu0 %v5839_v34  ;;  %v5877_v34 = vld [vmem:[#allocation3 + $0x388] sm:$0xff]  }
  0x69   :  { %4955 = vmatprep.subr.bf16.mxu0 %v5842_v37  ;;  %v127_v37 = vmax.f32 %v109_v31, 0.0 }
  0x6a   :  { %4976 = vmatpush3.bf16.msra.mxu1 %v5841_v36  ;;  %v5878_v36 = vld [vmem:[#allocation3 + $0x340] sm:$0xff]  }
  0x6b   :  { %4977 = vmatprep.subr.bf16.mxu1 %v5844_v41  ;;  %v5882_v41 = vld [vmem:[#allocation3 + $0x478] sm:$0xff]   ;;  %v145_v43 = vpack.c.bf16 %v127_v37, %v118_v35 }
  0x6c   :  { %4956 = vmatpush3.bf16.msra.mxu0 %v5843_v39  ;;  %v5880_v39 = vld [vmem:[#allocation3 + $0x3c0] sm:$0xff]  }
  0x6d   :  { %4957 = vmatprep.subr.bf16.mxu0 %v5846_v51  ;;  %v5885_v51 = vld [vmem:[#allocation3 + $0x430] sm:$0xff]  }
  0x6e   :  { %4978 = vmatpush3.bf16.msra.mxu1 %v5845_v44  ;;  %v5883_v44 = vld [vmem:[#allocation3 + $0x438] sm:$0xff]  }
  0x6f   :  { %4979 = vmatprep.subr.bf16.mxu1 %v5848_v56  ;;  %v5888_v56 = vld [vmem:[#allocation3 + $0x460] sm:$0xff]  }
  0x70   :  { %4958 = vmatpush3.bf16.msra.mxu0 %v5847_v52  ;;  %v5886_v52 = vld [vmem:[#allocation3 + $0x468] sm:$0xff]  }
  0x71   :  { %4987 = vmatprep.subr.bf16.mxu0 %v5850_v2  ;;  %v5912_v2 = vld [vmem:[%s7826_s2 + $0xa4] ss:$16 sps:$4 sm:$0xff]  }
  0x72   :  { %4980 = vmatpush3.bf16.msra.mxu1 %v5849_v57  ;;  %v5890_v57 = vld [vmem:[#allocation3 + $0x458] sm:$0xff]  }
  0x73   :  { %1495 = vmatmul.mubr.bf16.vlgmr.msra.gmra.mxu0 %v136_v3  ;;  %5009 = vmatprep.subr.bf16.mxu1 %v5852_v6  ;;  %v5915_v3 = vld [vmem:[%s7826_s2 + $0xac] ss:$16 sps:$4 sm:$0xff]   ;;  %v5918_v6 = vld [vmem:[%s7826_s2 + $0x84] ss:$16 sps:$4 sm:$0xff]  }
  0x74   :  { %4988 = vmatpush3.bf16.msra.mxu0 %v5851_v4  ;;  %1576 = vmatprep.mubr.bf16.mxu0 %v141_v5  ;;  %v5910_v4 = vld [vmem:[%s7826_s2 + $0xa0] ss:$16 sps:$4 sm:$0xff]   ;;  %v5913_v5 = vld [vmem:[%s7826_s2 + $0xa8] ss:$16 sps:$4 sm:$0xff]  }
  0x75   :  { %1536 = vmatmul.mubr.bf16.vlgmr.msra.gmra.mxu1 %v138_v58  ;;  %4989 = vmatprep.subr.bf16.mxu0 %v5854_v10  ;;  %v5864_v58 = vld [vmem:[#allocation3 + $0x3e0] sm:$0xff]  }
  0x76   :  { %5010 = vmatpush3.bf16.msra.mxu1 %v5853_v8  ;;  %1617 = vmatprep.mubr.bf16.mxu1 %v143_v9  ;;  %v5921_v8 = vld [vmem:[%s7826_s2 + $0x8c] ss:$16 sps:$4 sm:$0xff]   ;;  %v5916_v9 = vld [vmem:[%s7826_s2 + $0x80] ss:$16 sps:$4 sm:$0xff]   ;;  %v5919_v10 = vld [vmem:[%s7826_s2 + $0x88] ss:$16 sps:$4 sm:$0xff]  }
  0x77   :  { %5011 = vmatprep.subr.bf16.mxu1 %v5856_v13  ;;  %v5927_v13 = vld [vmem:[%s7826_s2 + $0x6c] ss:$16 sps:$4 sm:$0xff]  }
  0x78   :  { %4990 = vmatpush3.bf16.msra.mxu0 %v5855_v12  ;;  %v5924_v12 = vld [vmem:[%s7826_s2 + $0x64] ss:$16 sps:$4 sm:$0xff]  }
  0x79   :  { %4991 = vmatprep.subr.bf16.mxu0 %v5858_v15  ;;  %v5925_v15 = vld [vmem:[%s7826_s2 + $0x68] ss:$16 sps:$4 sm:$0xff]  }
  0x7a   :  { %5012 = vmatpush3.bf16.msra.mxu1 %v5857_v14  ;;  %v5922_v14 = vld [vmem:[%s7826_s2 + $0x60] ss:$16 sps:$4 sm:$0xff]  }
  0x7b   :  { %5013 = vmatprep.subr.bf16.mxu1 %v5860_v18  ;;  %v5933_v18 = vld [vmem:[%s7826_s2 + $0x4c] ss:$16 sps:$4 sm:$0xff]  }
  0x7c   :  { %4992 = vmatpush3.bf16.msra.mxu0 %v5859_v16  ;;  %v5930_v16 = vld [vmem:[%s7826_s2 + $0x44] ss:$16 sps:$4 sm:$0xff]  }
  0x7d   :  { %4993 = vmatprep.subr.bf16.mxu0 %v5862_v48  ;;  %v5931_v48 = vld [vmem:[%s7826_s2 + $0x48] ss:$16 sps:$4 sm:$0xff]  }
  0x7e   :  { %5014 = vmatpush3.bf16.msra.mxu1 %v5861_v19  ;;  %v5928_v19 = vld [vmem:[%s7826_s2 + $0x40] ss:$16 sps:$4 sm:$0xff]  }
  0x7f   :  { %5015 = vmatprep.subr.bf16.mxu1 %v5864_v58  ;;  %v5939_v58 = vld [vmem:[%s7826_s2 + $0x2c] ss:$16 sps:$4 sm:$0xff]  }
  0x80   :  { %4994 = vmatpush3.bf16.msra.mxu0 %v5863_v49  ;;  %v5936_v49 = vld [vmem:[%s7826_s2 + $0x24] ss:$16 sps:$4 sm:$0xff]  }
  0x81   :  { %4995 = vmatprep.subr.bf16.mxu0 %v5866_v21  ;;  %v5937_v21 = vld [vmem:[%s7826_s2 + $0x28] ss:$16 sps:$4 sm:$0xff]  }
  0x82   :  { %5016 = vmatpush3.bf16.msra.mxu1 %v5865_v20  ;;  %v5934_v20 = vld [vmem:[%s7826_s2 + $0x20] ss:$16 sps:$4 sm:$0xff]  }
  0x83   :  { %5017 = vmatprep.subr.bf16.mxu1 %v5868_v23  ;;  %v5945_v23 = vld [vmem:[%s7826_s2 + $0xc] ss:$16 sps:$4 sm:$0xff]  }
  0x84   :  { %4996 = vmatpush3.bf16.msra.mxu0 %v5867_v22  ;;  %v5942_v22 = vld [vmem:[%s7826_s2 + $0x4] ss:$16 sps:$4 sm:$0xff]  }
  0x85   :  { %4997 = vmatprep.subr.bf16.mxu0 %v5870_v25  ;;  %v5943_v25 = vld [vmem:[%s7826_s2 + $0x8] ss:$16 sps:$4 sm:$0xff]  }
  0x86   :  { %5018 = vmatpush3.bf16.msra.mxu1 %v5869_v24  ;;  %v5940_v24 = vld [vmem:[%s7826_s2] ss:$16 sps:$4 sm:$0xff]  }
  0x87   :  { %5019 = vmatprep.subr.bf16.mxu1 %v5872_v27  ;;  %v6527_v27 = vld [vmem:[%s7827_s3 + $0xec] ss:$16 sps:$4 sm:$0xff]  }
  0x88   :  { %4998 = vmatpush3.bf16.msra.mxu0 %v5871_v26  ;;  %v6522_v26 = vld [vmem:[%s7827_s3 + $0xe4] ss:$16 sps:$4 sm:$0xff]  }
  0x89   :  { %4999 = vmatprep.subr.bf16.mxu0 %v5874_v30 }
  0x8a   :  { %5020 = vmatpush3.bf16.msra.mxu1 %v5873_v28  ;;  %v6223_v28 = vmov 0  }
  0x8b   :  { %5021 = vmatprep.subr.bf16.mxu1 %v5876_v33  ;;  %5753 = vset.pattern.permute.xlu1 %v6223_v28 }
  0x8c   :  { %5000 = vmatpush3.bf16.msra.mxu0 %v5875_v32  ;;  %5752 = vset.pattern.permute.xlu0 %v6223_v28 }
  0x8d   :  { %5001 = vmatprep.subr.bf16.mxu0 %v5878_v36 }
  0x8e   :  { %5022 = vmatpush3.bf16.msra.mxu1 %v5877_v34 }
  0x8f   :  { %5023 = vmatprep.subr.bf16.mxu1 %v5880_v39 }
  0x90   :  { %5002 = vmatpush3.bf16.msra.mxu0 %v5879_v38 }
  0x91   :  { %5031 = vmatprep.subr.bf16.mxu0 %v5882_v41 }
  0x92   :  { %5024 = vmatpush3.bf16.msra.mxu1 %v5881_v40 }
  0x93   :  { %1577 = vmatmul.mubr.bf16.vlgmr.msra.gmra.mxu0 %v140_v61  ;;  %v5894_v61 = vld [vmem:[#allocation3 + $0x448] sm:$0xff]   ;;  %1882 = vmatprep.subr.bf16.mxu1 %v5900_v59 }
  0x94   :  { %5032 = vmatpush3.bf16.msra.mxu0 %v5883_v44  ;;  %1658 = vmatprep.mubr.bf16.mxu0 %v145_v43 }
  0x95   :  { %1618 = vmatmul.mubr.bf16.vlgmr.msra.gmra.mxu1 %v142_v0  ;;  %5033 = vmatprep.subr.bf16.mxu0 %v5884_v47  ;;  %v5897_v0 = vld [vmem:[#allocation3 + $0x400] sm:$0xff]  }
  0x96   :  { %1883 = vmatpush1.bf16.msra.mxu1 %v5898_v62  ;;  %1914 = vmatprep.mubr.bf16.mxu1 %v6223_v28 }
  0x97   :  { %1884 = vmatprep.subr.bf16.mxu1 %v5906_v7 }
  0x98   :  { %5034 = vmatpush3.bf16.msra.mxu0 %v5885_v51 }
  0x99   :  { %5035 = vmatprep.subr.bf16.mxu0 %v5886_v52 }
  0x9c   :  { %5036 = vmatpush3.bf16.msra.mxu0 %v5887_v55 }
  0x9d   :  { %5037 = vmatprep.subr.bf16.mxu0 %v5888_v56 }
  0xa0   :  { %5038 = vmatpush3.bf16.msra.mxu0 %v5889_v42 }
  0xa1   :  { %5039 = vmatprep.subr.bf16.mxu0 %v5890_v57 }
  0xa4   :  { %5040 = vmatpush3.bf16.msra.mxu0 %v5891_v50 }
  0xa5   :  { %5041 = vmatprep.subr.bf16.mxu0 %v5892_v53 }
  0xa8   :  { %5042 = vmatpush3.bf16.msra.mxu0 %v5893_v54 }
  0xa9   :  { %5043 = vmatprep.subr.bf16.mxu0 %v5894_v61 }
  0xac   :  { %5044 = vmatpush3.bf16.msra.mxu0 %v5895_v45 }
  0xad   :  { %5045 = vmatprep.subr.bf16.mxu0 %v5896_v46 }
  0xb0   :  { %5046 = vmatpush3.bf16.msra.mxu0 %v5897_v0 }
  0xb1   :  { %1925 = vmatprep.subr.bf16.mxu0 %v5903_v60 }
  0xb3   :  { %1659 = vmatmul.mubr.bf16.vlgmr.msra.gmra.mxu0 %v144_v17  ;;  %v5904_v17 = vld [vmem:[%s7826_s2 + $0xc0] ss:$16 sps:$4 sm:$0xff]  }
  0xb4   :  { %1926 = vmatpush1.bf16.msra.mxu0 %v5901_v63  ;;  %1885 = vmatpush1.bf16.msra.mxu1 %v5904_v17 }
  0xb5   :  { %1927 = vmatprep.subr.bf16.mxu0 %v5909_v11  ;;  %1886 = vmatprep.subr.bf16.mxu1 %v5912_v2 }
  0xb6   :  { %1957 = vmatprep.mubr.bf16.mxu0 %v6223_v28 }
  0xb8   :  { %1928 = vmatpush1.bf16.msra.mxu0 %v5907_v1  ;;  %1887 = vmatpush1.bf16.msra.mxu1 %v5910_v4 }
  0xb9   :  { %1929 = vmatprep.subr.bf16.mxu0 %v5915_v3  ;;  %1888 = vmatprep.subr.bf16.mxu1 %v5918_v6 }
  0xbc   :  { %1930 = vmatpush1.bf16.msra.mxu0 %v5913_v5  ;;  %1889 = vmatpush1.bf16.msra.mxu1 %v5916_v9 }
  0xbd   :  { %1931 = vmatprep.subr.bf16.mxu0 %v5921_v8  ;;  %1890 = vmatprep.subr.bf16.mxu1 %v5924_v12 }
  0xc0   :  { %1932 = vmatpush1.bf16.msra.mxu0 %v5919_v10  ;;  %1891 = vmatpush1.bf16.msra.mxu1 %v5922_v14 }
  0xc1   :  { %1933 = vmatprep.subr.bf16.mxu0 %v5927_v13  ;;  %1892 = vmatprep.subr.bf16.mxu1 %v5930_v16 }
  0xc4   :  { %1934 = vmatpush1.bf16.msra.mxu0 %v5925_v15  ;;  %1893 = vmatpush1.bf16.msra.mxu1 %v5928_v19 }
  0xc5   :  { %1935 = vmatprep.subr.bf16.mxu0 %v5933_v18  ;;  %1894 = vmatprep.subr.bf16.mxu1 %v5936_v49 }
  0xc8   :  { %1936 = vmatpush1.bf16.msra.mxu0 %v5931_v48  ;;  %1895 = vmatpush1.bf16.msra.mxu1 %v5934_v20 }
  0xc9   :  { %1937 = vmatprep.subr.bf16.mxu0 %v5939_v58  ;;  %1896 = vmatprep.subr.bf16.mxu1 %v5942_v22 }
  0xcc   :  { %1938 = vmatpush1.bf16.msra.mxu0 %v5937_v21  ;;  %1897 = vmatpush1.bf16.msra.mxu1 %v5940_v24 }
  0xcd   :  { %1939 = vmatprep.subr.bf16.mxu0 %v5945_v23  ;;  %2160 = vmatprep.subr.bf16.mxu1 %v6522_v26 }
  0xd0   :  { %1940 = vmatpush1.bf16.msra.mxu0 %v5943_v25 }
  0xd1   :  { %2201 = vmatprep.subr.bf16.mxu0 %v6527_v27 }
  0xf3   :  { %v4871_v29 = vpop.f32.mrf.mxu0 }
  0xf4   :  { %v4893_v30 = vpop.f32.mrf.mxu1 }
  0xf5   :  { %v4872_v31 = vpop.f32.mrf.mxu0 }
  0xf6   :  { %v4894_v32 = vpop.f32.mrf.mxu1  ;;  %v4873_v54 = vadd.f32 %v4872_v31, %v4871_v29 }
  0xf7   :  { %v4874_v33 = vpop.f32.mrf.mxu0  ;;  %v4895_v61 = vadd.f32 %v4894_v32, %v4893_v30 }
  0xf8   :  { %v4896_v34 = vpop.f32.mrf.mxu1 }
  0xf9   :  { %v4875_v35 = vpop.f32.mrf.mxu0  ;;  %v1374_v7 = vadd.f32 %v4895_v61, %v4873_v54  ;;  %v6622_v54 = vld [vmem:[%s7827_s3 + $0x64] ss:$16 sps:$4 sm:$0xff]   ;;  %v6627_v61 = vld [vmem:[%s7827_s3 + $0x6c] ss:$16 sps:$4 sm:$0xff]  }
  0xfa   :  { %v4897_v37 = vpop.f32.mrf.mxu1  ;;  %v4876_v45 = vadd.f32 %v4875_v35, %v4874_v33 }
  0xfb   :  { %v4898_v46 = vadd.f32 %v4897_v37, %v4896_v34 }
  0xfd   :  { %v1377_v11 = vadd.f32 %v4898_v46, %v4876_v45  ;;  %v6634_v45 = vld [vmem:[%s7827_s3 + $0x60] ss:$16 sps:$4 sm:$0xff]   ;;  %v6639_v46 = vld [vmem:[%s7827_s3 + $0x68] ss:$16 sps:$4 sm:$0xff]  }
 0x113   :  { %v4915_v36 = vpop.f32.mrf.mxu0 }
 0x115   :  { %v4916_v38 = vpop.f32.mrf.mxu0  ;;  %v4937_v39 = vpop.f32.mrf.mxu1 }
 0x116   :  { %v4917_v59 = vadd.f32 %v4916_v38, %v4915_v36  ;;  %v6538_v38 = vld [vmem:[%s7827_s3 + $0xe0] ss:$16 sps:$4 sm:$0xff]  }
 0x117   :  { %v4918_v40 = vpop.f32.mrf.mxu0  ;;  %v4938_v41 = vpop.f32.mrf.mxu1 }
 0x118   :  { %v1415_v17 = vadd.f32 %v4917_v59, %v1374_v7  ;;  %v4939_v1 = vadd.f32 %v4938_v41, %v4937_v39  ;;  %v6543_v39 = vld [vmem:[%s7827_s3 + $0xe8] ss:$16 sps:$4 sm:$0xff]   ;;  %v6548_v41 = vld [vmem:[%s7827_s3 + $0xc4] ss:$16 sps:$4 sm:$0xff]   ;;  %v6651_v59 = vld [vmem:[%s7827_s3 + $0x4c] ss:$16 sps:$4 sm:$0xff]  }
 0x119   :  { %v4919_v43 = vpop.f32.mrf.mxu0  ;;  %v4940_v44 = vpop.f32.mrf.mxu1  ;;  %v6675_v7 = vld [vmem:[%s7827_s3 + $0x2c] ss:$16 sps:$4 sm:$0xff]  }
 0x11a   :  { %v4920_v60 = vadd.f32 %v4919_v43, %v4918_v40  ;;  %v1456_v9 = vadd.f32 %v4939_v1, %v1415_v17  ;;  %v6553_v43 = vld [vmem:[%s7827_s3 + $0xcc] ss:$16 sps:$4 sm:$0xff]   ;;  %v6687_v17 = vld [vmem:[%s7827_s3 + $0x28] ss:$16 sps:$4 sm:$0xff]   ;;  %v6694_v1 = vld [vmem:[%s7827_s3 + $0x4] ss:$16 sps:$4 sm:$0xff]  }
 0x11b   :  { %v4941_v51 = vpop.f32.mrf.mxu1 }
 0x11c   :  { %v1418_v2 = vadd.f32 %v4920_v60, %v1377_v11  ;;  %v4942_v3 = vadd.f32 %v4941_v51, %v4940_v44  ;;  %v6560_v44 = vld [vmem:[%s7827_s3 + $0xc0] ss:$16 sps:$4 sm:$0xff]   ;;  %v6572_v51 = vld [vmem:[%s7827_s3 + $0xa4] ss:$16 sps:$4 sm:$0xff]  }
 0x11d   :  { %v6658_v60 = vld [vmem:[%s7827_s3 + $0x40] ss:$16 sps:$4 sm:$0xff]  }
 0x11e   :  { %v1459_v10 = vadd.f32 %v4942_v3, %v1418_v2  ;;  %v6682_v11 = vld [vmem:[%s7827_s3 + $0x20] ss:$16 sps:$4 sm:$0xff]   ;;  %v6699_v2 = vld [vmem:[%s7827_s3 + $0xc] ss:$16 sps:$4 sm:$0xff]  }
 0x11f   :  { %v6706_v3 = vld [vmem:[%s7827_s3] ss:$16 sps:$4 sm:$0xff]  }
 0x133   :  { %v4959_v47 = vpop.f32.mrf.mxu0 }
 0x135   :  { %v4960_v52 = vpop.f32.mrf.mxu0  ;;  %v4981_v55 = vpop.f32.mrf.mxu1 }
 0x136   :  { %v4961_v6 = vadd.f32 %v4960_v52, %v4959_v47  ;;  %v6565_v47 = vld [vmem:[%s7827_s3 + $0xc8] ss:$16 sps:$4 sm:$0xff]   ;;  %v6577_v52 = vld [vmem:[%s7827_s3 + $0xac] ss:$16 sps:$4 sm:$0xff]  }
 0x137   :  { %v4962_v56 = vpop.f32.mrf.mxu0  ;;  %v4982_v42 = vpop.f32.mrf.mxu1 }
 0x138   :  { %v1497_v14 = vadd.f32 %v4961_v6, %v1456_v9  ;;  %v4983_v15 = vadd.f32 %v4982_v42, %v4981_v55  ;;  %v6586_v55 = vld [vmem:[%s7827_s3 + $0xa0] ss:$16 sps:$4 sm:$0xff]   ;;  %v6598_v42 = vld [vmem:[%s7827_s3 + $0x84] ss:$16 sps:$4 sm:$0xff]  }
 0x139   :  { %v4963_v57 = vpop.f32.mrf.mxu0  ;;  %v4984_v50 = vpop.f32.mrf.mxu1 }
 0x13a   :  { %v4964_v8 = vadd.f32 %v4963_v57, %v4962_v56  ;;  %v1538_v20 = vadd.f32 %v4983_v15, %v1497_v14  ;;  %v6591_v56 = vld [vmem:[%s7827_s3 + $0xa8] ss:$16 sps:$4 sm:$0xff]   ;;  %v6603_v57 = vld [vmem:[%s7827_s3 + $0x8c] ss:$16 sps:$4 sm:$0xff]  }
 0x13b   :  { %v4985_v0 = vpop.f32.mrf.mxu1 }
 0x13c   :  { %v1500_v16 = vadd.f32 %v4964_v8, %v1459_v10  ;;  %v4986_v18 = vadd.f32 %v4985_v0, %v4984_v50  ;;  %v6610_v50 = vld [vmem:[%s7827_s3 + $0x80] ss:$16 sps:$4 sm:$0xff]   ;;  %v6646_v0 = vld [vmem:[%s7827_s3 + $0x44] ss:$16 sps:$4 sm:$0xff]  }
 0x13d   :  { %v1700_v10 = vld [vmem:[%s7828_s4] sm:$0xf] }
 0x13e   :  { %v1541_v21 = vadd.f32 %v4986_v18, %v1500_v16 }
 0x153   :  { %v5003_v53 = vpop.f32.mrf.mxu0 }
 0x155   :  { %v5004_v62 = vpop.f32.mrf.mxu0  ;;  %v5025_v63 = vpop.f32.mrf.mxu1 }
 0x156   :  { %v5005_v19 = vadd.f32 %v5004_v62, %v5003_v53  ;;  %v6615_v53 = vld [vmem:[%s7827_s3 + $0x88] ss:$16 sps:$4 sm:$0xff]  }
 0x157   :  { %v5006_v4 = vpop.f32.mrf.mxu0  ;;  %v5026_v5 = vpop.f32.mrf.mxu1  ;;  %v6663_v62 = vld [vmem:[%s7827_s3 + $0x48] ss:$16 sps:$4 sm:$0xff]  }
 0x158   :  { %v1579_v23 = vadd.f32 %v5005_v19, %v1538_v20  ;;  %v5027_v24 = vadd.f32 %v5026_v5, %v5025_v63  ;;  %v6670_v63 = vld [vmem:[%s7827_s3 + $0x24] ss:$16 sps:$4 sm:$0xff]   ;;  %v1702_v5 = vlaneseq }
 0x159   :  { %v5007_v12 = vpop.f32.mrf.mxu0  ;;  %v5028_v13 = vpop.f32.mrf.mxu1 }
 0x15a   :  { %v5008_v48 = vadd.f32 %v5007_v12, %v5006_v4  ;;  %v1620_v33 = vadd.f32 %v5027_v24, %v1579_v23  ;;  %v6711_v4 = vld [vmem:[%s7827_s3 + $0x8] ss:$16 sps:$4 sm:$0xff]   ;;  %v1703_v6 = vshrl.u32 %v1702_v5, 7 }
 0x15b   :  { %v5029_v49 = vpop.f32.mrf.mxu1 }
 0x15c   :  { %v1582_v25 = vadd.f32 %v5008_v48, %v1541_v21  ;;  %v5030_v29 = vadd.f32 %v5029_v49, %v5028_v13  ;;  %v1704_v8 = vsub.s32 0, %v1703_v6  ;;  %v1712_v9 = vsub.s32 2, %v1703_v6 }
 0x15d   :  { %v1708_v14 = vsub.s32 1, %v1703_v6  ;;  %v1716_v15 = vsub.s32 3, %v1703_v6 }
 0x15e   :  { %v1623_v34 = vadd.f32 %v5030_v29, %v1582_v25  ;;  %v1705_v19 = vrot.slane %v1700_v10, %v1704_v8  ;;  %v1713_v48 = vrot.slane %v1700_v10, %v1712_v9 }
 0x15f   :  { %v1709_v20 = vrot.slane %v1700_v10, %v1708_v14  ;;  %v1717_v21 = vrot.slane %v1700_v10, %v1716_v15 }
 0x173   :  { %v5047_v58 = vpop.f32.mrf.mxu0 }
 0x175   :  { %v5048_v22 = vpop.f32.mrf.mxu0 }
 0x176   :  { %v5049_v31 = vadd.f32 %v5048_v22, %v5047_v58 }
 0x177   :  { %v5050_v30 = vpop.f32.mrf.mxu0 }
 0x178   :  { %v1661_v36 = vadd.f32 %v5049_v31, %v1620_v33 }
 0x179   :  { %v5051_v32 = vpop.f32.mrf.mxu0 }
 0x17a   :  { %v5052_v35 = vadd.f32 %v5051_v32, %v5050_v30 }
 0x17c   :  { %v1664_v37 = vadd.f32 %v5052_v35, %v1623_v34 }
 0x17e   :  { %v1667_v40 = vpack.c.bf16 %v1664_v37, %v1661_v36 }
 0x180   :  { %1915 = vmatmul.mubr.bf16.vlgmr.msra.gmra.mxu1 %v1667_v40  ;;  %1958 = vmatmul.mubr.bf16.vlgmr.msra.gmra.mxu0 %v1667_v40 }
 0x181   :  { %2161 = vmatpush1.bf16.msra.mxu1 %v6538_v38  ;;  %2202 = vmatpush1.bf16.msra.mxu0 %v6543_v39 }
 0x182   :  { %2162 = vmatprep.subr.bf16.mxu1 %v6548_v41  ;;  %2203 = vmatprep.subr.bf16.mxu0 %v6553_v43 }
 0x183   :  { %2192 = vmatprep.mubr.bf16.mxu1 %v6223_v28  ;;  %2233 = vmatprep.mubr.bf16.mxu0 %v6223_v28 }
 0x185   :  { %2163 = vmatpush1.bf16.msra.mxu1 %v6560_v44  ;;  %2204 = vmatpush1.bf16.msra.mxu0 %v6565_v47 }
 0x186   :  { %2164 = vmatprep.subr.bf16.mxu1 %v6572_v51  ;;  %2205 = vmatprep.subr.bf16.mxu0 %v6577_v52 }
 0x189   :  { %2165 = vmatpush1.bf16.msra.mxu1 %v6586_v55  ;;  %2206 = vmatpush1.bf16.msra.mxu0 %v6591_v56 }
 0x18a   :  { %2166 = vmatprep.subr.bf16.mxu1 %v6598_v42  ;;  %2207 = vmatprep.subr.bf16.mxu0 %v6603_v57 }
 0x18d   :  { %2167 = vmatpush1.bf16.msra.mxu1 %v6610_v50  ;;  %2208 = vmatpush1.bf16.msra.mxu0 %v6615_v53 }
 0x18e   :  { %2168 = vmatprep.subr.bf16.mxu1 %v6622_v54  ;;  %2209 = vmatprep.subr.bf16.mxu0 %v6627_v61 }
 0x191   :  { %2169 = vmatpush1.bf16.msra.mxu1 %v6634_v45  ;;  %2210 = vmatpush1.bf16.msra.mxu0 %v6639_v46 }
 0x192   :  { %2170 = vmatprep.subr.bf16.mxu1 %v6646_v0  ;;  %2211 = vmatprep.subr.bf16.mxu0 %v6651_v59 }
 0x195   :  { %2171 = vmatpush1.bf16.msra.mxu1 %v6658_v60  ;;  %2212 = vmatpush1.bf16.msra.mxu0 %v6663_v62 }
 0x196   :  { %2172 = vmatprep.subr.bf16.mxu1 %v6670_v63  ;;  %2213 = vmatprep.subr.bf16.mxu0 %v6675_v7 }
 0x199   :  { %2173 = vmatpush1.bf16.msra.mxu1 %v6682_v11  ;;  %2214 = vmatpush1.bf16.msra.mxu0 %v6687_v17 }
 0x19a   :  { %2174 = vmatprep.subr.bf16.mxu1 %v6694_v1  ;;  %2215 = vmatprep.subr.bf16.mxu0 %v6699_v2 }
 0x19d   :  { %2175 = vmatpush1.bf16.msra.mxu1 %v6706_v3  ;;  %2216 = vmatpush1.bf16.msra.mxu0 %v6711_v4 }
 0x19e   :  { %2271 = vmatprep.subr.bf16.mxu1 %v6522_v26  ;;  %2312 = vmatprep.subr.bf16.mxu0 %v6527_v27 }
 0x1a0   :  { %2193 = vmatmul.mubr.bf16.vlgmr.msra.gmra.mxu1 %v6223_v28  ;;  %2234 = vmatmul.mubr.bf16.vlgmr.msra.gmra.mxu0 %v6223_v28 }
 0x1a1   :  { %2272 = vmatpush1.bf16.msra.mxu1 %v6538_v38  ;;  %2313 = vmatpush1.bf16.msra.mxu0 %v6543_v39 }
 0x1a2   :  { %2273 = vmatprep.subr.bf16.mxu1 %v6548_v41  ;;  %2314 = vmatprep.subr.bf16.mxu0 %v6553_v43 }
 0x1a3   :  { %2303 = vmatprep.mubr.bf16.mxu1 %v6223_v28  ;;  %2344 = vmatprep.mubr.bf16.mxu0 %v6223_v28 }
 0x1a5   :  { %2274 = vmatpush1.bf16.msra.mxu1 %v6560_v44  ;;  %2315 = vmatpush1.bf16.msra.mxu0 %v6565_v47 }
 0x1a6   :  { %2275 = vmatprep.subr.bf16.mxu1 %v6572_v51  ;;  %2316 = vmatprep.subr.bf16.mxu0 %v6577_v52 }
 0x1a9   :  { %2276 = vmatpush1.bf16.msra.mxu1 %v6586_v55  ;;  %2317 = vmatpush1.bf16.msra.mxu0 %v6591_v56 }
 0x1aa   :  { %2277 = vmatprep.subr.bf16.mxu1 %v6598_v42  ;;  %2318 = vmatprep.subr.bf16.mxu0 %v6603_v57 }
 0x1ad   :  { %2278 = vmatpush1.bf16.msra.mxu1 %v6610_v50  ;;  %2319 = vmatpush1.bf16.msra.mxu0 %v6615_v53 }
 0x1ae   :  { %2279 = vmatprep.subr.bf16.mxu1 %v6622_v54  ;;  %2320 = vmatprep.subr.bf16.mxu0 %v6627_v61 }
 0x1b1   :  { %2280 = vmatpush1.bf16.msra.mxu1 %v6634_v45  ;;  %2321 = vmatpush1.bf16.msra.mxu0 %v6639_v46 }
 0x1b2   :  { %2281 = vmatprep.subr.bf16.mxu1 %v6646_v0  ;;  %2322 = vmatprep.subr.bf16.mxu0 %v6651_v59 }
 0x1b5   :  { %2282 = vmatpush1.bf16.msra.mxu1 %v6658_v60  ;;  %2323 = vmatpush1.bf16.msra.mxu0 %v6663_v62 }
 0x1b6   :  { %2283 = vmatprep.subr.bf16.mxu1 %v6670_v63  ;;  %2324 = vmatprep.subr.bf16.mxu0 %v6675_v7 }
 0x1b9   :  { %2284 = vmatpush1.bf16.msra.mxu1 %v6682_v11  ;;  %2325 = vmatpush1.bf16.msra.mxu0 %v6687_v17 }
 0x1ba   :  { %2285 = vmatprep.subr.bf16.mxu1 %v6694_v1  ;;  %2326 = vmatprep.subr.bf16.mxu0 %v6699_v2 }
 0x1bd   :  { %2286 = vmatpush1.bf16.msra.mxu1 %v6706_v3  ;;  %2327 = vmatpush1.bf16.msra.mxu0 %v6711_v4 }
 0x1be   :  { %2400 = vmatprep.subr.bf16.mxu1 %v6522_v26  ;;  %2441 = vmatprep.subr.bf16.mxu0 %v6527_v27 }
 0x240   :  { %v1916_v12 = vpop.f32.mrf.mxu1  ;;  %v1959_v13 = vpop.f32.mrf.mxu0 }
 0x241   :  { %v6766_v31 = vadd.f32 %v1916_v12, %v1705_v19  ;;  %v6772_v12 = vadd.f32 %v1959_v13, %v1713_v48 }
 0x242   :  { %v1918_v16 = vpop.f32.mrf.mxu1  ;;  %v1961_v18 = vpop.f32.mrf.mxu0 }
 0x243   :  { %v6768_v34 = vadd.f32 %v1918_v16, %v1709_v20  ;;  %v6775_v16 = vadd.f32 %v1961_v18, %v1717_v21 }
 0x244   :  { %v1920_v49 = vpop.f32.mrf.mxu1  ;;  %v1963_v58 = vpop.f32.mrf.mxu0 }
 0x245   :  { %v6758_v22 = vadd.f32 %v1920_v49, %v1705_v19  ;;  %v6760_v23 = vadd.f32 %v1963_v58, %v1713_v48 }
 0x246   :  { %v1922_v24 = vpop.f32.mrf.mxu1  ;;  %v1965_v25 = vpop.f32.mrf.mxu0 }
 0x247   :  { %v6762_v29 = vadd.f32 %v1922_v24, %v1709_v20  ;;  %v6764_v30 = vadd.f32 %v1965_v25, %v1717_v21 }
 0x260   :  { %v2194_v32 = vpop.f32.mrf.mxu1  ;;  %v2235_v33 = vpop.f32.mrf.mxu0 }
 0x261   :  { %v2242_v35 = vadd.f32 %v2194_v32, %v6766_v31  ;;  %v2244_v15 = vadd.f32 %v2235_v33, %v6772_v12 }
 0x262   :  { %v2196_v36 = vpop.f32.mrf.mxu1  ;;  %v2237_v37 = vpop.f32.mrf.mxu0 }
 0x263   :  { %v4820_v40 = vmul.f32 -1.442695, %v2242_v35  ;;  %v2243_v5 = vadd.f32 %v2196_v36, %v6768_v34  ;;  %v4822_v19 = vmul.f32 -1.442695, %v2244_v15  ;;  %v2245_v58 = vadd.f32 %v2237_v37, %v6775_v16 }
 0x264   :  { %v2198_v6 = vpop.f32.mrf.mxu1  ;;  %v2239_v8 = vpop.f32.mrf.mxu0 }
 0x265   :  { %5994 = vpow2.f32 %v4820_v40  ;;  %v4821_v9 = vmul.f32 -1.442695, %v2243_v5 }
 0x266   :  { %v2199_v10 = vpop.f32.mrf.mxu1  ;;  %v2240_v14 = vpop.f32.mrf.mxu0 }
 0x267   :  { %5996 = vpow2.f32 %v4821_v9 }
 0x268   :  { %5998 = vpow2.f32 %v4822_v19 }
 0x272   :  { %v5995_v49 = vpop.eup %5994 }
 0x273   :  { %v2255_v20 = vadd.f32 1.0, %v5995_v49 }
 0x274   :  { %v5997_v24 = vpop.eup %5996 }
 0x275   :  { %6000 = vrcp.f32 %v2255_v20  ;;  %v2256_v25 = vadd.f32 1.0, %v5997_v24  ;;  %v5999_v32 = vpop.eup %5998 }
 0x276   :  { %6002 = vtanh.f32 %v2245_v58  ;;  %v2257_v48 = vadd.f32 1.0, %v5999_v32 }
 0x277   :  { %6004 = vrcp.f32 %v2256_v25 }
 0x278   :  { %6006 = vrcp.f32 %v2257_v48 }
 0x282   :  { %v6001_v35 = vpop.eup %6000 }
 0x283   :  { %v6003_v36 = vpop.eup %6002 }
 0x284   :  { %v6005_v13 = vpop.eup %6004  ;;  %v2266_v33 = vmul.f32 %v6003_v36, %v6001_v35 }
 0x285   :  { %v2265_v40 = vmul.f32 0.0, %v6005_v13  ;;  %v6007_v21 = vpop.eup %6006 }
 0x287   :  { %v6778_v18 = vadd.f32 %v2266_v33, %v2265_v40 }
 0x289   :  { %6008 = vtanh.f32 %v6778_v18 }
 0x296   :  { %v6009_v37 = vpop.eup %6008 }
 0x297   :  { %v6781_v5 = vmul.f32 %v6009_v37, %v6007_v21 }
 0x299   :  { %v2270_v6 = vpack.c.bf16 %v6781_v5, %v6781_v5 }
 0x29b   :  { %2304 = vmatmul.mubr.bf16.vlgmr.msra.gmra.mxu1 %v2270_v6  ;;  %2345 = vmatmul.mubr.bf16.vlgmr.msra.gmra.mxu0 %v2270_v6 }
 0x29c   :  { %2401 = vmatpush1.bf16.msra.mxu1 %v6538_v38  ;;  %2442 = vmatpush1.bf16.msra.mxu0 %v6543_v39 }
 0x29d   :  { %2402 = vmatprep.subr.bf16.mxu1 %v6548_v41  ;;  %2443 = vmatprep.subr.bf16.mxu0 %v6553_v43 }
 0x29e   :  { %2432 = vmatprep.mubr.bf16.mxu1 %v6223_v28  ;;  %2473 = vmatprep.mubr.bf16.mxu0 %v6223_v28 }
 0x2a0   :  { %2403 = vmatpush1.bf16.msra.mxu1 %v6560_v44  ;;  %2444 = vmatpush1.bf16.msra.mxu0 %v6565_v47 }
 0x2a1   :  { %2404 = vmatprep.subr.bf16.mxu1 %v6572_v51  ;;  %2445 = vmatprep.subr.bf16.mxu0 %v6577_v52 }
 0x2a4   :  { %2405 = vmatpush1.bf16.msra.mxu1 %v6586_v55  ;;  %2446 = vmatpush1.bf16.msra.mxu0 %v6591_v56 }
 0x2a5   :  { %2406 = vmatprep.subr.bf16.mxu1 %v6598_v42  ;;  %2447 = vmatprep.subr.bf16.mxu0 %v6603_v57 }
 0x2a8   :  { %2407 = vmatpush1.bf16.msra.mxu1 %v6610_v50  ;;  %2448 = vmatpush1.bf16.msra.mxu0 %v6615_v53 }
 0x2a9   :  { %2408 = vmatprep.subr.bf16.mxu1 %v6622_v54  ;;  %2449 = vmatprep.subr.bf16.mxu0 %v6627_v61 }
 0x2ac   :  { %2409 = vmatpush1.bf16.msra.mxu1 %v6634_v45  ;;  %2450 = vmatpush1.bf16.msra.mxu0 %v6639_v46 }
 0x2ad   :  { %2410 = vmatprep.subr.bf16.mxu1 %v6646_v0  ;;  %2451 = vmatprep.subr.bf16.mxu0 %v6651_v59 }
 0x2b0   :  { %2411 = vmatpush1.bf16.msra.mxu1 %v6658_v60  ;;  %2452 = vmatpush1.bf16.msra.mxu0 %v6663_v62 }
 0x2b1   :  { %2412 = vmatprep.subr.bf16.mxu1 %v6670_v63  ;;  %2453 = vmatprep.subr.bf16.mxu0 %v6675_v7 }
 0x2b4   :  { %2413 = vmatpush1.bf16.msra.mxu1 %v6682_v11  ;;  %2454 = vmatpush1.bf16.msra.mxu0 %v6687_v17 }
 0x2b5   :  { %2414 = vmatprep.subr.bf16.mxu1 %v6694_v1  ;;  %2455 = vmatprep.subr.bf16.mxu0 %v6699_v2 }
 0x2b8   :  { %2415 = vmatpush1.bf16.msra.mxu1 %v6706_v3  ;;  %2456 = vmatpush1.bf16.msra.mxu0 %v6711_v4 }
 0x2b9   :  { %2529 = vmatprep.subr.bf16.mxu1 %v6522_v26  ;;  %2570 = vmatprep.subr.bf16.mxu0 %v6527_v27 }
 0x35b   :  { %v2305_v8 = vpop.f32.mrf.mxu1  ;;  %v2346_v9 = vpop.f32.mrf.mxu0 }
 0x35c   :  { %v2357_v10 = vrot.slane %v2305_v8, 6  ;;  %v2359_v13 = vrot.slane %v2346_v9, 6 }
 0x35d   :  { %v2307_v14 = vpop.f32.mrf.mxu1  ;;  %v2348_v15 = vpop.f32.mrf.mxu0 }
 0x35e   :  { %v2365_v19 = vadd.f32 %v2357_v10, %v6766_v31  ;;  %v2358_v49 = vrot.slane %v2307_v14, 6  ;;  %v2367_v48 = vadd.f32 %v2359_v13, %v6772_v12  ;;  %v2360_v40 = vrot.slane %v2348_v15, 6 }
 0x35f   :  { %v2309_v58 = vpop.f32.mrf.mxu1  ;;  %v2350_v20 = vpop.f32.mrf.mxu0 }
 0x360   :  { %v4823_v24 = vmul.f32 -1.442695, %v2365_v19  ;;  %v2366_v25 = vadd.f32 %v2358_v49, %v6768_v34  ;;  %v4825_v33 = vmul.f32 -1.442695, %v2367_v48  ;;  %v2368_v37 = vadd.f32 %v2360_v40, %v6775_v16 }
 0x361   :  { %v2310_v32 = vpop.f32.mrf.mxu1  ;;  %v2351_v35 = vpop.f32.mrf.mxu0  ;;  %v2389_v58 = vrot.slane %v6778_v18, 6 }
 0x362   :  { %6010 = vpow2.f32 %v4823_v24  ;;  %v4824_v36 = vmul.f32 -1.442695, %v2366_v25 }
 0x364   :  { %6012 = vpow2.f32 %v4824_v36 }
 0x365   :  { %6014 = vpow2.f32 %v4825_v33 }
 0x36f   :  { %v6011_v21 = vpop.eup %6010 }
 0x370   :  { %v2378_v6 = vadd.f32 1.0, %v6011_v21 }
 0x371   :  { %v6013_v8 = vpop.eup %6012 }
 0x372   :  { %6016 = vrcp.f32 %v2378_v6  ;;  %v2379_v10 = vadd.f32 1.0, %v6013_v8  ;;  %v6015_v14 = vpop.eup %6014 }
 0x373   :  { %6018 = vtanh.f32 %v2368_v37  ;;  %v2380_v20 = vadd.f32 1.0, %v6015_v14 }
 0x374   :  { %6020 = vrcp.f32 %v2379_v10 }
 0x375   :  { %6022 = vrcp.f32 %v2380_v20 }
 0x37f   :  { %v6017_v19 = vpop.eup %6016 }
 0x380   :  { %v6019_v49 = vpop.eup %6018 }
 0x381   :  { %v6021_v9 = vpop.eup %6020  ;;  %v2392_v15 = vmul.f32 %v6019_v49, %v6017_v19 }
 0x382   :  { %v2391_v24 = vmul.f32 %v6021_v9, %v2389_v58  ;;  %v6023_v32 = vpop.eup %6022 }
 0x384   :  { %v6824_v25 = vadd.f32 %v2392_v15, %v2391_v24 }
 0x386   :  { %6024 = vtanh.f32 %v6824_v25 }
 0x393   :  { %v6025_v35 = vpop.eup %6024 }
 0x394   :  { %v6827_v36 = vmul.f32 %v6025_v35, %v6023_v32 }
 0x396   :  { %v2396_v13 = vpack.c.bf16 %v6827_v36, %v6827_v36 }
 0x398   :  { %v2398_v48 = vrot.slane %v2396_v13, 1 }
 0x39a   :  { %2433 = vmatmul.mubr.bf16.vlgmr.msra.gmra.mxu1 %v2398_v48  ;;  %2474 = vmatmul.mubr.bf16.vlgmr.msra.gmra.mxu0 %v2398_v48 }
 0x39b   :  { %2530 = vmatpush1.bf16.msra.mxu1 %v6538_v38  ;;  %2571 = vmatpush1.bf16.msra.mxu0 %v6543_v39 }
 0x39c   :  { %2531 = vmatprep.subr.bf16.mxu1 %v6548_v41  ;;  %2572 = vmatprep.subr.bf16.mxu0 %v6553_v43 }
 0x39d   :  { %2561 = vmatprep.mubr.bf16.mxu1 %v6223_v28  ;;  %2602 = vmatprep.mubr.bf16.mxu0 %v6223_v28 }
 0x39f   :  { %2532 = vmatpush1.bf16.msra.mxu1 %v6560_v44  ;;  %2573 = vmatpush1.bf16.msra.mxu0 %v6565_v47 }
 0x3a0   :  { %2533 = vmatprep.subr.bf16.mxu1 %v6572_v51  ;;  %2574 = vmatprep.subr.bf16.mxu0 %v6577_v52 }
 0x3a3   :  { %2534 = vmatpush1.bf16.msra.mxu1 %v6586_v55  ;;  %2575 = vmatpush1.bf16.msra.mxu0 %v6591_v56 }
 0x3a4   :  { %2535 = vmatprep.subr.bf16.mxu1 %v6598_v42  ;;  %2576 = vmatprep.subr.bf16.mxu0 %v6603_v57 }
 0x3a7   :  { %2536 = vmatpush1.bf16.msra.mxu1 %v6610_v50  ;;  %2577 = vmatpush1.bf16.msra.mxu0 %v6615_v53 }
 0x3a8   :  { %2537 = vmatprep.subr.bf16.mxu1 %v6622_v54  ;;  %2578 = vmatprep.subr.bf16.mxu0 %v6627_v61 }
 0x3ab   :  { %2538 = vmatpush1.bf16.msra.mxu1 %v6634_v45  ;;  %2579 = vmatpush1.bf16.msra.mxu0 %v6639_v46 }
 0x3ac   :  { %2539 = vmatprep.subr.bf16.mxu1 %v6646_v0  ;;  %2580 = vmatprep.subr.bf16.mxu0 %v6651_v59 }
 0x3af   :  { %2540 = vmatpush1.bf16.msra.mxu1 %v6658_v60  ;;  %2581 = vmatpush1.bf16.msra.mxu0 %v6663_v62 }
 0x3b0   :  { %2541 = vmatprep.subr.bf16.mxu1 %v6670_v63  ;;  %2582 = vmatprep.subr.bf16.mxu0 %v6675_v7 }
 0x3b3   :  { %2542 = vmatpush1.bf16.msra.mxu1 %v6682_v11  ;;  %2583 = vmatpush1.bf16.msra.mxu0 %v6687_v17 }
 0x3b4   :  { %2543 = vmatprep.subr.bf16.mxu1 %v6694_v1  ;;  %2584 = vmatprep.subr.bf16.mxu0 %v6699_v2 }
 0x3b7   :  { %2544 = vmatpush1.bf16.msra.mxu1 %v6706_v3  ;;  %2585 = vmatpush1.bf16.msra.mxu0 %v6711_v4 }
 0x3b8   :  { %2658 = vmatprep.subr.bf16.mxu1 %v6522_v26  ;;  %2699 = vmatprep.subr.bf16.mxu0 %v6527_v27 }
 0x45a   :  { %v2434_v18 = vpop.f32.mrf.mxu1  ;;  %v2475_v40 = vpop.f32.mrf.mxu0 }
 0x45b   :  { %v2486_v33 = vrot.slane %v2434_v18, 4  ;;  %v2488_v24 = vrot.slane %v2475_v40, 4 }
 0x45c   :  { %v2436_v21 = vpop.f32.mrf.mxu1  ;;  %v2477_v37 = vpop.f32.mrf.mxu0 }
 0x45d   :  { %v2494_v6 = vadd.f32 %v2486_v33, %v6766_v31  ;;  %v2487_v8 = vrot.slane %v2436_v21, 4  ;;  %v2496_v15 = vadd.f32 %v2488_v24, %v6772_v12  ;;  %v2489_v32 = vrot.slane %v2477_v37, 4 }
 0x45e   :  { %v2438_v10 = vpop.f32.mrf.mxu1  ;;  %v2479_v14 = vpop.f32.mrf.mxu0 }
 0x45f   :  { %v4826_v19 = vmul.f32 -1.442695, %v2494_v6  ;;  %v2495_v49 = vadd.f32 %v2487_v8, %v6768_v34  ;;  %v4828_v35 = vmul.f32 -1.442695, %v2496_v15  ;;  %v2497_v48 = vadd.f32 %v2489_v32, %v6775_v16 }
 0x460   :  { %v2439_v58 = vpop.f32.mrf.mxu1  ;;  %v2480_v9 = vpop.f32.mrf.mxu0  ;;  %v2518_v14 = vrot.slane %v6824_v25, 6 }
 0x461   :  { %6026 = vpow2.f32 %v4826_v19  ;;  %v4827_v20 = vmul.f32 -1.442695, %v2495_v49 }
 0x463   :  { %6028 = vpow2.f32 %v4827_v20 }
 0x464   :  { %6030 = vpow2.f32 %v4828_v35 }
 0x46e   :  { %v6027_v13 = vpop.eup %6026 }
 0x46f   :  { %v2507_v18 = vadd.f32 1.0, %v6027_v13 }
 0x470   :  { %v6029_v33 = vpop.eup %6028 }
 0x471   :  { %6032 = vrcp.f32 %v2507_v18  ;;  %v2508_v21 = vadd.f32 1.0, %v6029_v33  ;;  %v6031_v6 = vpop.eup %6030 }
 0x472   :  { %6034 = vtanh.f32 %v2497_v48  ;;  %v2509_v19 = vadd.f32 1.0, %v6031_v6 }
 0x473   :  { %6036 = vrcp.f32 %v2508_v21 }
 0x474   :  { %6038 = vrcp.f32 %v2509_v19 }
 0x47e   :  { %v6033_v8 = vpop.eup %6032 }
 0x47f   :  { %v6035_v10 = vpop.eup %6034 }
 0x480   :  { %v6037_v40 = vpop.eup %6036  ;;  %v2521_v37 = vmul.f32 %v6035_v10, %v6033_v8 }
 0x481   :  { %v2520_v49 = vmul.f32 %v6037_v40, %v2518_v14  ;;  %v6039_v9 = vpop.eup %6038 }
 0x483   :  { %v6870_v58 = vadd.f32 %v2521_v37, %v2520_v49 }
 0x485   :  { %6040 = vtanh.f32 %v6870_v58 }
 0x492   :  { %v6041_v20 = vpop.eup %6040 }
 0x493   :  { %v6873_v24 = vmul.f32 %v6041_v20, %v6039_v9 }
 0x495   :  { %v2525_v15 = vpack.c.bf16 %v6873_v24, %v6873_v24 }
 0x497   :  { %v2527_v32 = vrot.slane %v2525_v15, 2 }
 0x499   :  { %2562 = vmatmul.mubr.bf16.vlgmr.msra.gmra.mxu1 %v2527_v32  ;;  %2603 = vmatmul.mubr.bf16.vlgmr.msra.gmra.mxu0 %v2527_v32 }
 0x49a   :  { %2659 = vmatpush1.bf16.msra.mxu1 %v6538_v38  ;;  %2700 = vmatpush1.bf16.msra.mxu0 %v6543_v39 }
 0x49b   :  { %2660 = vmatprep.subr.bf16.mxu1 %v6548_v41  ;;  %2701 = vmatprep.subr.bf16.mxu0 %v6553_v43 }
 0x49c   :  { %2690 = vmatprep.mubr.bf16.mxu1 %v6223_v28  ;;  %2731 = vmatprep.mubr.bf16.mxu0 %v6223_v28 }
 0x49e   :  { %2661 = vmatpush1.bf16.msra.mxu1 %v6560_v44  ;;  %2702 = vmatpush1.bf16.msra.mxu0 %v6565_v47 }
 0x49f   :  { %2662 = vmatprep.subr.bf16.mxu1 %v6572_v51  ;;  %2703 = vmatprep.subr.bf16.mxu0 %v6577_v52 }
 0x4a2   :  { %2663 = vmatpush1.bf16.msra.mxu1 %v6586_v55  ;;  %2704 = vmatpush1.bf16.msra.mxu0 %v6591_v56 }
 0x4a3   :  { %2664 = vmatprep.subr.bf16.mxu1 %v6598_v42  ;;  %2705 = vmatprep.subr.bf16.mxu0 %v6603_v57 }
 0x4a6   :  { %2665 = vmatpush1.bf16.msra.mxu1 %v6610_v50  ;;  %2706 = vmatpush1.bf16.msra.mxu0 %v6615_v53 }
 0x4a7   :  { %2666 = vmatprep.subr.bf16.mxu1 %v6622_v54  ;;  %2707 = vmatprep.subr.bf16.mxu0 %v6627_v61 }
 0x4aa   :  { %2667 = vmatpush1.bf16.msra.mxu1 %v6634_v45  ;;  %2708 = vmatpush1.bf16.msra.mxu0 %v6639_v46 }
 0x4ab   :  { %2668 = vmatprep.subr.bf16.mxu1 %v6646_v0  ;;  %2709 = vmatprep.subr.bf16.mxu0 %v6651_v59 }
 0x4ae   :  { %2669 = vmatpush1.bf16.msra.mxu1 %v6658_v60  ;;  %2710 = vmatpush1.bf16.msra.mxu0 %v6663_v62 }
 0x4af   :  { %2670 = vmatprep.subr.bf16.mxu1 %v6670_v63  ;;  %2711 = vmatprep.subr.bf16.mxu0 %v6675_v7 }
 0x4b2   :  { %2671 = vmatpush1.bf16.msra.mxu1 %v6682_v11  ;;  %2712 = vmatpush1.bf16.msra.mxu0 %v6687_v17 }
 0x4b3   :  { %2672 = vmatprep.subr.bf16.mxu1 %v6694_v1  ;;  %2713 = vmatprep.subr.bf16.mxu0 %v6699_v2 }
 0x4b6   :  { %2673 = vmatpush1.bf16.msra.mxu1 %v6706_v3  ;;  %2714 = vmatpush1.bf16.msra.mxu0 %v6711_v4 }
 0x4b7   :  { %2772 = vmatprep.subr.bf16.mxu1 %v6522_v26  ;;  %2813 = vmatprep.subr.bf16.mxu0 %v6527_v27 }
 0x559   :  { %v2563_v25 = vpop.f32.mrf.mxu1  ;;  %v2604_v35 = vpop.f32.mrf.mxu0 }
 0x55a   :  { %v2615_v13 = vrot.slane %v2563_v25, 2  ;;  %v2617_v26 = vrot.slane %v2604_v35, 2 }
 0x55b   :  { %v2565_v48 = vpop.f32.mrf.mxu1  ;;  %v2606_v18 = vpop.f32.mrf.mxu0 }
 0x55c   :  { %v2623_v33 = vadd.f32 %v2615_v13, %v6766_v31  ;;  %v2616_v21 = vrot.slane %v2565_v48, 2  ;;  %v2625_v27 = vadd.f32 %v2617_v26, %v6772_v12  ;;  %v2618_v37 = vrot.slane %v2606_v18, 2 }
 0x55d   :  { %v2567_v6 = vpop.f32.mrf.mxu1  ;;  %v2608_v8 = vpop.f32.mrf.mxu0 }
 0x55e   :  { %v4829_v10 = vmul.f32 -1.442695, %v2623_v33  ;;  %v2624_v14 = vadd.f32 %v2616_v21, %v6768_v34  ;;  %v4831_v9 = vmul.f32 -1.442695, %v2625_v27  ;;  %v2626_v15 = vadd.f32 %v2618_v37, %v6775_v16 }
 0x55f   :  { %v2568_v40 = vpop.f32.mrf.mxu1  ;;  %v2609_v19 = vpop.f32.mrf.mxu0  ;;  %v2647_v33 = vrot.slane %v6870_v58, 6  ;;  %v6958_v58 = vld [vmem:[%s7827_s3 + $0xe4] ss:$16 sps:$4 sm:$0xff]  }
 0x560   :  { %6042 = vpow2.f32 %v4829_v10  ;;  %v4830_v49 = vmul.f32 -1.442695, %v2624_v14  ;;  %v6964_v19 = vld [vmem:[%s7827_s3 + $0xec] ss:$16 sps:$4 sm:$0xff]  }
 0x562   :  { %6044 = vpow2.f32 %v4830_v49 }
 0x563   :  { %6046 = vpow2.f32 %v4831_v9 }
 0x56d   :  { %v6043_v20 = vpop.eup %6042 }
 0x56e   :  { %v2636_v31 = vadd.f32 1.0, %v6043_v20 }
 0x56f   :  { %v6045_v32 = vpop.eup %6044 }
 0x570   :  { %6048 = vrcp.f32 %v2636_v31  ;;  %v2637_v25 = vadd.f32 1.0, %v6045_v32  ;;  %v6047_v34 = vpop.eup %6046 }
 0x571   :  { %6050 = vtanh.f32 %v2626_v15  ;;  %v2638_v21 = vadd.f32 1.0, %v6047_v34 }
 0x572   :  { %6052 = vrcp.f32 %v2637_v25 }
 0x573   :  { %6054 = vrcp.f32 %v2638_v21 }
 0x57d   :  { %v6049_v13 = vpop.eup %6048 }
 0x57e   :  { %v6051_v48 = vpop.eup %6050 }
 0x57f   :  { %v6053_v35 = vpop.eup %6052  ;;  %v2650_v18 = vmul.f32 %v6051_v48, %v6049_v13 }
 0x580   :  { %v2649_v12 = vmul.f32 %v6053_v35, %v2647_v33  ;;  %v6055_v16 = vpop.eup %6054 }
 0x582   :  { %v6916_v6 = vadd.f32 %v2650_v18, %v2649_v12 }
 0x584   :  { %6056 = vtanh.f32 %v6916_v6 }
 0x591   :  { %v6057_v8 = vpop.eup %6056 }
 0x592   :  { %v6919_v10 = vmul.f32 %v6057_v8, %v6055_v16 }
 0x594   :  { %v2654_v14 = vpack.c.bf16 %v6919_v10, %v6919_v10 }
 0x596   :  { %v2656_v40 = vrot.slane %v2654_v14, 3 }
 0x598   :  { %2691 = vmatmul.mubr.bf16.vlgmr.msra.gmra.mxu1 %v2656_v40  ;;  %2732 = vmatmul.mubr.bf16.vlgmr.msra.gmra.mxu0 %v2656_v40 }
 0x599   :  { %2773 = vmatpush1.bf16.msra.mxu1 %v6538_v38  ;;  %2814 = vmatpush1.bf16.msra.mxu0 %v6543_v39 }
 0x59a   :  { %2774 = vmatprep.subr.bf16.mxu1 %v6548_v41  ;;  %2815 = vmatprep.subr.bf16.mxu0 %v6553_v43 }
 0x59b   :  { %2804 = vmatprep.mubr.bf16.mxu1 %v6223_v28  ;;  %2845 = vmatprep.mubr.bf16.mxu0 %v6223_v28 }
 0x59d   :  { %2775 = vmatpush1.bf16.msra.mxu1 %v6560_v44  ;;  %2816 = vmatpush1.bf16.msra.mxu0 %v6565_v47 }
 0x59e   :  { %2776 = vmatprep.subr.bf16.mxu1 %v6572_v51  ;;  %2817 = vmatprep.subr.bf16.mxu0 %v6577_v52 }
 0x5a1   :  { %2777 = vmatpush1.bf16.msra.mxu1 %v6586_v55  ;;  %2818 = vmatpush1.bf16.msra.mxu0 %v6591_v56 }
 0x5a2   :  { %2778 = vmatprep.subr.bf16.mxu1 %v6598_v42  ;;  %2819 = vmatprep.subr.bf16.mxu0 %v6603_v57 }
 0x5a5   :  { %2779 = vmatpush1.bf16.msra.mxu1 %v6610_v50  ;;  %2820 = vmatpush1.bf16.msra.mxu0 %v6615_v53 }
 0x5a6   :  { %2780 = vmatprep.subr.bf16.mxu1 %v6622_v54  ;;  %2821 = vmatprep.subr.bf16.mxu0 %v6627_v61 }
 0x5a9   :  { %2781 = vmatpush1.bf16.msra.mxu1 %v6634_v45  ;;  %2822 = vmatpush1.bf16.msra.mxu0 %v6639_v46 }
 0x5aa   :  { %2782 = vmatprep.subr.bf16.mxu1 %v6646_v0  ;;  %2823 = vmatprep.subr.bf16.mxu0 %v6651_v59 }
 0x5ad   :  { %2783 = vmatpush1.bf16.msra.mxu1 %v6658_v60  ;;  %2824 = vmatpush1.bf16.msra.mxu0 %v6663_v62 }
 0x5ae   :  { %2784 = vmatprep.subr.bf16.mxu1 %v6670_v63  ;;  %2825 = vmatprep.subr.bf16.mxu0 %v6675_v7 }
 0x5b1   :  { %2785 = vmatpush1.bf16.msra.mxu1 %v6682_v11  ;;  %2826 = vmatpush1.bf16.msra.mxu0 %v6687_v17 }
 0x5b2   :  { %2786 = vmatprep.subr.bf16.mxu1 %v6694_v1  ;;  %2827 = vmatprep.subr.bf16.mxu0 %v6699_v2 }
 0x5b5   :  { %2787 = vmatpush1.bf16.msra.mxu1 %v6706_v3  ;;  %2828 = vmatpush1.bf16.msra.mxu0 %v6711_v4 }
 0x5b6   :  { %2901 = vmatprep.subr.bf16.mxu1 %v6958_v58  ;;  %2942 = vmatprep.subr.bf16.mxu0 %v6964_v19 }
 0x658   :  { %v2692_v49 = vpop.f32.mrf.mxu1  ;;  %v2733_v26 = vpop.f32.mrf.mxu0 }
 0x659   :  { %v2740_v27 = vadd.f32 %v2692_v49, %v6758_v22  ;;  %v2742_v48 = vadd.f32 %v2733_v26, %v6760_v23  ;;  %v2764_v49 = vrot.slane %v6916_v6, 6 }
 0x65a   :  { %v2694_v37 = vpop.f32.mrf.mxu1  ;;  %v2735_v9 = vpop.f32.mrf.mxu0 }
 0x65b   :  { %v4832_v20 = vmul.f32 -1.442695, %v2740_v27  ;;  %v2741_v15 = vadd.f32 %v2694_v37, %v6762_v29  ;;  %v4834_v33 = vmul.f32 -1.442695, %v2742_v48  ;;  %v2743_v21 = vadd.f32 %v2735_v9, %v6764_v30 }
 0x65c   :  { %v2696_v31 = vpop.f32.mrf.mxu1  ;;  %v2737_v32 = vpop.f32.mrf.mxu0 }
 0x65d   :  { %6058 = vpow2.f32 %v4832_v20  ;;  %v4833_v25 = vmul.f32 -1.442695, %v2741_v15 }
 0x65e   :  { %v2697_v34 = vpop.f32.mrf.mxu1  ;;  %v2738_v13 = vpop.f32.mrf.mxu0 }
 0x65f   :  { %6060 = vpow2.f32 %v4833_v25 }
 0x660   :  { %6062 = vpow2.f32 %v4834_v33 }
 0x66a   :  { %v6059_v35 = vpop.eup %6058 }
 0x66b   :  { %v2753_v12 = vadd.f32 1.0, %v6059_v35  ;;  %v6146_v35 = vld [vmem:[%s7827_s3 + $0xe0] ss:$16 sps:$4 sm:$0xff]  }
 0x66c   :  { %v6061_v18 = vpop.eup %6060 }
 0x66d   :  { %6064 = vrcp.f32 %v2753_v12  ;;  %v2754_v16 = vadd.f32 1.0, %v6061_v18  ;;  %v6063_v8 = vpop.eup %6062  ;;  %v6148_v12 = vld [vmem:[%s7827_s3 + $0xc4] ss:$16 sps:$4 sm:$0xff]   ;;  %v6149_v18 = vld [vmem:[%s7827_s3 + $0xcc] ss:$16 sps:$4 sm:$0xff]  }
 0x66e   :  { %6066 = vtanh.f32 %v2743_v21  ;;  %v2755_v37 = vadd.f32 1.0, %v6063_v8  ;;  %v6147_v21 = vld [vmem:[%s7827_s3 + $0xe8] ss:$16 sps:$4 sm:$0xff]  }
 0x66f   :  { %6068 = vrcp.f32 %v2754_v16  ;;  %v6150_v16 = vld [vmem:[%s7827_s3 + $0xc0] ss:$16 sps:$4 sm:$0xff]   ;;  %v6151_v8 = vld [vmem:[%s7827_s3 + $0xc8] ss:$16 sps:$4 sm:$0xff]  }
 0x670   :  { %6070 = vrcp.f32 %v2755_v37  ;;  %v6157_v37 = vld [vmem:[%s7827_s3 + $0x8c] ss:$16 sps:$4 sm:$0xff]  }
 0x67a   :  { %v6065_v14 = vpop.eup %6064 }
 0x67b   :  { %v6067_v40 = vpop.eup %6066 }
 0x67c   :  { %v6069_v27 = vpop.eup %6068  ;;  %v2767_v26 = vmul.f32 %v6067_v40, %v6065_v14  ;;  %v6152_v14 = vld [vmem:[%s7827_s3 + $0xa4] ss:$16 sps:$4 sm:$0xff]   ;;  %v6153_v40 = vld [vmem:[%s7827_s3 + $0xac] ss:$16 sps:$4 sm:$0xff]  }
 0x67d   :  { %v2766_v20 = vmul.f32 %v6069_v27, %v2764_v49  ;;  %v6071_v9 = vpop.eup %6070  ;;  %v6155_v49 = vld [vmem:[%s7827_s3 + $0xa8] ss:$16 sps:$4 sm:$0xff]   ;;  %v6156_v27 = vld [vmem:[%s7827_s3 + $0x84] ss:$16 sps:$4 sm:$0xff]  }
 0x67f   :  { %v6972_v15 = vadd.f32 %v2767_v26, %v2766_v20  ;;  %v6158_v20 = vld [vmem:[%s7827_s3 + $0x80] ss:$16 sps:$4 sm:$0xff]   ;;  %v6159_v26 = vld [vmem:[%s7827_s3 + $0x88] ss:$16 sps:$4 sm:$0xff]  }
 0x681   :  { %6072 = vtanh.f32 %v6972_v15 }
 0x68e   :  { %v6073_v31 = vpop.eup %6072 }
 0x68f   :  { %v6975_v32 = vmul.f32 %v6073_v31, %v6071_v9  ;;  %v6161_v9 = vld [vmem:[%s7827_s3 + $0x6c] ss:$16 sps:$4 sm:$0xff]   ;;  %v6162_v31 = vld [vmem:[%s7827_s3 + $0x60] ss:$16 sps:$4 sm:$0xff]  }
 0x691   :  { %v2771_v25 = vpack.c.bf16 %v6975_v32, %v6975_v32 }
 0x693   :  { %2805 = vmatmul.mubr.bf16.vlgmr.msra.gmra.mxu1 %v2771_v25  ;;  %2846 = vmatmul.mubr.bf16.vlgmr.msra.gmra.mxu0 %v2771_v25  ;;  %v6163_v25 = vld [vmem:[%s7827_s3 + $0x68] ss:$16 sps:$4 sm:$0xff]  }
 0x694   :  { %2902 = vmatpush1.bf16.msra.mxu1 %v6538_v38  ;;  %2943 = vmatpush1.bf16.msra.mxu0 %v6543_v39 }
 0x695   :  { %2903 = vmatprep.subr.bf16.mxu1 %v6548_v41  ;;  %2944 = vmatprep.subr.bf16.mxu0 %v6553_v43 }
 0x696   :  { %2933 = vmatprep.mubr.bf16.mxu1 %v6223_v28  ;;  %2974 = vmatprep.mubr.bf16.mxu0 %v6223_v28 }
 0x698   :  { %2904 = vmatpush1.bf16.msra.mxu1 %v6560_v44  ;;  %2945 = vmatpush1.bf16.msra.mxu0 %v6565_v47 }
 0x699   :  { %2905 = vmatprep.subr.bf16.mxu1 %v6572_v51  ;;  %2946 = vmatprep.subr.bf16.mxu0 %v6577_v52 }
 0x69c   :  { %2906 = vmatpush1.bf16.msra.mxu1 %v6586_v55  ;;  %2947 = vmatpush1.bf16.msra.mxu0 %v6591_v56 }
 0x69d   :  { %2907 = vmatprep.subr.bf16.mxu1 %v6598_v42  ;;  %2948 = vmatprep.subr.bf16.mxu0 %v6603_v57 }
 0x6a0   :  { %2908 = vmatpush1.bf16.msra.mxu1 %v6610_v50  ;;  %2949 = vmatpush1.bf16.msra.mxu0 %v6615_v53 }
 0x6a1   :  { %2909 = vmatprep.subr.bf16.mxu1 %v6622_v54  ;;  %2950 = vmatprep.subr.bf16.mxu0 %v6627_v61 }
 0x6a4   :  { %2910 = vmatpush1.bf16.msra.mxu1 %v6634_v45  ;;  %2951 = vmatpush1.bf16.msra.mxu0 %v6639_v46 }
 0x6a5   :  { %2911 = vmatprep.subr.bf16.mxu1 %v6646_v0  ;;  %2952 = vmatprep.subr.bf16.mxu0 %v6651_v59 }
 0x6a8   :  { %2912 = vmatpush1.bf16.msra.mxu1 %v6658_v60  ;;  %2953 = vmatpush1.bf16.msra.mxu0 %v6663_v62 }
 0x6a9   :  { %2913 = vmatprep.subr.bf16.mxu1 %v6670_v63  ;;  %2954 = vmatprep.subr.bf16.mxu0 %v6675_v7 }
 0x6ac   :  { %2914 = vmatpush1.bf16.msra.mxu1 %v6682_v11  ;;  %2955 = vmatpush1.bf16.msra.mxu0 %v6687_v17 }
 0x6ad   :  { %2915 = vmatprep.subr.bf16.mxu1 %v6694_v1  ;;  %2956 = vmatprep.subr.bf16.mxu0 %v6699_v2  ;;  %v2890_v1 = vrot.slane %v6972_v15, 6  ;;  %v6160_v15 = vld [vmem:[%s7827_s3 + $0x64] ss:$16 sps:$4 sm:$0xff]  }
 0x6b0   :  { %2916 = vmatpush1.bf16.msra.mxu1 %v6706_v3  ;;  %2957 = vmatpush1.bf16.msra.mxu0 %v6711_v4 }
 0x6b1   :  { %3030 = vmatprep.subr.bf16.mxu1 %v6958_v58  ;;  %3071 = vmatprep.subr.bf16.mxu0 %v6964_v19 }
 0x753   :  { %v2806_v38 = vpop.f32.mrf.mxu1  ;;  %v2847_v39 = vpop.f32.mrf.mxu0 }
 0x754   :  { %v2858_v41 = vrot.slane %v2806_v38, 6  ;;  %v2860_v54 = vrot.slane %v2847_v39, 6  ;;  %v6164_v38 = vld [vmem:[%s7827_s3 + $0x44] ss:$16 sps:$4 sm:$0xff]   ;;  %v6165_v39 = vld [vmem:[%s7827_s3 + $0x4c] ss:$16 sps:$4 sm:$0xff]  }
 0x755   :  { %v2808_v43 = vpop.f32.mrf.mxu1  ;;  %v2849_v44 = vpop.f32.mrf.mxu0 }
 0x756   :  { %v2866_v47 = vadd.f32 %v2858_v41, %v6758_v22  ;;  %v2859_v51 = vrot.slane %v2808_v43, 6  ;;  %v2868_v61 = vadd.f32 %v2860_v54, %v6760_v23  ;;  %v2861_v45 = vrot.slane %v2849_v44, 6  ;;  %v6166_v41 = vld [vmem:[%s7827_s3 + $0x40] ss:$16 sps:$4 sm:$0xff]   ;;  %v6167_v43 = vld [vmem:[%s7827_s3 + $0x48] ss:$16 sps:$4 sm:$0xff]  }
 0x757   :  { %v2810_v52 = vpop.f32.mrf.mxu1  ;;  %v2851_v55 = vpop.f32.mrf.mxu0  ;;  %v6168_v44 = vld [vmem:[%s7827_s3 + $0x24] ss:$16 sps:$4 sm:$0xff]  }
 0x758   :  { %v4835_v56 = vmul.f32 -1.442695, %v2866_v47  ;;  %v2867_v42 = vadd.f32 %v2859_v51, %v6762_v29  ;;  %v4837_v46 = vmul.f32 -1.442695, %v2868_v61  ;;  %v2869_v59 = vadd.f32 %v2861_v45, %v6764_v30  ;;  %v6169_v47 = vld [vmem:[%s7827_s3 + $0x2c] ss:$16 sps:$4 sm:$0xff]  }
 0x759   :  { %v2811_v57 = vpop.f32.mrf.mxu1  ;;  %v2852_v50 = vpop.f32.mrf.mxu0  ;;  %v6170_v51 = vld [vmem:[%s7827_s3 + $0x20] ss:$16 sps:$4 sm:$0xff]   ;;  %v6171_v52 = vld [vmem:[%s7827_s3 + $0x28] ss:$16 sps:$4 sm:$0xff]   ;;  %v6172_v55 = vld [vmem:[%s7827_s3 + $0x4] ss:$16 sps:$4 sm:$0xff]  }
 0x75a   :  { %6074 = vpow2.f32 %v4835_v56  ;;  %v4836_v53 = vmul.f32 -1.442695, %v2867_v42  ;;  %v6173_v56 = vld [vmem:[%s7827_s3 + $0xc] ss:$16 sps:$4 sm:$0xff]   ;;  %v6174_v42 = vld [vmem:[%s7827_s3] ss:$16 sps:$4 sm:$0xff]  }
 0x75b   :  { %v6175_v57 = vld [vmem:[%s7827_s3 + $0x8] ss:$16 sps:$4 sm:$0xff]   ;;  %v6224_v50 = vmov 0.0  }
 0x75c   :  { %6076 = vpow2.f32 %v4836_v53 }
 0x75d   :  { %6078 = vpow2.f32 %v4837_v46 }
 0x767   :  { %v6075_v0 = vpop.eup %6074 }
 0x768   :  { %v2879_v60 = vadd.f32 1.0, %v6075_v0 }
 0x769   :  { %v6077_v62 = vpop.eup %6076 }
 0x76a   :  { %6080 = vrcp.f32 %v2879_v60  ;;  %v2880_v63 = vadd.f32 1.0, %v6077_v62  ;;  %v6079_v7 = vpop.eup %6078 }
 0x76b   :  { %6082 = vtanh.f32 %v2869_v59  ;;  %v2881_v3 = vadd.f32 1.0, %v6079_v7 }
 0x76c   :  { %6084 = vrcp.f32 %v2880_v63 }
 0x76d   :  { %6086 = vrcp.f32 %v2881_v3 }
 0x777   :  { %v6081_v11 = vpop.eup %6080 }
 0x778   :  { %v6083_v17 = vpop.eup %6082 }
 0x779   :  { %v6085_v2 = vpop.eup %6084  ;;  %v2893_v6 = vmul.f32 %v6083_v17, %v6081_v11 }
 0x77a   :  { %v2892_v4 = vmul.f32 %v6085_v2, %v2890_v1  ;;  %v6087_v19 = vpop.eup %6086 }
 0x77c   :  { %v7018_v58 = vadd.f32 %v2893_v6, %v2892_v4 }
 0x77e   :  { %6088 = vtanh.f32 %v7018_v58 }
 0x78b   :  { %v6089_v34 = vpop.eup %6088 }
 0x78c   :  { %v7021_v13 = vmul.f32 %v6089_v34, %v6087_v19 }
 0x78e   :  { %v2897_v48 = vpack.c.bf16 %v7021_v13, %v7021_v13 }
 0x790   :  { %v2899_v33 = vrot.slane %v2897_v48, 1 }
 0x792   :  { %2934 = vmatmul.mubr.bf16.vlgmr.msra.gmra.mxu1 %v2899_v33  ;;  %2975 = vmatmul.mubr.bf16.vlgmr.msra.gmra.mxu0 %v2899_v33 }
 0x793   :  { %3031 = vmatpush1.bf16.msra.mxu1 %v6146_v35  ;;  %3072 = vmatpush1.bf16.msra.mxu0 %v6147_v21 }
 0x794   :  { %3032 = vmatprep.subr.bf16.mxu1 %v6148_v12  ;;  %3073 = vmatprep.subr.bf16.mxu0 %v6149_v18 }
 0x795   :  { %3062 = vmatprep.mubr.bf16.mxu1 %v6223_v28  ;;  %3103 = vmatprep.mubr.bf16.mxu0 %v6223_v28  ;;  %v6154_v28 = vld [vmem:[%s7827_s3 + $0xa0] ss:$16 sps:$4 sm:$0xff]  }
 0x797   :  { %3033 = vmatpush1.bf16.msra.mxu1 %v6150_v16  ;;  %3074 = vmatpush1.bf16.msra.mxu0 %v6151_v8  ;;  %v3019_v16 = vrot.slane %v7018_v58, 6  ;;  %v7134_v58 = vld [vmem:[%s7829_s5 + $0x78] sm:$0xff] }
 0x798   :  { %3034 = vmatprep.subr.bf16.mxu1 %v6152_v14  ;;  %3075 = vmatprep.subr.bf16.mxu0 %v6153_v40 }
 0x79b   :  { %3035 = vmatpush1.bf16.msra.mxu1 %v6154_v28  ;;  %3076 = vmatpush1.bf16.msra.mxu0 %v6155_v49 }
 0x79c   :  { %3036 = vmatprep.subr.bf16.mxu1 %v6156_v27  ;;  %3077 = vmatprep.subr.bf16.mxu0 %v6157_v37 }
 0x79f   :  { %3037 = vmatpush1.bf16.msra.mxu1 %v6158_v20  ;;  %3078 = vmatpush1.bf16.msra.mxu0 %v6159_v26 }
 0x7a0   :  { %3038 = vmatprep.subr.bf16.mxu1 %v6160_v15  ;;  %3079 = vmatprep.subr.bf16.mxu0 %v6161_v9  ;;  %v7139_v9 = vld [vmem:[%s7829_s5 + $0x70] sm:$0xff] }
 0x7a3   :  { %3039 = vmatpush1.bf16.msra.mxu1 %v6162_v31  ;;  %3080 = vmatpush1.bf16.msra.mxu0 %v6163_v25  ;;  %v7148_v31 = vld [vmem:[%s7829_s5 + $0x68] sm:$0xff]  ;;  %v7157_v25 = vld [vmem:[%s7829_s5 + $0x60] sm:$0xff] }
 0x7a4   :  { %3040 = vmatprep.subr.bf16.mxu1 %v6164_v38  ;;  %3081 = vmatprep.subr.bf16.mxu0 %v6165_v39  ;;  %v7164_v38 = vld [vmem:[%s7829_s5 + $0x58] sm:$0xff]  ;;  %v7171_v39 = vld [vmem:[%s7829_s5 + $0x50] sm:$0xff] }
 0x7a7   :  { %3041 = vmatpush1.bf16.msra.mxu1 %v6166_v41  ;;  %3082 = vmatpush1.bf16.msra.mxu0 %v6167_v43  ;;  %v7178_v41 = vld [vmem:[%s7829_s5 + $0x48] sm:$0xff]  ;;  %v7185_v43 = vld [vmem:[%s7829_s5 + $0x40] sm:$0xff] }
 0x7a8   :  { %3042 = vmatprep.subr.bf16.mxu1 %v6168_v44  ;;  %3083 = vmatprep.subr.bf16.mxu0 %v6169_v47  ;;  %v7192_v44 = vld [vmem:[%s7829_s5 + $0x38] sm:$0xff]  ;;  %v7199_v47 = vld [vmem:[%s7829_s5 + $0x30] sm:$0xff] }
 0x7ab   :  { %3043 = vmatpush1.bf16.msra.mxu1 %v6170_v51  ;;  %3084 = vmatpush1.bf16.msra.mxu0 %v6171_v52  ;;  %v7206_v51 = vld [vmem:[%s7829_s5 + $0x28] sm:$0xff]  ;;  %v7213_v52 = vld [vmem:[%s7829_s5 + $0x20] sm:$0xff] }
 0x7ac   :  { %3044 = vmatprep.subr.bf16.mxu1 %v6172_v55  ;;  %3085 = vmatprep.subr.bf16.mxu0 %v6173_v56  ;;  %v7220_v55 = vld [vmem:[%s7829_s5 + $0x18] sm:$0xff]  ;;  %v7227_v56 = vld [vmem:[%s7829_s5 + $0x10] sm:$0xff] }
 0x7af   :  { %3045 = vmatpush1.bf16.msra.mxu1 %v6174_v42  ;;  %3086 = vmatpush1.bf16.msra.mxu0 %v6175_v57  ;;  %v7234_v42 = vld [vmem:[%s7829_s5 + $0x8] sm:$0xff]  ;;  %v7241_v57 = vld [vmem:[%s7829_s5] sm:$0xff] }
 0x7b0   :  { %5278 = vmatprep.subr.mxu1 %v6224_v50  ;;  %5367 = vmatprep.subr.mxu0 %v6224_v50 }
 0x852   :  { %v2935_v53 = vpop.f32.mrf.mxu1  ;;  %v2976_v54 = vpop.f32.mrf.mxu0 }
 0x853   :  { %v2987_v61 = vrot.slane %v2935_v53, 4  ;;  %v2989_v2 = vrot.slane %v2976_v54, 4  ;;  %v7253_v53 = vld [vmem:[%s7831_s7 + $0x38] sm:$0xff]  ;;  %v7261_v54 = vld [vmem:[%s7831_s7 + $0x30] sm:$0xff] }
 0x854   :  { %v2937_v45 = vpop.f32.mrf.mxu1  ;;  %v2978_v46 = vpop.f32.mrf.mxu0 }
 0x855   :  { %v2995_v0 = vadd.f32 %v2987_v61, %v6758_v22  ;;  %v2988_v59 = vrot.slane %v2937_v45, 4  ;;  %v2997_v3 = vadd.f32 %v2989_v2, %v6760_v23  ;;  %v2990_v4 = vrot.slane %v2978_v46, 4  ;;  %v7270_v61 = vld [vmem:[%s7831_s7 + $0x28] sm:$0xff]  ;;  %v7279_v45 = vld [vmem:[%s7831_s7 + $0x20] sm:$0xff]  ;;  %v7288_v46 = vld [vmem:[%s7831_s7 + $0x18] sm:$0xff] }
 0x856   :  { %v2939_v60 = vpop.f32.mrf.mxu1  ;;  %v2980_v62 = vpop.f32.mrf.mxu0 }
 0x857   :  { %v4838_v63 = vmul.f32 -1.442695, %v2995_v0  ;;  %v2996_v7 = vadd.f32 %v2988_v59, %v6762_v29  ;;  %v4840_v6 = vmul.f32 -1.442695, %v2997_v3  ;;  %v2998_v34 = vadd.f32 %v2990_v4, %v6764_v30  ;;  %v7297_v0 = vld [vmem:[%s7831_s7 + $0x10] sm:$0xff]  ;;  %v7306_v59 = vld [vmem:[%s7831_s7 + $0x8] sm:$0xff] }
 0x858   :  { %v2940_v11 = vpop.f32.mrf.mxu1  ;;  %v2981_v17 = vpop.f32.mrf.mxu0  ;;  %v7315_v60 = vld [vmem:[%s7831_s7] sm:$0xff] }
 0x859   :  { %6090 = vpow2.f32 %v4838_v63  ;;  %v4839_v1 = vmul.f32 -1.442695, %v2996_v7 }
 0x85b   :  { %6092 = vpow2.f32 %v4839_v1 }
 0x85c   :  { %6094 = vpow2.f32 %v4840_v6 }
 0x866   :  { %v6091_v19 = vpop.eup %6090 }
 0x867   :  { %v3008_v48 = vadd.f32 1.0, %v6091_v19 }
 0x868   :  { %v6093_v33 = vpop.eup %6092 }
 0x869   :  { %6096 = vrcp.f32 %v3008_v48  ;;  %v3009_v35 = vadd.f32 1.0, %v6093_v33  ;;  %v6095_v21 = vpop.eup %6094 }
 0x86a   :  { %6098 = vtanh.f32 %v2998_v34  ;;  %v3010_v14 = vadd.f32 1.0, %v6095_v21 }
 0x86b   :  { %6100 = vrcp.f32 %v3009_v35 }
 0x86c   :  { %6102 = vrcp.f32 %v3010_v14 }
 0x876   :  { %v6097_v12 = vpop.eup %6096 }
 0x877   :  { %v6099_v18 = vpop.eup %6098 }
 0x878   :  { %v6101_v8 = vpop.eup %6100  ;;  %v3022_v28 = vmul.f32 %v6099_v18, %v6097_v12 }
 0x879   :  { %v3021_v40 = vmul.f32 %v6101_v8, %v3019_v16  ;;  %v6103_v27 = vpop.eup %6102 }
 0x87b   :  { %v7124_v49 = vadd.f32 %v3022_v28, %v3021_v40 }
 0x87d   :  { %6104 = vtanh.f32 %v7124_v49 }
 0x88a   :  { %v6105_v37 = vpop.eup %6104 }
 0x88b   :  { %v7127_v20 = vmul.f32 %v6105_v37, %v6103_v27 }
 0x88d   :  { %v3026_v26 = vpack.c.bf16 %v7127_v20, %v7127_v20 }
 0x88f   :  { %v3028_v15 = vrot.slane %v3026_v26, 2 }
 0x891   :  { %3063 = vmatmul.mubr.bf16.vlgmr.msra.gmra.mxu1 %v3028_v15  ;;  %3104 = vmatmul.mubr.bf16.vlgmr.msra.gmra.mxu0 %v3028_v15 }
 0x892   :  { %5279 = vmatpush3.msra.mxu1 %v7134_v58  ;;  %5310 = vmatprep.mubr.msk.f32.mxu1 %vm6225_vm0, %v6224_v50 }
 0x893   :  { %5280 = vmatprep.subr.mxu1 %v6224_v50  ;;  %5383 = vmatprep.mubr.msk.f32.mxu0 %vm6225_vm0, %v6224_v50 }
 0x894   :  { %5281 = vmatpush3.msra.mxu1 %v7139_v9  ;;  %5368 = vmatpush3.msra.mxu0 %v7253_v53 }
 0x895   :  { %5282 = vmatprep.subr.mxu1 %v6224_v50  ;;  %5369 = vmatprep.subr.mxu0 %v6224_v50 }
 0x896   :  { %5283 = vmatpush3.msra.mxu1 %v7148_v31  ;;  %5370 = vmatpush3.msra.mxu0 %v7261_v54 }
 0x897   :  { %5284 = vmatprep.subr.mxu1 %v6224_v50  ;;  %5371 = vmatprep.subr.mxu0 %v6224_v50 }
 0x898   :  { %5285 = vmatpush3.msra.mxu1 %v7157_v25  ;;  %5372 = vmatpush3.msra.mxu0 %v7270_v61 }
 0x899   :  { %5286 = vmatprep.subr.mxu1 %v6224_v50  ;;  %5373 = vmatprep.subr.mxu0 %v6224_v50 }
 0x89a   :  { %5287 = vmatpush3.msra.mxu1 %v7164_v38  ;;  %5374 = vmatpush3.msra.mxu0 %v7279_v45 }
 0x89b   :  { %5288 = vmatprep.subr.mxu1 %v6224_v50  ;;  %5375 = vmatprep.subr.mxu0 %v6224_v50 }
 0x89c   :  { %5289 = vmatpush3.msra.mxu1 %v7171_v39  ;;  %5376 = vmatpush3.msra.mxu0 %v7288_v46 }
 0x89d   :  { %5290 = vmatprep.subr.mxu1 %v6224_v50  ;;  %5377 = vmatprep.subr.mxu0 %v6224_v50 }
 0x89e   :  { %5291 = vmatpush3.msra.mxu1 %v7178_v41  ;;  %5378 = vmatpush3.msra.mxu0 %v7297_v0 }
 0x89f   :  { %5292 = vmatprep.subr.mxu1 %v6224_v50  ;;  %5379 = vmatprep.subr.mxu0 %v6224_v50 }
 0x8a0   :  { %5293 = vmatpush3.msra.mxu1 %v7185_v43  ;;  %5380 = vmatpush3.msra.mxu0 %v7306_v59 }
 0x8a1   :  { %5294 = vmatprep.subr.mxu1 %v6224_v50  ;;  %5381 = vmatprep.subr.mxu0 %v6224_v50 }
 0x8a2   :  { %5295 = vmatpush3.msra.mxu1 %v7192_v44  ;;  %5382 = vmatpush3.msra.mxu0 %v7315_v60 }
 0x8a3   :  { %5296 = vmatprep.subr.mxu1 %v6224_v50  ;;  %5386 = vmatprep.subr.mxu0 %v6224_v50 }
 0x8a4   :  { %5297 = vmatpush3.msra.mxu1 %v7199_v47 }
 0x8a5   :  { %5298 = vmatprep.subr.mxu1 %v6224_v50 }
 0x8a6   :  { %5299 = vmatpush3.msra.mxu1 %v7206_v51 }
 0x8a7   :  { %5300 = vmatprep.subr.mxu1 %v6224_v50 }
 0x8a8   :  { %5301 = vmatpush3.msra.mxu1 %v7213_v52 }
 0x8a9   :  { %5302 = vmatprep.subr.mxu1 %v6224_v50 }
 0x8aa   :  { %5303 = vmatpush3.msra.mxu1 %v7220_v55 }
 0x8ab   :  { %5304 = vmatprep.subr.mxu1 %v6224_v50 }
 0x8ac   :  { %5305 = vmatpush3.msra.mxu1 %v7227_v56 }
 0x8ad   :  { %5306 = vmatprep.subr.mxu1 %v6224_v50 }
 0x8ae   :  { %5307 = vmatpush3.msra.mxu1 %v7234_v42 }
 0x8af   :  { %5308 = vmatprep.subr.mxu1 %v6224_v50 }
 0x8b0   :  { %5309 = vmatpush3.msra.mxu1 %v7241_v57 }
 0x8b1   :  { %5311 = vmatmul.mubr.f32.vlgmr.msra.gmra.mxu1 %v6781_v5  ;;  %5313 = vmatprep.subr.mxu1 %v6224_v50 }
 0x8b2   :  { %5329 = vmatprep.mubr.msk.f32.mxu1 %vm6225_vm0, %v6224_v50  ;;  %5314 = vmatpush3.msra.mxu1 %v7253_v53 }
 0x8b3   :  { %5315 = vmatprep.subr.mxu1 %v6224_v50 }
 0x8b4   :  { %5316 = vmatpush3.msra.mxu1 %v7261_v54 }
 0x8b5   :  { %5317 = vmatprep.subr.mxu1 %v6224_v50 }
 0x8b6   :  { %5318 = vmatpush3.msra.mxu1 %v7270_v61 }
 0x8b7   :  { %5319 = vmatprep.subr.mxu1 %v6224_v50 }
 0x8b8   :  { %5320 = vmatpush3.msra.mxu1 %v7279_v45 }
 0x8b9   :  { %5321 = vmatprep.subr.mxu1 %v6224_v50 }
 0x8ba   :  { %5322 = vmatpush3.msra.mxu1 %v7288_v46 }
 0x8bb   :  { %5323 = vmatprep.subr.mxu1 %v6224_v50 }
 0x8bc   :  { %5324 = vmatpush3.msra.mxu1 %v7297_v0 }
 0x8bd   :  { %5325 = vmatprep.subr.mxu1 %v6224_v50 }
 0x8be   :  { %5326 = vmatpush3.msra.mxu1 %v7306_v59 }
 0x8bf   :  { %5327 = vmatprep.subr.mxu1 %v6224_v50 }
 0x8c0   :  { %5328 = vmatpush3.msra.mxu1 %v7315_v60 }
 0x8c1   :  { %5332 = vmatprep.subr.mxu1 %v6224_v50 }
 0x951   :  { %v3064_v62 = vpop.f32.mrf.mxu1  ;;  %v3105_v63 = vpop.f32.mrf.mxu0 }
 0x952   :  { %v3116_v7 = vrot.slane %v3064_v62, 2  ;;  %v3118_v35 = vrot.slane %v3105_v63, 2  ;;  %v3148_v62 = vrot.slane %v7124_v49, 6 }
 0x953   :  { %v3066_v11 = vpop.f32.mrf.mxu1  ;;  %v3107_v17 = vpop.f32.mrf.mxu0 }
 0x954   :  { %v3124_v1 = vadd.f32 %v3116_v7, %v6758_v22  ;;  %v3117_v2 = vrot.slane %v3066_v11, 2  ;;  %v3126_v21 = vadd.f32 %v3118_v35, %v6760_v23  ;;  %v3119_v12 = vrot.slane %v3107_v17, 2 }
 0x955   :  { %v3068_v3 = vpop.f32.mrf.mxu1  ;;  %v3109_v4 = vpop.f32.mrf.mxu0 }
 0x956   :  { %v4841_v6 = vmul.f32 -1.442695, %v3124_v1  ;;  %v3125_v19 = vadd.f32 %v3117_v2, %v6762_v29  ;;  %v4843_v18 = vmul.f32 -1.442695, %v3126_v21  ;;  %v3127_v16 = vadd.f32 %v3119_v12, %v6764_v30  ;;  %v7329_v29 = vld [vmem:[%s7830_s6] ss:$0 sm:$0xff] }
 0x957   :  { %v3069_v34 = vpop.f32.mrf.mxu1  ;;  %v3110_v48 = vpop.f32.mrf.mxu0  ;;  %v3339_v4 = vrot.slane %v6827_v36, 2  ;;  %v3486_v21 = vrot.slane %v6873_v24, 4  ;;  %v7444_v12 = vld [vmem:[#allocation2] ss:$0 sm:$0xff] }
 0x958   :  { %6106 = vpow2.f32 %v4841_v6  ;;  %v4842_v33 = vmul.f32 -1.442695, %v3125_v19 }
 0x95a   :  { %6108 = vpow2.f32 %v4842_v33 }
 0x95b   :  { %6110 = vpow2.f32 %v4843_v18 }
 0x95c   :  { %6112 = vtanh.f32 %v3127_v16 }
 0x965   :  { %v6107_v8 = vpop.eup %6106 }
 0x966   :  { %v3137_v22 = vadd.f32 1.0, %v6107_v8 }
 0x967   :  { %v6109_v14 = vpop.eup %6108 }
 0x968   :  { %6114 = vrcp.f32 %v3137_v22  ;;  %v3138_v40 = vadd.f32 1.0, %v6109_v14  ;;  %v6111_v27 = vpop.eup %6110 }
 0x969   :  { %v6113_v30 = vpop.eup %6112  ;;  %v3139_v11 = vadd.f32 1.0, %v6111_v27 }
 0x96a   :  { %6116 = vrcp.f32 %v3138_v40 }
 0x96b   :  { %6118 = vrcp.f32 %v3139_v11 }
 0x971   :  { %v3244_v28 = vpop.f32.mrf.mxu1 }
 0x972   :  { %v3245_v23 = vadd.f32 %v7329_v29, %v3244_v28 }
 0x973   :  { %v5312_v37 = vpop.f32.mrf.mxu1 }
 0x974   :  { %v3248_v26 = vmax.f32 %v3245_v23, 0.0  ;;  %v3633_v37 = vrot.slane %v6919_v10, 6 }
 0x975   :  { %v6115_v15 = vpop.eup %6114 }
 0x976   :  { %v3151_v63 = vmul.f32 %v6115_v15, %v6113_v30  ;;  %5330 = vmatmul.mubr.msk.f32.vlgmr.msra.gmra.mxu1 %vm3264_vm1, %v3248_v26 }
 0x977   :  { %v6117_v7 = vpop.eup %6116  ;;  %5333 = vmatpush3.msra.mxu1 %v7134_v58  ;;  %5364 = vmatprep.mubr.msk.f32.mxu1 %vm6225_vm0, %v6224_v50 }
 0x978   :  { %v3150_v17 = vmul.f32 %v6117_v7, %v3148_v62  ;;  %5334 = vmatprep.subr.mxu1 %v6224_v50  ;;  %v6119_v49 = vpop.eup %6118 }
 0x979   :  { %5335 = vmatpush3.msra.mxu1 %v7139_v9 }
 0x97a   :  { %v3152_v1 = vadd.f32 %v3151_v63, %v3150_v17  ;;  %5336 = vmatprep.subr.mxu1 %v6224_v50 }
 0x97b   :  { %5337 = vmatpush3.msra.mxu1 %v7148_v31 }
 0x97c   :  { %6120 = vtanh.f32 %v3152_v1  ;;  %5338 = vmatprep.subr.mxu1 %v6224_v50 }
 0x97d   :  { %5339 = vmatpush3.msra.mxu1 %v7157_v25 }
 0x97e   :  { %5340 = vmatprep.subr.mxu1 %v6224_v50 }
 0x97f   :  { %5341 = vmatpush3.msra.mxu1 %v7164_v38 }
 0x980   :  { %5342 = vmatprep.subr.mxu1 %v6224_v50 }
 0x981   :  { %5343 = vmatpush3.msra.mxu1 %v7171_v39 }
 0x982   :  { %5344 = vmatprep.subr.mxu1 %v6224_v50 }
 0x983   :  { %5345 = vmatpush3.msra.mxu1 %v7178_v41 }
 0x984   :  { %5346 = vmatprep.subr.mxu1 %v6224_v50 }
 0x985   :  { %5347 = vmatpush3.msra.mxu1 %v7185_v43 }
 0x986   :  { %5348 = vmatprep.subr.mxu1 %v6224_v50 }
 0x987   :  { %5349 = vmatpush3.msra.mxu1 %v7192_v44 }
 0x988   :  { %5350 = vmatprep.subr.mxu1 %v6224_v50 }
 0x989   :  { %v6121_v2 = vpop.eup %6120  ;;  %5351 = vmatpush3.msra.mxu1 %v7199_v47 }
 0x98a   :  { %5352 = vmatprep.subr.mxu1 %v6224_v50  ;;  %v7356_v3 = vmul.f32 %v6121_v2, %v6119_v49 }
 0x98b   :  { %5353 = vmatpush3.msra.mxu1 %v7206_v51 }
 0x98c   :  { %5354 = vmatprep.subr.mxu1 %v6224_v50 }
 0x98d   :  { %5355 = vmatpush3.msra.mxu1 %v7213_v52 }
 0x98e   :  { %5356 = vmatprep.subr.mxu1 %v6224_v50 }
 0x98f   :  { %5357 = vmatpush3.msra.mxu1 %v7220_v55 }
 0x990   :  { %5358 = vmatprep.subr.mxu1 %v6224_v50 }
 0x991   :  { %5359 = vmatpush3.msra.mxu1 %v7227_v56 }
 0x992   :  { %5360 = vmatprep.subr.mxu1 %v6224_v50 }
 0x993   :  { %5361 = vmatpush3.msra.mxu1 %v7234_v42 }
 0x994   :  { %5362 = vmatprep.subr.mxu1 %v6224_v50 }
 0x995   :  { %5363 = vmatpush3.msra.mxu1 %v7241_v57 }
 0x996   :  { %5365 = vmatmul.mubr.f32.vlgmr.msra.gmra.mxu1 %v3339_v4  ;;  %5421 = vmatprep.subr.mxu1 %v6224_v50 }
 0x997   :  { %5422 = vmatpush3.msra.mxu1 %v7253_v53  ;;  %5437 = vmatprep.mubr.msk.f32.mxu1 %vm6225_vm0, %v6224_v50 }
 0x998   :  { %5423 = vmatprep.subr.mxu1 %v6224_v50 }
 0x999   :  { %5424 = vmatpush3.msra.mxu1 %v7261_v54 }
 0x99a   :  { %5425 = vmatprep.subr.mxu1 %v6224_v50 }
 0x99b   :  { %5426 = vmatpush3.msra.mxu1 %v7270_v61 }
 0x99c   :  { %5427 = vmatprep.subr.mxu1 %v6224_v50 }
 0x99d   :  { %5428 = vmatpush3.msra.mxu1 %v7279_v45 }
 0x99e   :  { %5429 = vmatprep.subr.mxu1 %v6224_v50 }
 0x99f   :  { %5430 = vmatpush3.msra.mxu1 %v7288_v46 }
 0x9a0   :  { %5431 = vmatprep.subr.mxu1 %v6224_v50 }
 0x9a1   :  { %5432 = vmatpush3.msra.mxu1 %v7297_v0 }
 0x9a2   :  { %5433 = vmatprep.subr.mxu1 %v6224_v50 }
 0x9a3   :  { %5434 = vmatpush3.msra.mxu1 %v7306_v59 }
 0x9a4   :  { %5435 = vmatprep.subr.mxu1 %v6224_v50 }
 0x9a5   :  { %5436 = vmatpush3.msra.mxu1 %v7315_v60 }
 0x9a6   :  { %5440 = vmatprep.subr.mxu1 %v6224_v50 }
 0xa36   :  { %v3334_v6 = vpop.f32.mrf.mxu1 }
 0xa37   :  { %v7447_v16 = vadd.f32 %v7444_v12, %v3334_v6 }
 0xa38   :  { %v5331_v19 = vpop.f32.mrf.mxu1 }
 0xa56   :  { %v3407_v34 = vpop.f32.mrf.mxu1 }
 0xa57   :  { %v3408_v48 = vadd.f32 %v7329_v29, %v3407_v34 }
 0xa58   :  { %v5366_v33 = vpop.f32.mrf.mxu1 }
 0xa59   :  { %v3411_v35 = vmax.f32 %v3408_v48, 0.0  ;;  %v3924_v33 = vrot.slane %v7021_v13, 2 }
 0xa5b   :  { %5384 = vmatmul.mubr.msk.f32.vlgmr.msra.gmra.mxu0 %vm3264_vm1, %v3411_v35 }
 0xa5c   :  { %5387 = vmatpush3.msra.mxu0 %v7134_v58  ;;  %5418 = vmatprep.mubr.msk.f32.mxu0 %vm6225_vm0, %v6224_v50 }
 0xa5d   :  { %5388 = vmatprep.subr.mxu0 %v6224_v50 }
 0xa5e   :  { %5389 = vmatpush3.msra.mxu0 %v7139_v9 }
 0xa5f   :  { %5390 = vmatprep.subr.mxu0 %v6224_v50 }
 0xa60   :  { %5391 = vmatpush3.msra.mxu0 %v7148_v31 }
 0xa61   :  { %5392 = vmatprep.subr.mxu0 %v6224_v50 }
 0xa62   :  { %5393 = vmatpush3.msra.mxu0 %v7157_v25 }
 0xa63   :  { %5394 = vmatprep.subr.mxu0 %v6224_v50 }
 0xa64   :  { %5395 = vmatpush3.msra.mxu0 %v7164_v38 }
 0xa65   :  { %5396 = vmatprep.subr.mxu0 %v6224_v50 }
 0xa66   :  { %5397 = vmatpush3.msra.mxu0 %v7171_v39 }
 0xa67   :  { %5398 = vmatprep.subr.mxu0 %v6224_v50 }
 0xa68   :  { %5399 = vmatpush3.msra.mxu0 %v7178_v41 }
 0xa69   :  { %5400 = vmatprep.subr.mxu0 %v6224_v50 }
 0xa6a   :  { %5401 = vmatpush3.msra.mxu0 %v7185_v43 }
 0xa6b   :  { %5402 = vmatprep.subr.mxu0 %v6224_v50 }
 0xa6c   :  { %5403 = vmatpush3.msra.mxu0 %v7192_v44 }
 0xa6d   :  { %5404 = vmatprep.subr.mxu0 %v6224_v50 }
 0xa6e   :  { %5405 = vmatpush3.msra.mxu0 %v7199_v47 }
 0xa6f   :  { %5406 = vmatprep.subr.mxu0 %v6224_v50 }
 0xa70   :  { %5407 = vmatpush3.msra.mxu0 %v7206_v51 }
 0xa71   :  { %5408 = vmatprep.subr.mxu0 %v6224_v50 }
 0xa72   :  { %5409 = vmatpush3.msra.mxu0 %v7213_v52 }
 0xa73   :  { %5410 = vmatprep.subr.mxu0 %v6224_v50 }
 0xa74   :  { %5411 = vmatpush3.msra.mxu0 %v7220_v55 }
 0xa75   :  { %5412 = vmatprep.subr.mxu0 %v6224_v50 }
 0xa76   :  { %5413 = vmatpush3.msra.mxu0 %v7227_v56 }
 0xa77   :  { %5414 = vmatprep.subr.mxu0 %v6224_v50 }
 0xa78   :  { %5415 = vmatpush3.msra.mxu0 %v7234_v42 }
 0xa79   :  { %5416 = vmatprep.subr.mxu0 %v6224_v50 }
 0xa7a   :  { %5417 = vmatpush3.msra.mxu0 %v7241_v57 }
 0xa7b   :  { %5419 = vmatmul.mubr.f32.vlgmr.msra.gmra.mxu0 %v3486_v21  ;;  %5475 = vmatprep.subr.mxu0 %v6224_v50 }
 0xa7c   :  { %5476 = vmatpush3.msra.mxu0 %v7253_v53  ;;  %5491 = vmatprep.mubr.msk.f32.mxu0 %vm6225_vm0, %v6224_v50 }
 0xa7d   :  { %5477 = vmatprep.subr.mxu0 %v6224_v50 }
 0xa7e   :  { %5478 = vmatpush3.msra.mxu0 %v7261_v54 }
 0xa7f   :  { %5479 = vmatprep.subr.mxu0 %v6224_v50 }
 0xa80   :  { %5480 = vmatpush3.msra.mxu0 %v7270_v61 }
 0xa81   :  { %5481 = vmatprep.subr.mxu0 %v6224_v50 }
 0xa82   :  { %5482 = vmatpush3.msra.mxu0 %v7279_v45 }
 0xa83   :  { %5483 = vmatprep.subr.mxu0 %v6224_v50 }
 0xa84   :  { %5484 = vmatpush3.msra.mxu0 %v7288_v46 }
 0xa85   :  { %5485 = vmatprep.subr.mxu0 %v6224_v50 }
 0xa86   :  { %5486 = vmatpush3.msra.mxu0 %v7297_v0 }
 0xa87   :  { %5487 = vmatprep.subr.mxu0 %v6224_v50 }
 0xa88   :  { %5488 = vmatpush3.msra.mxu0 %v7306_v59 }
 0xa89   :  { %5489 = vmatprep.subr.mxu0 %v6224_v50 }
 0xa8a   :  { %5490 = vmatpush3.msra.mxu0 %v7315_v60 }
 0xa8b   :  { %5494 = vmatprep.subr.mxu0 %v6224_v50 }
 0xb1b   :  { %v3481_v18 = vpop.f32.mrf.mxu0 }
 0xb1c   :  { %v7450_v8 = vadd.f32 %v7444_v12, %v3481_v18 }
 0xb1d   :  { %v5385_v22 = vpop.f32.mrf.mxu0 }
 0xb1e   :  { %v4364_v14 = vmax.f32 %v7447_v16, %v7450_v8 }
 0xb3b   :  { %v3554_v40 = vpop.f32.mrf.mxu0 }
 0xb3c   :  { %v3555_v28 = vadd.f32 %v7329_v29, %v3554_v40 }
 0xb3d   :  { %v5420_v23 = vpop.f32.mrf.mxu0 }
 0xb3e   :  { %v3558_v27 = vmax.f32 %v3555_v28, 0.0 }
 0xb40   :  { %5438 = vmatmul.mubr.msk.f32.vlgmr.msra.gmra.mxu1 %vm3264_vm1, %v3558_v27  ;;  %v4071_v27 = vrot.slane %v7127_v20, 4 }
 0xb41   :  { %5441 = vmatpush3.msra.mxu1 %v7134_v58  ;;  %5472 = vmatprep.mubr.msk.f32.mxu1 %vm6225_vm0, %v6224_v50 }
 0xb42   :  { %5442 = vmatprep.subr.mxu1 %v6224_v50 }
 0xb43   :  { %5443 = vmatpush3.msra.mxu1 %v7139_v9 }
 0xb44   :  { %5444 = vmatprep.subr.mxu1 %v6224_v50 }
 0xb45   :  { %5445 = vmatpush3.msra.mxu1 %v7148_v31 }
 0xb46   :  { %5446 = vmatprep.subr.mxu1 %v6224_v50 }
 0xb47   :  { %5447 = vmatpush3.msra.mxu1 %v7157_v25 }
 0xb48   :  { %5448 = vmatprep.subr.mxu1 %v6224_v50 }
 0xb49   :  { %5449 = vmatpush3.msra.mxu1 %v7164_v38 }
 0xb4a   :  { %5450 = vmatprep.subr.mxu1 %v6224_v50 }
 0xb4b   :  { %5451 = vmatpush3.msra.mxu1 %v7171_v39 }
 0xb4c   :  { %5452 = vmatprep.subr.mxu1 %v6224_v50 }
 0xb4d   :  { %5453 = vmatpush3.msra.mxu1 %v7178_v41 }
 0xb4e   :  { %5454 = vmatprep.subr.mxu1 %v6224_v50 }
 0xb4f   :  { %5455 = vmatpush3.msra.mxu1 %v7185_v43 }
 0xb50   :  { %5456 = vmatprep.subr.mxu1 %v6224_v50 }
 0xb51   :  { %5457 = vmatpush3.msra.mxu1 %v7192_v44 }
 0xb52   :  { %5458 = vmatprep.subr.mxu1 %v6224_v50 }
 0xb53   :  { %5459 = vmatpush3.msra.mxu1 %v7199_v47 }
 0xb54   :  { %5460 = vmatprep.subr.mxu1 %v6224_v50 }
 0xb55   :  { %5461 = vmatpush3.msra.mxu1 %v7206_v51 }
 0xb56   :  { %5462 = vmatprep.subr.mxu1 %v6224_v50 }
 0xb57   :  { %5463 = vmatpush3.msra.mxu1 %v7213_v52 }
 0xb58   :  { %5464 = vmatprep.subr.mxu1 %v6224_v50 }
 0xb59   :  { %5465 = vmatpush3.msra.mxu1 %v7220_v55 }
 0xb5a   :  { %5466 = vmatprep.subr.mxu1 %v6224_v50 }
 0xb5b   :  { %5467 = vmatpush3.msra.mxu1 %v7227_v56 }
 0xb5c   :  { %5468 = vmatprep.subr.mxu1 %v6224_v50 }
 0xb5d   :  { %5469 = vmatpush3.msra.mxu1 %v7234_v42 }
 0xb5e   :  { %5470 = vmatprep.subr.mxu1 %v6224_v50 }
 0xb5f   :  { %5471 = vmatpush3.msra.mxu1 %v7241_v57 }
 0xb60   :  { %5473 = vmatmul.mubr.f32.vlgmr.msra.gmra.mxu1 %v3633_v37  ;;  %5529 = vmatprep.subr.mxu1 %v6224_v50 }
 0xb61   :  { %5530 = vmatpush3.msra.mxu1 %v7253_v53  ;;  %5545 = vmatprep.mubr.msk.f32.mxu1 %vm6225_vm0, %v6224_v50 }
 0xb62   :  { %5531 = vmatprep.subr.mxu1 %v6224_v50 }
 0xb63   :  { %5532 = vmatpush3.msra.mxu1 %v7261_v54 }
 0xb64   :  { %5533 = vmatprep.subr.mxu1 %v6224_v50 }
 0xb65   :  { %5534 = vmatpush3.msra.mxu1 %v7270_v61 }
 0xb66   :  { %5535 = vmatprep.subr.mxu1 %v6224_v50 }
 0xb67   :  { %5536 = vmatpush3.msra.mxu1 %v7279_v45 }
 0xb68   :  { %5537 = vmatprep.subr.mxu1 %v6224_v50 }
 0xb69   :  { %5538 = vmatpush3.msra.mxu1 %v7288_v46 }
 0xb6a   :  { %5539 = vmatprep.subr.mxu1 %v6224_v50 }
 0xb6b   :  { %5540 = vmatpush3.msra.mxu1 %v7297_v0 }
 0xb6c   :  { %5541 = vmatprep.subr.mxu1 %v6224_v50 }
 0xb6d   :  { %5542 = vmatpush3.msra.mxu1 %v7306_v59 }
 0xb6e   :  { %5543 = vmatprep.subr.mxu1 %v6224_v50 }
 0xb6f   :  { %5544 = vmatpush3.msra.mxu1 %v7315_v60 }
 0xb70   :  { %5548 = vmatprep.subr.mxu1 %v6224_v50 }
 0xc00   :  { %v3628_v30 = vpop.f32.mrf.mxu1 }
 0xc01   :  { %v7510_v26 = vadd.f32 %v7444_v12, %v3628_v30 }
 0xc02   :  { %v5439_v15 = vpop.f32.mrf.mxu1 }
 0xc03   :  { %v7513_v62 = vmax.f32 %v4364_v14, %v7510_v26 }
 0xc20   :  { %v3701_v63 = vpop.f32.mrf.mxu1 }
 0xc21   :  { %v3702_v7 = vadd.f32 %v7329_v29, %v3701_v63 }
 0xc22   :  { %v5474_v11 = vpop.f32.mrf.mxu1 }
 0xc23   :  { %v3705_v17 = vmax.f32 %v3702_v7, 0.0 }
 0xc25   :  { %5492 = vmatmul.mubr.msk.f32.vlgmr.msra.gmra.mxu0 %vm3264_vm1, %v3705_v17 }
 0xc26   :  { %5495 = vmatpush3.msra.mxu0 %v7134_v58  ;;  %5526 = vmatprep.mubr.msk.f32.mxu0 %vm6225_vm0, %v6224_v50 }
 0xc27   :  { %5496 = vmatprep.subr.mxu0 %v6224_v50 }
 0xc28   :  { %5497 = vmatpush3.msra.mxu0 %v7139_v9 }
 0xc29   :  { %5498 = vmatprep.subr.mxu0 %v6224_v50 }
 0xc2a   :  { %5499 = vmatpush3.msra.mxu0 %v7148_v31 }
 0xc2b   :  { %5500 = vmatprep.subr.mxu0 %v6224_v50 }
 0xc2c   :  { %5501 = vmatpush3.msra.mxu0 %v7157_v25 }
 0xc2d   :  { %5502 = vmatprep.subr.mxu0 %v6224_v50 }
 0xc2e   :  { %5503 = vmatpush3.msra.mxu0 %v7164_v38 }
 0xc2f   :  { %5504 = vmatprep.subr.mxu0 %v6224_v50 }
 0xc30   :  { %5505 = vmatpush3.msra.mxu0 %v7171_v39 }
 0xc31   :  { %5506 = vmatprep.subr.mxu0 %v6224_v50 }
 0xc32   :  { %5507 = vmatpush3.msra.mxu0 %v7178_v41 }
 0xc33   :  { %5508 = vmatprep.subr.mxu0 %v6224_v50 }
 0xc34   :  { %5509 = vmatpush3.msra.mxu0 %v7185_v43 }
 0xc35   :  { %5510 = vmatprep.subr.mxu0 %v6224_v50 }
 0xc36   :  { %5511 = vmatpush3.msra.mxu0 %v7192_v44 }
 0xc37   :  { %5512 = vmatprep.subr.mxu0 %v6224_v50 }
 0xc38   :  { %5513 = vmatpush3.msra.mxu0 %v7199_v47 }
 0xc39   :  { %5514 = vmatprep.subr.mxu0 %v6224_v50 }
 0xc3a   :  { %5515 = vmatpush3.msra.mxu0 %v7206_v51 }
 0xc3b   :  { %5516 = vmatprep.subr.mxu0 %v6224_v50 }
 0xc3c   :  { %5517 = vmatpush3.msra.mxu0 %v7213_v52 }
 0xc3d   :  { %5518 = vmatprep.subr.mxu0 %v6224_v50 }
 0xc3e   :  { %5519 = vmatpush3.msra.mxu0 %v7220_v55 }
 0xc3f   :  { %5520 = vmatprep.subr.mxu0 %v6224_v50 }
 0xc40   :  { %5521 = vmatpush3.msra.mxu0 %v7227_v56 }
 0xc41   :  { %5522 = vmatprep.subr.mxu0 %v6224_v50 }
 0xc42   :  { %5523 = vmatpush3.msra.mxu0 %v7234_v42 }
 0xc43   :  { %5524 = vmatprep.subr.mxu0 %v6224_v50 }
 0xc44   :  { %5525 = vmatpush3.msra.mxu0 %v7241_v57 }
 0xc45   :  { %5527 = vmatmul.mubr.f32.vlgmr.msra.gmra.mxu0 %v6975_v32  ;;  %5583 = vmatprep.subr.mxu0 %v6224_v50 }
 0xc46   :  { %5584 = vmatpush3.msra.mxu0 %v7253_v53  ;;  %5599 = vmatprep.mubr.msk.f32.mxu0 %vm6225_vm0, %v6224_v50 }
 0xc47   :  { %5585 = vmatprep.subr.mxu0 %v6224_v50 }
 0xc48   :  { %5586 = vmatpush3.msra.mxu0 %v7261_v54 }
 0xc49   :  { %5587 = vmatprep.subr.mxu0 %v6224_v50 }
 0xc4a   :  { %5588 = vmatpush3.msra.mxu0 %v7270_v61 }
 0xc4b   :  { %5589 = vmatprep.subr.mxu0 %v6224_v50 }
 0xc4c   :  { %5590 = vmatpush3.msra.mxu0 %v7279_v45 }
 0xc4d   :  { %5591 = vmatprep.subr.mxu0 %v6224_v50 }
 0xc4e   :  { %5592 = vmatpush3.msra.mxu0 %v7288_v46 }
 0xc4f   :  { %5593 = vmatprep.subr.mxu0 %v6224_v50 }
 0xc50   :  { %5594 = vmatpush3.msra.mxu0 %v7297_v0 }
 0xc51   :  { %5595 = vmatprep.subr.mxu0 %v6224_v50 }
 0xc52   :  { %5596 = vmatpush3.msra.mxu0 %v7306_v59 }
 0xc53   :  { %5597 = vmatprep.subr.mxu0 %v6224_v50 }
 0xc54   :  { %5598 = vmatpush3.msra.mxu0 %v7315_v60 }
 0xc55   :  { %5602 = vmatprep.subr.mxu0 %v6224_v50 }
 0xce5   :  { %v3775_v1 = vpop.f32.mrf.mxu0 }
 0xce6   :  { %v7571_v49 = vadd.f32 %v7444_v12, %v3775_v1 }
 0xce7   :  { %v5493_v2 = vpop.f32.mrf.mxu0 }
 0xce8   :  { %v4366_v4 = vmax.f32 %v7513_v62, %v7571_v49 }
 0xd05   :  { %v3845_v6 = vpop.f32.mrf.mxu0 }
 0xd06   :  { %v3846_v19 = vadd.f32 %v7329_v29, %v3845_v6 }
 0xd07   :  { %v5528_v34 = vpop.f32.mrf.mxu0 }
 0xd08   :  { %v3849_v48 = vmax.f32 %v3846_v19, 0.0 }
 0xd0a   :  { %5546 = vmatmul.mubr.msk.f32.vlgmr.msra.gmra.mxu1 %vm3264_vm1, %v3849_v48 }
 0xd0b   :  { %5549 = vmatpush3.msra.mxu1 %v7134_v58  ;;  %5580 = vmatprep.mubr.msk.f32.mxu1 %vm6225_vm0, %v6224_v50 }
 0xd0c   :  { %5550 = vmatprep.subr.mxu1 %v6224_v50 }
 0xd0d   :  { %5551 = vmatpush3.msra.mxu1 %v7139_v9 }
 0xd0e   :  { %5552 = vmatprep.subr.mxu1 %v6224_v50 }
 0xd0f   :  { %5553 = vmatpush3.msra.mxu1 %v7148_v31 }
 0xd10   :  { %5554 = vmatprep.subr.mxu1 %v6224_v50 }
 0xd11   :  { %5555 = vmatpush3.msra.mxu1 %v7157_v25 }
 0xd12   :  { %5556 = vmatprep.subr.mxu1 %v6224_v50 }
 0xd13   :  { %5557 = vmatpush3.msra.mxu1 %v7164_v38 }
 0xd14   :  { %5558 = vmatprep.subr.mxu1 %v6224_v50 }
 0xd15   :  { %5559 = vmatpush3.msra.mxu1 %v7171_v39 }
 0xd16   :  { %5560 = vmatprep.subr.mxu1 %v6224_v50 }
 0xd17   :  { %5561 = vmatpush3.msra.mxu1 %v7178_v41 }
 0xd18   :  { %5562 = vmatprep.subr.mxu1 %v6224_v50 }
 0xd19   :  { %5563 = vmatpush3.msra.mxu1 %v7185_v43 }
 0xd1a   :  { %5564 = vmatprep.subr.mxu1 %v6224_v50 }
 0xd1b   :  { %5565 = vmatpush3.msra.mxu1 %v7192_v44 }
 0xd1c   :  { %5566 = vmatprep.subr.mxu1 %v6224_v50 }
 0xd1d   :  { %5567 = vmatpush3.msra.mxu1 %v7199_v47 }
 0xd1e   :  { %5568 = vmatprep.subr.mxu1 %v6224_v50 }
 0xd1f   :  { %5569 = vmatpush3.msra.mxu1 %v7206_v51 }
 0xd20   :  { %5570 = vmatprep.subr.mxu1 %v6224_v50 }
 0xd21   :  { %5571 = vmatpush3.msra.mxu1 %v7213_v52 }
 0xd22   :  { %5572 = vmatprep.subr.mxu1 %v6224_v50 }
 0xd23   :  { %5573 = vmatpush3.msra.mxu1 %v7220_v55 }
 0xd24   :  { %5574 = vmatprep.subr.mxu1 %v6224_v50 }
 0xd25   :  { %5575 = vmatpush3.msra.mxu1 %v7227_v56 }
 0xd26   :  { %5576 = vmatprep.subr.mxu1 %v6224_v50 }
 0xd27   :  { %5577 = vmatpush3.msra.mxu1 %v7234_v42 }
 0xd28   :  { %5578 = vmatprep.subr.mxu1 %v6224_v50 }
 0xd29   :  { %5579 = vmatpush3.msra.mxu1 %v7241_v57 }
 0xd2a   :  { %5581 = vmatmul.mubr.f32.vlgmr.msra.gmra.mxu1 %v3924_v33  ;;  %5637 = vmatprep.subr.mxu1 %v6224_v50 }
 0xd2b   :  { %5638 = vmatpush3.msra.mxu1 %v7253_v53  ;;  %5653 = vmatprep.mubr.msk.f32.mxu1 %vm6225_vm0, %v6224_v50 }
 0xd2c   :  { %5639 = vmatprep.subr.mxu1 %v6224_v50 }
 0xd2d   :  { %5640 = vmatpush3.msra.mxu1 %v7261_v54 }
 0xd2e   :  { %5641 = vmatprep.subr.mxu1 %v6224_v50 }
 0xd2f   :  { %5642 = vmatpush3.msra.mxu1 %v7270_v61 }
 0xd30   :  { %5643 = vmatprep.subr.mxu1 %v6224_v50 }
 0xd31   :  { %5644 = vmatpush3.msra.mxu1 %v7279_v45 }
 0xd32   :  { %5645 = vmatprep.subr.mxu1 %v6224_v50 }
 0xd33   :  { %5646 = vmatpush3.msra.mxu1 %v7288_v46 }
 0xd34   :  { %5647 = vmatprep.subr.mxu1 %v6224_v50 }
 0xd35   :  { %5648 = vmatpush3.msra.mxu1 %v7297_v0 }
 0xd36   :  { %5649 = vmatprep.subr.mxu1 %v6224_v50 }
 0xd37   :  { %5650 = vmatpush3.msra.mxu1 %v7306_v59 }
 0xd38   :  { %5651 = vmatprep.subr.mxu1 %v6224_v50 }
 0xd39   :  { %5652 = vmatpush3.msra.mxu1 %v7315_v60 }
 0xd3a   :  { %5656 = vmatprep.subr.mxu1 %v6224_v50 }
 0xdca   :  { %v3919_v35 = vpop.f32.mrf.mxu1 }
 0xdcb   :  { %v7631_v21 = vadd.f32 %v7444_v12, %v3919_v35 }
 0xdcc   :  { %v5547_v18 = vpop.f32.mrf.mxu1 }
 0xdcd   :  { %v7634_v22 = vmax.f32 %v4366_v4, %v7631_v21 }
 0xdea   :  { %v3992_v14 = vpop.f32.mrf.mxu1 }
 0xdeb   :  { %v3993_v40 = vadd.f32 %v7329_v29, %v3992_v14 }
 0xdec   :  { %v5582_v28 = vpop.f32.mrf.mxu1 }
 0xded   :  { %v3996_v23 = vmax.f32 %v3993_v40, 0.0 }
 0xdef   :  { %5600 = vmatmul.mubr.msk.f32.vlgmr.msra.gmra.mxu0 %vm3264_vm1, %v3996_v23 }
 0xdf0   :  { %5603 = vmatpush3.msra.mxu0 %v7134_v58  ;;  %5634 = vmatprep.mubr.msk.f32.mxu0 %vm6225_vm0, %v6224_v50 }
 0xdf1   :  { %5604 = vmatprep.subr.mxu0 %v6224_v50 }
 0xdf2   :  { %5605 = vmatpush3.msra.mxu0 %v7139_v9 }
 0xdf3   :  { %5606 = vmatprep.subr.mxu0 %v6224_v50 }
 0xdf4   :  { %5607 = vmatpush3.msra.mxu0 %v7148_v31 }
 0xdf5   :  { %5608 = vmatprep.subr.mxu0 %v6224_v50 }
 0xdf6   :  { %5609 = vmatpush3.msra.mxu0 %v7157_v25 }
 0xdf7   :  { %5610 = vmatprep.subr.mxu0 %v6224_v50 }
 0xdf8   :  { %5611 = vmatpush3.msra.mxu0 %v7164_v38 }
 0xdf9   :  { %5612 = vmatprep.subr.mxu0 %v6224_v50 }
 0xdfa   :  { %5613 = vmatpush3.msra.mxu0 %v7171_v39 }
 0xdfb   :  { %5614 = vmatprep.subr.mxu0 %v6224_v50 }
 0xdfc   :  { %5615 = vmatpush3.msra.mxu0 %v7178_v41 }
 0xdfd   :  { %5616 = vmatprep.subr.mxu0 %v6224_v50 }
 0xdfe   :  { %5617 = vmatpush3.msra.mxu0 %v7185_v43 }
 0xdff   :  { %5618 = vmatprep.subr.mxu0 %v6224_v50 }
 0xe00   :  { %5619 = vmatpush3.msra.mxu0 %v7192_v44 }
 0xe01   :  { %5620 = vmatprep.subr.mxu0 %v6224_v50 }
 0xe02   :  { %5621 = vmatpush3.msra.mxu0 %v7199_v47 }
 0xe03   :  { %5622 = vmatprep.subr.mxu0 %v6224_v50 }
 0xe04   :  { %5623 = vmatpush3.msra.mxu0 %v7206_v51 }
 0xe05   :  { %5624 = vmatprep.subr.mxu0 %v6224_v50 }
 0xe06   :  { %5625 = vmatpush3.msra.mxu0 %v7213_v52 }
 0xe07   :  { %5626 = vmatprep.subr.mxu0 %v6224_v50 }
 0xe08   :  { %5627 = vmatpush3.msra.mxu0 %v7220_v55 }
 0xe09   :  { %5628 = vmatprep.subr.mxu0 %v6224_v50 }
 0xe0a   :  { %5629 = vmatpush3.msra.mxu0 %v7227_v56 }
 0xe0b   :  { %5630 = vmatprep.subr.mxu0 %v6224_v50 }
 0xe0c   :  { %5631 = vmatpush3.msra.mxu0 %v7234_v42 }
 0xe0d   :  { %5632 = vmatprep.subr.mxu0 %v6224_v50 }
 0xe0e   :  { %5633 = vmatpush3.msra.mxu0 %v7241_v57 }
 0xe0f   :  { %5635 = vmatmul.mubr.f32.vlgmr.msra.gmra.mxu0 %v4071_v27  ;;  %5691 = vmatprep.subr.mxu0 %v6224_v50 }
 0xe10   :  { %5692 = vmatpush3.msra.mxu0 %v7253_v53  ;;  %5707 = vmatprep.mubr.msk.f32.mxu0 %vm6225_vm0, %v6224_v50 }
 0xe11   :  { %5693 = vmatprep.subr.mxu0 %v6224_v50 }
 0xe12   :  { %5694 = vmatpush3.msra.mxu0 %v7261_v54 }
 0xe13   :  { %5695 = vmatprep.subr.mxu0 %v6224_v50 }
 0xe14   :  { %5696 = vmatpush3.msra.mxu0 %v7270_v61 }
 0xe15   :  { %5697 = vmatprep.subr.mxu0 %v6224_v50 }
 0xe16   :  { %5698 = vmatpush3.msra.mxu0 %v7279_v45 }
 0xe17   :  { %5699 = vmatprep.subr.mxu0 %v6224_v50 }
 0xe18   :  { %5700 = vmatpush3.msra.mxu0 %v7288_v46 }
 0xe19   :  { %5701 = vmatprep.subr.mxu0 %v6224_v50 }
 0xe1a   :  { %5702 = vmatpush3.msra.mxu0 %v7297_v0 }
 0xe1b   :  { %5703 = vmatprep.subr.mxu0 %v6224_v50 }
 0xe1c   :  { %5704 = vmatpush3.msra.mxu0 %v7306_v59 }
 0xe1d   :  { %5705 = vmatprep.subr.mxu0 %v6224_v50 }
 0xe1e   :  { %5706 = vmatpush3.msra.mxu0 %v7315_v60 }
 0xe1f   :  { %5710 = vmatprep.subr.mxu0 %v6224_v50 }
 0xeaf   :  { %v4066_v53 = vpop.f32.mrf.mxu0 }
 0xeb0   :  { %v7692_v54 = vadd.f32 %v7444_v12, %v4066_v53 }
 0xeb1   :  { %v5601_v61 = vpop.f32.mrf.mxu0 }
 0xeb2   :  { %v4368_v45 = vmax.f32 %v7634_v22, %v7692_v54 }
 0xecf   :  { %v4139_v46 = vpop.f32.mrf.mxu0 }
 0xed0   :  { %v4140_v0 = vadd.f32 %v7329_v29, %v4139_v46 }
 0xed1   :  { %v5636_v37 = vpop.f32.mrf.mxu0 }
 0xed2   :  { %v4143_v30 = vmax.f32 %v4140_v0, 0.0 }
 0xed4   :  { %5654 = vmatmul.mubr.msk.f32.vlgmr.msra.gmra.mxu1 %vm3264_vm1, %v4143_v30 }
 0xed5   :  { %5657 = vmatpush3.msra.mxu1 %v7134_v58  ;;  %5688 = vmatprep.mubr.msk.f32.mxu1 %vm6225_vm0, %v6224_v50  ;;  %v4218_v58 = vrot.slane %v7356_v3, 6 }
 0xed6   :  { %5658 = vmatprep.subr.mxu1 %v6224_v50 }
 0xed7   :  { %5659 = vmatpush3.msra.mxu1 %v7139_v9 }
 0xed8   :  { %5660 = vmatprep.subr.mxu1 %v6224_v50 }
 0xed9   :  { %5661 = vmatpush3.msra.mxu1 %v7148_v31 }
 0xeda   :  { %5662 = vmatprep.subr.mxu1 %v6224_v50 }
 0xedb   :  { %5663 = vmatpush3.msra.mxu1 %v7157_v25 }
 0xedc   :  { %5664 = vmatprep.subr.mxu1 %v6224_v50 }
 0xedd   :  { %5665 = vmatpush3.msra.mxu1 %v7164_v38 }
 0xede   :  { %5666 = vmatprep.subr.mxu1 %v6224_v50 }
 0xedf   :  { %5667 = vmatpush3.msra.mxu1 %v7171_v39 }
 0xee0   :  { %5668 = vmatprep.subr.mxu1 %v6224_v50 }
 0xee1   :  { %5669 = vmatpush3.msra.mxu1 %v7178_v41 }
 0xee2   :  { %5670 = vmatprep.subr.mxu1 %v6224_v50 }
 0xee3   :  { %5671 = vmatpush3.msra.mxu1 %v7185_v43 }
 0xee4   :  { %5672 = vmatprep.subr.mxu1 %v6224_v50 }
 0xee5   :  { %5673 = vmatpush3.msra.mxu1 %v7192_v44 }
 0xee6   :  { %5674 = vmatprep.subr.mxu1 %v6224_v50 }
 0xee7   :  { %5675 = vmatpush3.msra.mxu1 %v7199_v47  ;;  %v4506_v47 = vld [vmem:[%s7833_s9 + $0x78] sm:$0xff] }
 0xee8   :  { %5676 = vmatprep.subr.mxu1 %v6224_v50 }
 0xee9   :  { %5677 = vmatpush3.msra.mxu1 %v7206_v51  ;;  %v4505_v51 = vld [vmem:[%s7833_s9 + $0x70] sm:$0xff] }
 0xeea   :  { %5678 = vmatprep.subr.mxu1 %v6224_v50 }
 0xeeb   :  { %5679 = vmatpush3.msra.mxu1 %v7213_v52  ;;  %v4504_v52 = vld [vmem:[%s7833_s9 + $0x68] sm:$0xff] }
 0xeec   :  { %5680 = vmatprep.subr.mxu1 %v6224_v50 }
 0xeed   :  { %5681 = vmatpush3.msra.mxu1 %v7220_v55  ;;  %v4503_v55 = vld [vmem:[%s7833_s9 + $0x60] sm:$0xff] }
 0xeee   :  { %5682 = vmatprep.subr.mxu1 %v6224_v50 }
 0xeef   :  { %5683 = vmatpush3.msra.mxu1 %v7227_v56  ;;  %v4502_v56 = vld [vmem:[%s7833_s9 + $0x58] sm:$0xff] }
 0xef0   :  { %5684 = vmatprep.subr.mxu1 %v6224_v50 }
 0xef1   :  { %5685 = vmatpush3.msra.mxu1 %v7234_v42 }
 0xef2   :  { %5686 = vmatprep.subr.mxu1 %v6224_v50 }
 0xef3   :  { %5687 = vmatpush3.msra.mxu1 %v7241_v57 }
 0xef4   :  { %5689 = vmatmul.mubr.f32.vlgmr.msra.gmra.mxu1 %v4218_v58 }
 0xf94   :  { %v4213_v9 = vpop.f32.mrf.mxu1 }
 0xf95   :  { %v4214_v31 = vadd.f32 %v7444_v12, %v4213_v9 }
 0xf96   :  { %v5655_v25 = vpop.f32.mrf.mxu1 }
 0xf97   :  { %v4369_v38 = vmax.f32 %v4368_v45, %v4214_v31  ;;  %v4501_v45 = vld [vmem:[%s7833_s9 + $0x50] sm:$0xff] }
 0xfb4   :  { %v4286_v39 = vpop.f32.mrf.mxu1 }
 0xfb5   :  { %v4287_v41 = vadd.f32 %v7329_v29, %v4286_v39  ;;  %v4499_v39 = vld [vmem:[%s7833_s9 + $0x40] sm:$0xff] }
 0xfb6   :  { %v5690_v43 = vpop.f32.mrf.mxu1 }
 0xfb7   :  { %v4290_v44 = vmax.f32 %v4287_v41, 0.0  ;;  %v4498_v41 = vld [vmem:[%s7833_s9 + $0x38] sm:$0xff]  ;;  %v4497_v43 = vld [vmem:[%s7833_s9 + $0x30] sm:$0xff] }
 0xfb9   :  { %5708 = vmatmul.mubr.msk.f32.vlgmr.msra.gmra.mxu0 %vm3264_vm1, %v4290_v44  ;;  %v4496_v44 = vld [vmem:[%s7833_s9 + $0x28] sm:$0xff] }
 0xfba   :  { %5742 = vmatprep.mubr.msk.f32.mxu0 %vm6225_vm0, %v6224_v50  ;;  %5711 = vmatpush3.msra.mxu0 %v4506_v47  ;;  %v4495_v47 = vld [vmem:[%s7833_s9 + $0x20] sm:$0xff] }
 0xfbb   :  { %5712 = vmatprep.subr.mxu0 %v6224_v50 }
 0xfbc   :  { %5713 = vmatpush3.msra.mxu0 %v4505_v51  ;;  %v4494_v51 = vld [vmem:[%s7833_s9 + $0x18] sm:$0xff] }
 0xfbd   :  { %5714 = vmatprep.subr.mxu0 %v6224_v50 }
 0xfbe   :  { %5715 = vmatpush3.msra.mxu0 %v4504_v52  ;;  %v4493_v52 = vld [vmem:[%s7833_s9 + $0x10] sm:$0xff] }
 0xfbf   :  { %5716 = vmatprep.subr.mxu0 %v6224_v50 }
 0xfc0   :  { %5717 = vmatpush3.msra.mxu0 %v4503_v55  ;;  %v4492_v55 = vld [vmem:[%s7833_s9 + $0x8] sm:$0xff] }
 0xfc1   :  { %5718 = vmatprep.subr.mxu0 %v6224_v50 }
 0xfc2   :  { %5719 = vmatpush3.msra.mxu0 %v4502_v56  ;;  %v4491_v56 = vld [vmem:[%s7833_s9] sm:$0xff] }
 0xfc3   :  { %5720 = vmatprep.subr.mxu0 %v6224_v50 }
 0xfc4   :  { %5721 = vmatpush3.msra.mxu0 %v4501_v45 }
 0xfc5   :  { %5722 = vmatprep.subr.mxu0 %v6224_v50 }
0x1079   :  { %v4360_v42 = vpop.f32.mrf.mxu0 }
0x107a   :  { %v4361_v57 = vadd.f32 %v7444_v12, %v4360_v42 }
0x107b   :  { %v5709_v59 = vpop.f32.mrf.mxu0 }
0x107c   :  { %v4370_v60 = vmax.f32 %v4369_v38, %v4361_v57  ;;  %v4500_v38 = vld [vmem:[%s7833_s9 + $0x48] sm:$0xff] }
0x107d   :  { %5723 = vmatpush3.msra.mxu0 %v4500_v38 }
0x107e   :  { %v4371_v29 = vsub.f32 %v7447_v16, %v4370_v60  ;;  %v4377_v15 = vsub.f32 %v7510_v26, %v4370_v60  ;;  %v4380_v62 = vsub.f32 %v7571_v49, %v4370_v60  ;;  %v4383_v63 = vsub.f32 %v7631_v21, %v4370_v60  ;;  %5724 = vmatprep.subr.mxu0 %v6224_v50 }
0x107f   :  { %v4386_v7 = vsub.f32 %v7692_v54, %v4370_v60  ;;  %v4389_v11 = vsub.f32 %v4214_v31, %v4370_v60  ;;  %v4374_v17 = vsub.f32 %v7450_v8, %v4370_v60  ;;  %v4392_v26 = vsub.f32 %v4361_v57, %v4370_v60  ;;  %5725 = vmatpush3.msra.mxu0 %v4499_v39 }
0x1080   :  { %v4372_v1 = vmul.f32 1.442695, %v4371_v29  ;;  %v4378_v4 = vmul.f32 1.442695, %v4377_v15  ;;  %v4381_v12 = vmul.f32 1.442695, %v4380_v62  ;;  %5726 = vmatprep.subr.mxu0 %v6224_v50 }
0x1081   :  { %v4375_v2 = vmul.f32 1.442695, %v4374_v17  ;;  %v4384_v6 = vmul.f32 1.442695, %v4383_v63  ;;  %v4387_v16 = vmul.f32 1.442695, %v4386_v7  ;;  %5727 = vmatpush3.msra.mxu0 %v4498_v41 }
0x1082   :  { %6122 = vpow2.f32 %v4372_v1  ;;  %v4390_v49 = vmul.f32 1.442695, %v4389_v11  ;;  %v4393_v19 = vmul.f32 1.442695, %v4392_v26  ;;  %5728 = vmatprep.subr.mxu0 %v6224_v50 }
0x1083   :  { %6124 = vpow2.f32 %v4375_v2  ;;  %5729 = vmatpush3.msra.mxu0 %v4497_v43 }
0x1084   :  { %6126 = vpow2.f32 %v4378_v4  ;;  %5730 = vmatprep.subr.mxu0 %v6224_v50 }
0x1085   :  { %6128 = vpow2.f32 %v4381_v12  ;;  %5731 = vmatpush3.msra.mxu0 %v4496_v44 }
0x1086   :  { %6130 = vpow2.f32 %v4384_v6  ;;  %5732 = vmatprep.subr.mxu0 %v6224_v50 }
0x1087   :  { %6132 = vpow2.f32 %v4387_v16  ;;  %5733 = vmatpush3.msra.mxu0 %v4495_v47 }
0x1088   :  { %6134 = vpow2.f32 %v4390_v49  ;;  %5734 = vmatprep.subr.mxu0 %v6224_v50 }
0x1089   :  { %6136 = vpow2.f32 %v4393_v19  ;;  %5735 = vmatpush3.msra.mxu0 %v4494_v51 }
0x108a   :  { %5736 = vmatprep.subr.mxu0 %v6224_v50 }
0x108b   :  { %5737 = vmatpush3.msra.mxu0 %v4493_v52 }
0x108c   :  { %5738 = vmatprep.subr.mxu0 %v6224_v50 }
0x108d   :  { %5739 = vmatpush3.msra.mxu0 %v4492_v55 }
0x108e   :  { %5740 = vmatprep.subr.mxu0 %v6224_v50 }
0x108f   :  { %v6123_v34 = vpop.eup %6122  ;;  %5741 = vmatpush3.msra.mxu0 %v4491_v56 }
0x1090   :  { %v6125_v48 = vpop.eup %6124 }
0x1091   :  { %v4395_v8 = vadd.f32 %v6125_v48, %v6123_v34  ;;  %v6127_v33 = vpop.eup %6126 }
0x1092   :  { %v6129_v21 = vpop.eup %6128 }
0x1093   :  { %v4396_v35 = vadd.f32 %v6127_v33, %v4395_v8  ;;  %v6131_v22 = vpop.eup %6130 }
0x1094   :  { %v6133_v40 = vpop.eup %6132 }
0x1095   :  { %v4397_v18 = vadd.f32 %v6129_v21, %v4396_v35  ;;  %v6135_v23 = vpop.eup %6134 }
0x1096   :  { %v6137_v53 = vpop.eup %6136 }
0x1097   :  { %v4398_v14 = vadd.f32 %v6131_v22, %v4397_v18 }
0x1099   :  { %v4399_v28 = vadd.f32 %v6133_v40, %v4398_v14 }
0x109b   :  { %v4400_v27 = vadd.f32 %v6135_v23, %v4399_v28 }
0x109d   :  { %v4401_v54 = vadd.f32 %v6137_v53, %v4400_v27 }
0x109f   :  { %6138 = vrcp.f32 %v4401_v54 }
0x10ac   :  { %v6139_v61 = vpop.eup %6138 }
0x10ad   :  { %v4411_v46 = vmul.f32 %v6139_v61, %v6125_v48  ;;  %v4403_v0 = vmul.f32 %v6139_v61, %v6123_v34  ;;  %v4423_v37 = vmul.f32 %v6139_v61, %v6127_v33  ;;  %v4435_v30 = vmul.f32 %v6139_v61, %v6129_v21 }
0x10ae   :  { %v4455_v58 = vmul.f32 %v6139_v61, %v6133_v40  ;;  %v4447_v9 = vmul.f32 %v6139_v61, %v6131_v22  ;;  %v4467_v31 = vmul.f32 %v6139_v61, %v6135_v23  ;;  %v4479_v25 = vmul.f32 %v6139_v61, %v6137_v53 }
0x10af   :  { %4414 = vperm.xlu0 %5752, %v4411_v46   ;;  %4406 = vperm.xlu1 %5753, %v4403_v0  }
0x10b3   :  { %4426 = vperm.xlu0 %5752, %v4423_v37   ;;  %4438 = vperm.xlu1 %5753, %v4435_v30  }
0x10b7   :  { %4458 = vperm.xlu0 %5752, %v4455_v58   ;;  %4450 = vperm.xlu1 %5753, %v4447_v9  }
0x10bb   :  { %4470 = vperm.xlu0 %5752, %v4467_v31   ;;  %4482 = vperm.xlu1 %5753, %v4479_v25  }
0x112a   :  { %v4415_v42 = vpop.permute.xlu0 %4414  ;;  %v4407_v57 = vpop.permute.xlu1 %4406 }
0x112b   :  { %v4416_v59 = vrot.slane %v4415_v42, 6  ;;  %v4409_v11 = vmul.f32 %v4407_v57, %v6781_v5 }
0x112d   :  { %v4418_v60 = vmul.f32 %v4416_v59, %v6827_v36 }
0x112e   :  { %v4427_v29 = vpop.permute.xlu0 %4426  ;;  %v4439_v15 = vpop.permute.xlu1 %4438 }
0x112f   :  { %v4420_v62 = vrot.slane %v4418_v60, 2  ;;  %v4428_v63 = vrot.slane %v4427_v29, 4  ;;  %v4440_v7 = vrot.slane %v4439_v15, 2 }
0x1131   :  { %v4430_v17 = vmul.f32 %v4428_v63, %v6873_v24  ;;  %v4442_v1 = vmul.f32 %v4440_v7, %v6919_v10  ;;  %v4422_v50 = vadd.f32 %v4420_v62, %v4409_v11 }
0x1132   :  { %v4459_v2 = vpop.permute.xlu0 %4458  ;;  %v4451_v4 = vpop.permute.xlu1 %4450 }
0x1133   :  { %v4432_v12 = vrot.slane %v4430_v17, 4  ;;  %v4460_v6 = vrot.slane %v4459_v2, 6  ;;  %v4444_v26 = vrot.slane %v4442_v1, 6  ;;  %v4453_v48 = vmul.f32 %v4451_v4, %v6975_v32 }
0x1135   :  { %v4434_v16 = vadd.f32 %v4432_v12, %v4422_v50  ;;  %v4462_v36 = vmul.f32 %v4460_v6, %v7021_v13  ;;  %v4854_v13 = vld [vmem:[%s7834_s10] ss:$0 sm:$0xff]  ;;  %s6196_s10 = scalar_lea.vmem %s4604_s28, 32 }
0x1136   :  { %v4471_v49 = vpop.permute.xlu0 %4470  ;;  %v4483_v19 = vpop.permute.xlu1 %4482  ;;  %p6197_p5 = scmp.ne.s32.totalorder %s4604_s28, %s6196_s10  ;;  %p6202_p7 = scmp.lt.s32.totalorder %s6196_s10, %s6196_s10 }
0x1137   :  { %v4446_v34 = vadd.f32 %v4444_v26, %v4434_v16  ;;  %v4472_v8 = vrot.slane %v4471_v49, 4  ;;  %v4484_v5 = vrot.slane %v4483_v19, 2  ;;  %v4464_v33 = vrot.slane %v4462_v36, 2 }
0x1138   :  { %p6203_p8 = por %p6202_p7, %p6201_p6 }
0x1139   :  { %v4454_v24 = vadd.f32 %v4453_v48, %v4446_v34  ;;  %v4474_v10 = vmul.f32 %v4472_v8, %v7127_v20  ;;  %v4486_v35 = vmul.f32 %v4484_v5, %v7356_v3 }
0x113a   :  { %p6204_p9 = pnand %p6203_p8, %p6197_p5 }
0x113b   :  { %v4466_v21 = vadd.f32 %v4464_v33, %v4454_v24  ;;  %v4476_v18 = vrot.slane %v4474_v10, 4  ;;  %v4488_v14 = vrot.slane %v4486_v35, 6 }
0x113d   :  { %v4478_v22 = vadd.f32 %v4476_v18, %v4466_v21 }
0x113f   :  { %v4490_v40 = vadd.f32 %v4488_v14, %v4478_v22 }
0x1141   :  { %5743 = vmatmul.mubr.f32.vlgmr.msra.gmra.mxu0 %v4490_v40 }
0x1201   :  { %v4580_v28 = vpop.f32.mrf.mxu0 }
0x1202   :  { %v4581_v32 = vadd.f32 %v4854_v13, %v4580_v28 }
0x1203   :  { %v5744_v23 = vpop.f32.mrf.mxu0 }
0x1204   :  { %v4585_v27 = vsel %vm4584_vm2, %v4581_v32, -inf }
0x1205   :  { %4586 = vmax.xlane.f32.xlu0 %v4585_v27 }
0x128e   :  { %v4587_v20 = vpop.xlane.xlu0 %4586 }
0x128f   :  { %v4588_v53 = vsub.f32 %v4581_v32, %v4587_v20 }
0x1291   :  { %v4589_v3 = vmul.f32 1.442695, %v4588_v53 }
0x1293   :  { %6140 = vpow2.f32 %v4589_v3 }
0x12a0   :  { %v6141_v54 = vpop.eup %6140 }
0x12a1   :  { %v4591_v61 = vsel %vm4584_vm2, %v6141_v54, 0.0 }
0x12a2   :  { %4592 = vadd.xlane.f32.xlu1 %v4591_v61 }
0x132b   :  { %v4593_v45 = vpop.xlane.xlu1 %4592 }
0x132c   :  { %6142 = vrcp.f32 %v4593_v45 }
0x1339   :  { %v6143_v46 = vpop.eup %6142 }
0x133a   :  { %v4595_v0 = vmul.f32 %v6143_v46, %v6141_v54 }
0x133c   :  { %4596 = vst.msk [vmem:[#allocation6] sm:$0x3] %vm4584_vm2, %v4595_v0 }
0x133d   :  { %6207 = shalt.err (!%p6204_p9)
}
0x133e   :  { %4606 = dma.vmem_to_hbm [thread:$0]  %s4604_s28, 32, %s7835_s11, [#allocation5]  }
0x133f   :  { %6218 = dma.done.wait [#allocation5], 32  }
0x1340   :  { %6219 = vsyncadd [#allocation5], 4294967264 }
0x1341   :  { %4610 = vsyncpa [#allocation4], 1 }
0x1342   :  { %4611 = vsyncpa [#allocation5], 1 }

</bundles_post_ra>
